<compile_context>
chip_gen: v7x
topology: tpu7x:2x2x1
jax: 0.10.0
libtpu: 0.0.40
codegen_flags: <defaults>
</compile_context>

<pallas_src>
import functools
import math

import jax
import jax.numpy as jnp
from jax.experimental import pallas as pl
from jax.experimental.pallas import tpu as pltpu

# ------------- small DeiT-like config (synthetic; deit-base values noted) ----
INPUT_RESOLUTION = 32       # module default 1024
PATCH_SIZE = 8              # deit-base: 16
EMBED_DIM = 32              # deit-base: 768
NUM_HEADS = 4               # deit-base: 12
NUM_LAYERS = 2              # deit-base: 12
MLP_DIM = 4 * EMBED_DIM     # deit-base: 3072
PRETRAINED_GRID = 2         # pretrained pos-embed grid (deit-base: 224//16 = 14)
LN_EPS = 1e-12              # HF ViT layer_norm_eps
HEAD_DIM = EMBED_DIM // NUM_HEADS

GRID = INPUT_RESOLUTION // PATCH_SIZE        # 4
NUM_PATCHES = GRID * GRID                    # 16
SEQ_LEN = 1 + NUM_PATCHES                    # 17 (cls + patches)
PATCH_FEAT = 3 * PATCH_SIZE * PATCH_SIZE     # 192

MAX_BATCH_TILE = 8                           # images per grid step (review item #1)


def _round_up(x, m):
    return ((x + m - 1) // m) * m


# Lane/sublane-dense padded shapes used inside the fused kernel.
D_PAD = _round_up(EMBED_DIM, 128)            # 128  (lane-dense embed dim)
S_PAD = _round_up(SEQ_LEN, 8)                # 24   (sublane-dense seq len)
PF_PAD = _round_up(PATCH_FEAT, 128)          # 256  (lane-dense patch features)
MLP_PAD = _round_up(MLP_DIM, 128)            # 128
DH_PAD = D_PAD // NUM_HEADS                  # 32   (lane chunk per head)
assert HEAD_DIM <= DH_PAD
assert MLP_PAD == D_PAD                      # b1 packs into the (8, D_PAD) vec block

PIXEL_MEAN = jnp.array([0.485, 0.456, 0.406], jnp.float32) * 255.0
PIXEL_STD = jnp.array([0.229, 0.224, 0.225], jnp.float32) * 255.0

INV_SQRT2 = 0.7071067811865476
ATTN_SCALE = 1.0 / math.sqrt(HEAD_DIM)


# ----------------------------- fused ViT kernel -------------------------------
def _erf_f32(x):
    # TODO(synk): torch GELU uses exact erf; this is a float32-accurate
    # polynomial erf (Abramowitz & Stegun 7.1.26, |err| < 1.5e-7) inside the kernel.
    a1, a2, a3, a4, a5 = 0.254829592, -0.284496736, 1.421413741, -1.453152027, 1.061405429
    p = 0.3275911
    sgn = jnp.where(x >= 0.0, 1.0, -1.0)
    ax = jnp.abs(x)
    t = 1.0 / (1.0 + p * ax)
    poly = ((((a5 * t + a4) * t + a3) * t + a2) * t + a1) * t
    return sgn * (1.0 - poly * jnp.exp(-ax * ax))


def _vit_kernel(patches_ref, patch_w_ref, addend_ref, wqkv_ref, bqkv_ref,
                wo_ref, w1_ref, w2_ref, vecs_ref, lnf_ref, out_ref, *, bt):
    """Processes a tile of `bt` images fully in VMEM."""
    f32 = jnp.float32
    m_rows = bt * S_PAD

    # Masks (pad columns / pad key rows) built from iota; no extra inputs.
    lane = jax.lax.broadcasted_iota(jnp.int32, (1, D_PAD), 1)
    d_mask = (lane < EMBED_DIM).astype(f32)                      # true embed lanes
    key_lane = jax.lax.broadcasted_iota(jnp.int32, (1, S_PAD), 1)
    key_bias = jnp.where(key_lane < SEQ_LEN, 0.0, -1e30).astype(f32)

    def layer_norm(x, g, b):
        # Statistics over the true EMBED_DIM only; pad lanes of x are always 0.
        mean = jnp.sum(x, axis=-1, keepdims=True) * (1.0 / EMBED_DIM)
        xc = (x - mean) * d_mask
        var = jnp.sum(xc * xc, axis=-1, keepdims=True) * (1.0 / EMBED_DIM)
        return xc * jax.lax.rsqrt(var + LN_EPS) * g + b

    # Patch embed for the whole tile in one matmul; then add cls/pos/patch-bias
    # (addend row 0 carries cls+pos[0], rows 1..N carry pos + patch bias,
    #  pad rows are zero; the leading-dim reshapes are free, S_PAD is 8-aligned).
    patches = patches_ref[...].reshape(m_rows, PF_PAD)
    h = jnp.dot(patches, patch_w_ref[...], preferred_element_type=f32)
    h = (h.reshape(bt, S_PAD, D_PAD) + addend_ref[...][None, :, :]
         ).reshape(m_rows, D_PAD)

    # TODO(synk): for v6e/v7x at real deit-base scale, cast matmul operands to
    # bf16 (f32 accumulation), tile QKV/MLP over K/N with an "arbitrary"
    # reduction grid axis, and stream per-layer weights (layer grid axis or
    # emit_pipeline) instead of keeping all layers resident; kept f32 /
    # all-resident here to match reference numerics at toy shapes.
    for l in range(NUM_LAYERS):
        vecs = vecs_ref[l]                                        # (8, D_PAD)
        ln1_g, ln1_b = vecs[0:1, :], vecs[1:2, :]
        ln2_g, ln2_b = vecs[2:3, :], vecs[3:4, :]
        bo, b1, b2 = vecs[4:5, :], vecs[5:6, :], vecs[6:7, :]

        # ----- self-attention block (pre-LN), fused QKV matmul (M = bt*S_PAD) ----
        h1 = layer_norm(h, ln1_g, ln1_b)
        qkv = jnp.dot(h1, wqkv_ref[l], preferred_element_type=f32) + bqkv_ref[l]
        qs = qkv[:, 0:D_PAD]
        ks = qkv[:, D_PAD:2 * D_PAD]
        vs = qkv[:, 2 * D_PAD:3 * D_PAD]

        # Scores for every (image, head) pair, then ONE batched softmax chain
        # (single max / exp / sum / reciprocal over all tiles).
        s_parts = []
        for b in range(bt):
            r0 = b * S_PAD
            for hd in range(NUM_HEADS):
                c0 = hd * DH_PAD
                s_parts.append(jax.lax.dot_general(
                    qs[r0:r0 + S_PAD, c0:c0 + DH_PAD],
                    ks[r0:r0 + S_PAD, c0:c0 + DH_PAD],
                    (((1,), (1,)), ((), ())), preferred_element_type=f32))
        s = jnp.stack(s_parts, axis=0) * ATTN_SCALE + key_bias    # (bt*H, S, S)
        s = s - jnp.max(s, axis=-1, keepdims=True)
        p = jnp.exp(s)
        p = p * pl.reciprocal(jnp.sum(p, axis=-1, keepdims=True), approx=True)

        # Per-(image, head) context matmuls; heads concatenated along their
        # disjoint 32-lane chunks so the output projection is a single
        # K=D_PAD matmul against the fused wo (per-head row blocks).
        ctx_rows = []
        idx = 0
        for b in range(bt):
            r0 = b * S_PAD
            cols = []
            for hd in range(NUM_HEADS):
                c0 = hd * DH_PAD
                cols.append(jnp.dot(p[idx], vs[r0:r0 + S_PAD, c0:c0 + DH_PAD],
                                    preferred_element_type=f32))
                idx += 1
            ctx_rows.append(jnp.concatenate(cols, axis=-1))       # (S_PAD, D_PAD)
        ctx = jnp.concatenate(ctx_rows, axis=0)                   # (bt*S_PAD, D_PAD)
        h = h + jnp.dot(ctx, wo_ref[l], preferred_element_type=f32) + bo

        # ----- MLP block (pre-LN), exact-erf GELU -----
        h2 = layer_norm(h, ln2_g, ln2_b)
        m = jnp.dot(h2, w1_ref[l], preferred_element_type=f32) + b1
        m = 0.5 * m * (1.0 + _erf_f32(m * INV_SQRT2))
        h = h + jnp.dot(m, w2_ref[l], preferred_element_type=f32) + b2

    y = layer_norm(h, lnf_ref[0:1, :], lnf_ref[1:2, :])
    out_ref[...] = y.reshape(bt, S_PAD, D_PAD).astype(out_ref.dtype)


def _vit_pallas(patches, prep, bt):
    """patches: (B_pad, S_PAD, PF_PAD) -> hidden (B_pad, S_PAD, D_PAD)."""
    b_pad = patches.shape[0]
    assert b_pad % bt == 0
    num_tiles = b_pad // bt
    n_l = NUM_LAYERS
    kernel = functools.partial(_vit_kernel, bt=bt)
    # TODO(synk): at real scale, mark constant-index weight BlockSpecs
    # single-buffered (pipeline_mode=pl.Buffered(1)) to halve weight VMEM.
    return pl.pallas_call(
        kernel,
        grid=(num_tiles,),
        in_specs=[
            pl.BlockSpec((bt, S_PAD, PF_PAD), lambda t: (t, 0, 0)),       # patches
            pl.BlockSpec((PF_PAD, D_PAD), lambda t: (0, 0)),              # patch_w
            pl.BlockSpec((S_PAD, D_PAD), lambda t: (0, 0)),               # cls/pos/bias
            pl.BlockSpec((n_l, D_PAD, 3 * D_PAD), lambda t: (0, 0, 0)),   # wqkv
            pl.BlockSpec((n_l, 1, 3 * D_PAD), lambda t: (0, 0, 0)),       # bqkv
            pl.BlockSpec((n_l, D_PAD, D_PAD), lambda t: (0, 0, 0)),       # wo (fused heads)
            pl.BlockSpec((n_l, D_PAD, MLP_PAD), lambda t: (0, 0, 0)),     # w1
            pl.BlockSpec((n_l, MLP_PAD, D_PAD), lambda t: (0, 0, 0)),     # w2
            pl.BlockSpec((n_l, 8, D_PAD), lambda t: (0, 0, 0)),           # ln/bias vecs
            pl.BlockSpec((8, D_PAD), lambda t: (0, 0)),                   # final LN
        ],
        out_specs=pl.BlockSpec((bt, S_PAD, D_PAD), lambda t: (t, 0, 0)),
        out_shape=jax.ShapeDtypeStruct((b_pad, S_PAD, D_PAD), jnp.float32),
        compiler_params=pltpu.CompilerParams(
            dimension_semantics=("parallel",),   # shard batch tiles over TCs (v7x)
            vmem_limit_bytes=32 * 1024 * 1024,   # tiny footprint; safe on v5e/v6e/v7x
        ),
    )(patches, prep["patch_w"], prep["addend"], prep["wqkv"], prep["bqkv"],
      prep["wo"], prep["w1"], prep["w2"], prep["vecs"], prep["lnf"])


# ------------------------------ JAX glue ---------------------------------------
def init_params(key):
    """Torch-like (unpadded) parameter set."""
    keys = iter(jax.random.split(key, 64))

    def nrm(shape, scale=0.02):
        return scale * jax.random.normal(next(keys), shape, jnp.float32)

    params = {
        "patch_w": nrm((PATCH_FEAT, EMBED_DIM)),
        "patch_b": nrm((EMBED_DIM,)),
        "cls_token": nrm((1, EMBED_DIM)),
        "pos_embed": nrm((1 + PRETRAINED_GRID * PRETRAINED_GRID, EMBED_DIM)),
        "ln_f_g": jnp.ones((EMBED_DIM,), jnp.float32),
        "ln_f_b": nrm((EMBED_DIM,)),
        "layers": [],
    }
    for _ in range(NUM_LAYERS):
        params["layers"].append({
            "ln1_g": jnp.ones((EMBED_DIM,), jnp.float32), "ln1_b": nrm((EMBED_DIM,)),
            "wq": nrm((EMBED_DIM, EMBED_DIM)), "bq": nrm((EMBED_DIM,)),
            "wk": nrm((EMBED_DIM, EMBED_DIM)), "bk": nrm((EMBED_DIM,)),
            "wv": nrm((EMBED_DIM, EMBED_DIM)), "bv": nrm((EMBED_DIM,)),
            "wo": nrm((EMBED_DIM, EMBED_DIM)), "bo": nrm((EMBED_DIM,)),
            "ln2_g": jnp.ones((EMBED_DIM,), jnp.float32), "ln2_b": nrm((EMBED_DIM,)),
            "w1": nrm((EMBED_DIM, MLP_DIM)), "b1": nrm((MLP_DIM,)),
            "w2": nrm((MLP_DIM, EMBED_DIM)), "b2": nrm((EMBED_DIM,)),
        })
    return params


def interpolate_pos_embed(pos_embed, gh, gw):
    cls_pos = pos_embed[:1]
    patch_pos = pos_embed[1:]
    g0 = int(round(math.sqrt(patch_pos.shape[0])))
    if (g0, g0) == (gh, gw):
        return pos_embed
    grid = patch_pos.reshape(g0, g0, EMBED_DIM)
    # TODO(synk): torch uses F.interpolate(mode='bicubic', align_corners=False);
    # jax.image.resize 'bicubic' is a close, not bit-exact, equivalent (glue).
    grid = jax.image.resize(grid, (gh, gw, EMBED_DIM), method="bicubic")
    return jnp.concatenate([cls_pos, grid.reshape(gh * gw, EMBED_DIM)], axis=0)


def prepare_params(params):
    """One-time zero-padding / stacking of weights into lane-dense kernel layouts."""
    f32 = jnp.float32
    pos = interpolate_pos_embed(params["pos_embed"], GRID, GRID)        # (SEQ_LEN, D)

    addend = jnp.zeros((S_PAD, D_PAD), f32)
    addend = addend.at[0, :EMBED_DIM].set(params["cls_token"][0] + pos[0])
    addend = addend.at[1:1 + NUM_PATCHES, :EMBED_DIM].set(
        pos[1:] + params["patch_b"][None, :])

    patch_w = jnp.zeros((PF_PAD, D_PAD), f32)
    patch_w = patch_w.at[:PATCH_FEAT, :EMBED_DIM].set(params["patch_w"])

    wqkv_l, bqkv_l, wo_l, w1_l, w2_l, vecs_l = [], [], [], [], [], []
    for lyr in params["layers"]:
        wqkv = jnp.zeros((D_PAD, 3 * D_PAD), f32)
        bqkv = jnp.zeros((1, 3 * D_PAD), f32)
        for comp, (w, b) in enumerate([(lyr["wq"], lyr["bq"]),
                                       (lyr["wk"], lyr["bk"]),
                                       (lyr["wv"], lyr["bv"])]):
            for h in range(NUM_HEADS):
                col0 = comp * D_PAD + h * DH_PAD
                wqkv = wqkv.at[:EMBED_DIM, col0:col0 + HEAD_DIM].set(
                    w[:, h * HEAD_DIM:(h + 1) * HEAD_DIM])
                bqkv = bqkv.at[0, col0:col0 + HEAD_DIM].set(
                    b[h * HEAD_DIM:(h + 1) * HEAD_DIM])
        # Fused output projection: head h's weights occupy rows
        # [h*DH_PAD, h*DH_PAD+HEAD_DIM) so a single K=D_PAD matmul against the
        # lane-concatenated per-head contexts reproduces sum_h c_h @ wo_h.
        wo = jnp.zeros((D_PAD, D_PAD), f32)
        for h in range(NUM_HEADS):
            wo = wo.at[h * DH_PAD:h * DH_PAD + HEAD_DIM, :EMBED_DIM].set(
                lyr["wo"][h * HEAD_DIM:(h + 1) * HEAD_DIM, :])
        w1 = jnp.zeros((D_PAD, MLP_PAD), f32).at[:EMBED_DIM, :MLP_DIM].set(lyr["w1"])
        w2 = jnp.zeros((MLP_PAD, D_PAD), f32).at[:MLP_DIM, :EMBED_DIM].set(lyr["w2"])
        vecs = jnp.zeros((8, D_PAD), f32)
        vecs = vecs.at[0, :EMBED_DIM].set(lyr["ln1_g"])
        vecs = vecs.at[1, :EMBED_DIM].set(lyr["ln1_b"])
        vecs = vecs.at[2, :EMBED_DIM].set(lyr["ln2_g"])
        vecs = vecs.at[3, :EMBED_DIM].set(lyr["ln2_b"])
        vecs = vecs.at[4, :EMBED_DIM].set(lyr["bo"])
        vecs = vecs.at[5, :MLP_DIM].set(lyr["b1"])
        vecs = vecs.at[6, :EMBED_DIM].set(lyr["b2"])
        wqkv_l.append(wqkv); bqkv_l.append(bqkv); wo_l.append(wo)
        w1_l.append(w1); w2_l.append(w2); vecs_l.append(vecs)

    lnf = jnp.zeros((8, D_PAD), f32)
    lnf = lnf.at[0, :EMBED_DIM].set(params["ln_f_g"])
    lnf = lnf.at[1, :EMBED_DIM].set(params["ln_f_b"])

    return {
        "patch_w": patch_w, "addend": addend,
        "wqkv": jnp.stack(wqkv_l), "bqkv": jnp.stack(bqkv_l), "wo": jnp.stack(wo_l),
        "w1": jnp.stack(w1_l), "w2": jnp.stack(w2_l), "vecs": jnp.stack(vecs_l),
        "lnf": lnf,
    }


@jax.jit
def _encode_batch(batch, prep):
    """batch: (B, 3, R, R) normalized+padded images -> (cls (B,D), spatial (B,D,g,g))."""
    b_sz = batch.shape[0]
    # Batch-tile size (review item #1): up to MAX_BATCH_TILE images per grid
    # step so matmuls run with M = bt*S_PAD; batch is zero-padded to a multiple.
    bt = min(MAX_BATCH_TILE, b_sz)
    b_pad = _round_up(b_sz, bt)
    # patchify: (B,3,g,p,g,p) -> (B, g*g, 3*p*p), row-major over (c, kh, kw)
    x = batch.reshape(b_sz, 3, GRID, PATCH_SIZE, GRID, PATCH_SIZE)
    x = x.transpose(0, 2, 4, 1, 3, 5).reshape(b_sz, NUM_PATCHES, PATCH_FEAT)
    # pad to lane/sublane-dense kernel layout: zero cls row 0, zero pad rows/cols,
    # zero pad images (sliced off below).
    patches = jnp.pad(x, ((0, b_pad - b_sz), (1, S_PAD - 1 - NUM_PATCHES),
                          (0, PF_PAD - PATCH_FEAT)))
    hidden = _vit_pallas(patches, prep, bt)                      # (B_pad, S_PAD, D_PAD)
    hidden = hidden[:b_sz]
    cls_tok = hidden[:, 0, :EMBED_DIM]                           # (B, D)
    spatial = hidden[:, 1:1 + NUM_PATCHES, :EMBED_DIM]           # (B, N, D)
    spatial = jnp.transpose(spatial, (0, 2, 1)).reshape(b_sz, EMBED_DIM, GRID, GRID)
    return cls_tok, spatial


def frozen_deit_vit_forward(batched_inputs, prep):
    image_key = "clip_image" if "clip_image" in batched_inputs[0] else "image"
    imgs = []
    for inst in batched_inputs:
        img = inst[image_key].astype(jnp.float32)
        _, h, w = img.shape
        x = (img - PIXEL_MEAN[:, None, None]) / PIXEL_STD[:, None, None]
        x = jnp.pad(x, ((0, 0), (0, INPUT_RESOLUTION - h), (0, INPUT_RESOLUTION - w)))
        imgs.append(x)
    batch = jnp.stack(imgs, axis=0)                              # (B, 3, R, R)
    cls_tok, spatial = _encode_batch(batch, prep)
    return {"cls_token": cls_tok, "spatial": spatial}


if __name__ == "__main__":
    key = jax.random.PRNGKey(0)
    pkey, ikey1, ikey2 = jax.random.split(key, 3)
    params = init_params(pkey)
    prep = prepare_params(params)   # one-time weight padding / stacking

    # Two images with different (H, W) <= input_resolution, as in the module.
    img1 = jax.random.uniform(ikey1, (3, 24, 28), jnp.float32) * 255.0
    img2 = jax.random.uniform(ikey2, (3, 32, 20), jnp.float32) * 255.0
    batched_inputs = [{"image": img1}, {"image": img2}]

    out = frozen_deit_vit_forward(batched_inputs, prep)
    jax.block_until_ready(out)

    assert out["cls_token"].shape == (2, EMBED_DIM)
    assert out["spatial"].shape == (2, EMBED_DIM, GRID, GRID)
    assert jnp.all(jnp.isfinite(out["cls_token"])) and jnp.all(jnp.isfinite(out["spatial"]))
    print("KERNEL_OK")
</pallas_src>

<mosaic_0001>
module attributes {stable_mosaic.version = 11 : i64} {
  func.func @_vit_kernel(%arg0: i32, %arg1: memref<2x24x256xf32, #tpu.memory_space<vmem>>, %arg2: memref<256x128xf32, #tpu.memory_space<vmem>>, %arg3: memref<24x128xf32, #tpu.memory_space<vmem>>, %arg4: memref<2x128x384xf32, #tpu.memory_space<vmem>>, %arg5: memref<2x1x384xf32, #tpu.memory_space<vmem>>, %arg6: memref<2x128x128xf32, #tpu.memory_space<vmem>>, %arg7: memref<2x128x128xf32, #tpu.memory_space<vmem>>, %arg8: memref<2x128x128xf32, #tpu.memory_space<vmem>>, %arg9: memref<2x8x128xf32, #tpu.memory_space<vmem>>, %arg10: memref<8x128xf32, #tpu.memory_space<vmem>>, %arg11: memref<2x24x128xf32, #tpu.memory_space<vmem>>) attributes {dimension_semantics = [#tpu.dimension_semantics<parallel>], iteration_bounds = array<i64: 1>, scalar_prefetch = 0 : i64, scratch_operands = 0 : i64, tpu.core_type = #tpu.core_type<tc>, window_params = [{transform_indices = @transform_0, window_bounds = array<i64: 2, 24, 256>}, {pipeline_mode = #tpu.pipeline_mode<synchronous>, transform_indices = @transform_1, window_bounds = array<i64: 256, 128>}, {pipeline_mode = #tpu.pipeline_mode<synchronous>, transform_indices = @transform_2, window_bounds = array<i64: 24, 128>}, {pipeline_mode = #tpu.pipeline_mode<synchronous>, transform_indices = @transform_3, window_bounds = array<i64: 2, 128, 384>}, {pipeline_mode = #tpu.pipeline_mode<synchronous>, transform_indices = @transform_4, window_bounds = array<i64: 2, 1, 384>}, {pipeline_mode = #tpu.pipeline_mode<synchronous>, transform_indices = @transform_5, window_bounds = array<i64: 2, 128, 128>}, {pipeline_mode = #tpu.pipeline_mode<synchronous>, transform_indices = @transform_6, window_bounds = array<i64: 2, 128, 128>}, {pipeline_mode = #tpu.pipeline_mode<synchronous>, transform_indices = @transform_7, window_bounds = array<i64: 2, 128, 128>}, {pipeline_mode = #tpu.pipeline_mode<synchronous>, transform_indices = @transform_8, window_bounds = array<i64: 2, 8, 128>}, {pipeline_mode = #tpu.pipeline_mode<synchronous>, transform_indices = @transform_9, window_bounds = array<i64: 8, 128>}, {transform_indices = @transform_10, window_bounds = array<i64: 2, 24, 128>}]} {
    %0 = tpu.iota {dimensions = array<i32: 1>} : vector<1x128xi32>
    %c32_i32 = arith.constant 32 : i32
    %1 = vector.broadcast %c32_i32 : i32 to vector<1x128xi32>
    %2 = arith.cmpi slt, %0, %1 : vector<1x128xi32>
    %3 = arith.extui %2 : vector<1x128xi1> to vector<1x128xi32>
    %4 = arith.sitofp %3 : vector<1x128xi32> to vector<1x128xf32>
    %5 = tpu.iota {dimensions = array<i32: 1>} : vector<1x24xi32>
    %c17_i32 = arith.constant 17 : i32
    %6 = vector.broadcast %c17_i32 : i32 to vector<1x24xi32>
    %7 = arith.cmpi slt, %5, %6 : vector<1x24xi32>
    %cst = arith.constant 0.000000e+00 : f32
    %cst_0 = arith.constant -1.000000e+30 : f32
    %8 = vector.broadcast %cst : f32 to vector<1x24xf32>
    %9 = vector.broadcast %cst_0 : f32 to vector<1x24xf32>
    %10 = arith.select %7, %8, %9 : vector<1x24xi1>, vector<1x24xf32>
    %c0 = arith.constant 0 : index
    %c0_1 = arith.constant 0 : index
    %c0_2 = arith.constant 0 : index
    %11 = vector.load %arg1[%c0, %c0_1, %c0_2] : memref<2x24x256xf32, #tpu.memory_space<vmem>>, vector<2x24x256xf32>
    %12 = vector.shape_cast %11 : vector<2x24x256xf32> to vector<48x256xf32>
    %c0_3 = arith.constant 0 : index
    %c0_4 = arith.constant 0 : index
    %13 = vector.load %arg2[%c0_3, %c0_4] : memref<256x128xf32, #tpu.memory_space<vmem>>, vector<256x128xf32>
    %cst_5 = arith.constant dense<0.000000e+00> : vector<48x128xf32>
    %14 = tpu.matmul %12, %13, %cst_5 {dimension_numbers = #tpu.dot_dimension_numbers<[1], [0], [0], [1], [0, 0, 1, 1], [], []>} : vector<48x256xf32>, vector<256x128xf32>, vector<48x128xf32> -> vector<48x128xf32>
    %15 = vector.shape_cast %14 : vector<48x128xf32> to vector<2x24x128xf32>
    %c0_6 = arith.constant 0 : index
    %c0_7 = arith.constant 0 : index
    %16 = vector.load %arg3[%c0_6, %c0_7] : memref<24x128xf32, #tpu.memory_space<vmem>>, vector<24x128xf32>
    %17 = vector.shape_cast %16 : vector<24x128xf32> to vector<1x24x128xf32>
    %18 = vector.broadcast %17 : vector<1x24x128xf32> to vector<2x24x128xf32>
    %19 = arith.addf %15, %18 : vector<2x24x128xf32>
    %20 = vector.shape_cast %19 : vector<2x24x128xf32> to vector<48x128xf32>
    %c0_8 = arith.constant 0 : index
    %c0_9 = arith.constant 0 : index
    %c0_10 = arith.constant 0 : index
    %21 = vector.load %arg9[%c0_8, %c0_9, %c0_10] : memref<2x8x128xf32, #tpu.memory_space<vmem>>, vector<1x8x128xf32>
    %22 = vector.shape_cast %21 : vector<1x8x128xf32> to vector<8x128xf32>
    %23 = vector.extract_strided_slice %22 {offsets = [0, 0], sizes = [1, 128], strides = [1, 1]} : vector<8x128xf32> to vector<1x128xf32>
    %24 = vector.extract_strided_slice %22 {offsets = [1, 0], sizes = [1, 128], strides = [1, 1]} : vector<8x128xf32> to vector<1x128xf32>
    %25 = vector.extract_strided_slice %22 {offsets = [2, 0], sizes = [1, 128], strides = [1, 1]} : vector<8x128xf32> to vector<1x128xf32>
    %26 = vector.extract_strided_slice %22 {offsets = [3, 0], sizes = [1, 128], strides = [1, 1]} : vector<8x128xf32> to vector<1x128xf32>
    %27 = vector.extract_strided_slice %22 {offsets = [4, 0], sizes = [1, 128], strides = [1, 1]} : vector<8x128xf32> to vector<1x128xf32>
    %28 = vector.extract_strided_slice %22 {offsets = [5, 0], sizes = [1, 128], strides = [1, 1]} : vector<8x128xf32> to vector<1x128xf32>
    %29 = vector.extract_strided_slice %22 {offsets = [6, 0], sizes = [1, 128], strides = [1, 1]} : vector<8x128xf32> to vector<1x128xf32>
    %cst_11 = arith.constant dense<0.000000e+00> : vector<48xf32>
    %30 = vector.multi_reduction <add>, %20, %cst_11 [1] : vector<48x128xf32> to vector<48xf32>
    %31 = vector.shape_cast %30 : vector<48xf32> to vector<48x1xf32>
    %cst_12 = arith.constant 3.125000e-02 : f32
    %32 = vector.broadcast %cst_12 : f32 to vector<48x1xf32>
    %33 = arith.mulf %31, %32 : vector<48x1xf32>
    %34 = vector.broadcast %33 : vector<48x1xf32> to vector<48x128xf32>
    %35 = arith.subf %20, %34 : vector<48x128xf32>
    %36 = vector.broadcast %4 : vector<1x128xf32> to vector<48x128xf32>
    %37 = arith.mulf %35, %36 : vector<48x128xf32>
    %38 = arith.mulf %37, %37 : vector<48x128xf32>
    %cst_13 = arith.constant dense<0.000000e+00> : vector<48xf32>
    %39 = vector.multi_reduction <add>, %38, %cst_13 [1] : vector<48x128xf32> to vector<48xf32>
    %40 = vector.shape_cast %39 : vector<48xf32> to vector<48x1xf32>
    %cst_14 = arith.constant 3.125000e-02 : f32
    %41 = vector.broadcast %cst_14 : f32 to vector<48x1xf32>
    %42 = arith.mulf %40, %41 : vector<48x1xf32>
    %cst_15 = arith.constant 9.99999996E-13 : f32
    %43 = vector.broadcast %cst_15 : f32 to vector<48x1xf32>
    %44 = arith.addf %42, %43 : vector<48x1xf32>
    %45 = math.rsqrt %44 : vector<48x1xf32>
    %46 = vector.broadcast %45 : vector<48x1xf32> to vector<48x128xf32>
    %47 = arith.mulf %37, %46 : vector<48x128xf32>
    %48 = vector.broadcast %23 : vector<1x128xf32> to vector<48x128xf32>
    %49 = arith.mulf %47, %48 : vector<48x128xf32>
    %50 = vector.broadcast %24 : vector<1x128xf32> to vector<48x128xf32>
    %51 = arith.addf %49, %50 : vector<48x128xf32>
    %c0_16 = arith.constant 0 : index
    %c0_17 = arith.constant 0 : index
    %c0_18 = arith.constant 0 : index
    %52 = vector.load %arg4[%c0_16, %c0_17, %c0_18] : memref<2x128x384xf32, #tpu.memory_space<vmem>>, vector<1x128x384xf32>
    %53 = vector.shape_cast %52 : vector<1x128x384xf32> to vector<128x384xf32>
    %cst_19 = arith.constant dense<0.000000e+00> : vector<48x384xf32>
    %54 = tpu.matmul %51, %53, %cst_19 {dimension_numbers = #tpu.dot_dimension_numbers<[1], [0], [0], [1], [0, 0, 1, 1], [], []>} : vector<48x128xf32>, vector<128x384xf32>, vector<48x384xf32> -> vector<48x384xf32>
    %c0_20 = arith.constant 0 : index
    %c0_21 = arith.constant 0 : index
    %c0_22 = arith.constant 0 : index
    %55 = vector.load %arg5[%c0_20, %c0_21, %c0_22] : memref<2x1x384xf32, #tpu.memory_space<vmem>>, vector<1x1x384xf32>
    %56 = vector.shape_cast %55 : vector<1x1x384xf32> to vector<1x384xf32>
    %57 = vector.broadcast %56 : vector<1x384xf32> to vector<48x384xf32>
    %58 = arith.addf %54, %57 : vector<48x384xf32>
    %59 = vector.extract_strided_slice %58 {offsets = [0, 0], sizes = [48, 128], strides = [1, 1]} : vector<48x384xf32> to vector<48x128xf32>
    %60 = vector.extract_strided_slice %58 {offsets = [0, 128], sizes = [48, 128], strides = [1, 1]} : vector<48x384xf32> to vector<48x128xf32>
    %61 = vector.extract_strided_slice %58 {offsets = [0, 256], sizes = [48, 128], strides = [1, 1]} : vector<48x384xf32> to vector<48x128xf32>
    %62 = vector.extract_strided_slice %59 {offsets = [0, 0], sizes = [24, 32], strides = [1, 1]} : vector<48x128xf32> to vector<24x32xf32>
    %63 = vector.extract_strided_slice %60 {offsets = [0, 0], sizes = [24, 32], strides = [1, 1]} : vector<48x128xf32> to vector<24x32xf32>
    %cst_23 = arith.constant dense<0.000000e+00> : vector<24x24xf32>
    %64 = tpu.matmul %62, %63, %cst_23 {dimension_numbers = #tpu.dot_dimension_numbers<[1], [1], [0], [0], [0, 0, 1, 0], [], []>} : vector<24x32xf32>, vector<24x32xf32>, vector<24x24xf32> -> vector<24x24xf32>
    %65 = vector.extract_strided_slice %59 {offsets = [0, 32], sizes = [24, 32], strides = [1, 1]} : vector<48x128xf32> to vector<24x32xf32>
    %66 = vector.extract_strided_slice %60 {offsets = [0, 32], sizes = [24, 32], strides = [1, 1]} : vector<48x128xf32> to vector<24x32xf32>
    %cst_24 = arith.constant dense<0.000000e+00> : vector<24x24xf32>
    %67 = tpu.matmul %65, %66, %cst_24 {dimension_numbers = #tpu.dot_dimension_numbers<[1], [1], [0], [0], [0, 0, 1, 0], [], []>} : vector<24x32xf32>, vector<24x32xf32>, vector<24x24xf32> -> vector<24x24xf32>
    %68 = vector.extract_strided_slice %59 {offsets = [0, 64], sizes = [24, 32], strides = [1, 1]} : vector<48x128xf32> to vector<24x32xf32>
    %69 = vector.extract_strided_slice %60 {offsets = [0, 64], sizes = [24, 32], strides = [1, 1]} : vector<48x128xf32> to vector<24x32xf32>
    %cst_25 = arith.constant dense<0.000000e+00> : vector<24x24xf32>
    %70 = tpu.matmul %68, %69, %cst_25 {dimension_numbers = #tpu.dot_dimension_numbers<[1], [1], [0], [0], [0, 0, 1, 0], [], []>} : vector<24x32xf32>, vector<24x32xf32>, vector<24x24xf32> -> vector<24x24xf32>
    %71 = vector.extract_strided_slice %59 {offsets = [0, 96], sizes = [24, 32], strides = [1, 1]} : vector<48x128xf32> to vector<24x32xf32>
    %72 = vector.extract_strided_slice %60 {offsets = [0, 96], sizes = [24, 32], strides = [1, 1]} : vector<48x128xf32> to vector<24x32xf32>
    %cst_26 = arith.constant dense<0.000000e+00> : vector<24x24xf32>
    %73 = tpu.matmul %71, %72, %cst_26 {dimension_numbers = #tpu.dot_dimension_numbers<[1], [1], [0], [0], [0, 0, 1, 0], [], []>} : vector<24x32xf32>, vector<24x32xf32>, vector<24x24xf32> -> vector<24x24xf32>
    %74 = vector.extract_strided_slice %59 {offsets = [24, 0], sizes = [24, 32], strides = [1, 1]} : vector<48x128xf32> to vector<24x32xf32>
    %75 = vector.extract_strided_slice %60 {offsets = [24, 0], sizes = [24, 32], strides = [1, 1]} : vector<48x128xf32> to vector<24x32xf32>
    %cst_27 = arith.constant dense<0.000000e+00> : vector<24x24xf32>
    %76 = tpu.matmul %74, %75, %cst_27 {dimension_numbers = #tpu.dot_dimension_numbers<[1], [1], [0], [0], [0, 0, 1, 0], [], []>} : vector<24x32xf32>, vector<24x32xf32>, vector<24x24xf32> -> vector<24x24xf32>
    %77 = vector.extract_strided_slice %59 {offsets = [24, 32], sizes = [24, 32], strides = [1, 1]} : vector<48x128xf32> to vector<24x32xf32>
    %78 = vector.extract_strided_slice %60 {offsets = [24, 32], sizes = [24, 32], strides = [1, 1]} : vector<48x128xf32> to vector<24x32xf32>
    %cst_28 = arith.constant dense<0.000000e+00> : vector<24x24xf32>
    %79 = tpu.matmul %77, %78, %cst_28 {dimension_numbers = #tpu.dot_dimension_numbers<[1], [1], [0], [0], [0, 0, 1, 0], [], []>} : vector<24x32xf32>, vector<24x32xf32>, vector<24x24xf32> -> vector<24x24xf32>
    %80 = vector.extract_strided_slice %59 {offsets = [24, 64], sizes = [24, 32], strides = [1, 1]} : vector<48x128xf32> to vector<24x32xf32>
    %81 = vector.extract_strided_slice %60 {offsets = [24, 64], sizes = [24, 32], strides = [1, 1]} : vector<48x128xf32> to vector<24x32xf32>
    %cst_29 = arith.constant dense<0.000000e+00> : vector<24x24xf32>
    %82 = tpu.matmul %80, %81, %cst_29 {dimension_numbers = #tpu.dot_dimension_numbers<[1], [1], [0], [0], [0, 0, 1, 0], [], []>} : vector<24x32xf32>, vector<24x32xf32>, vector<24x24xf32> -> vector<24x24xf32>
    %83 = vector.extract_strided_slice %59 {offsets = [24, 96], sizes = [24, 32], strides = [1, 1]} : vector<48x128xf32> to vector<24x32xf32>
    %84 = vector.extract_strided_slice %60 {offsets = [24, 96], sizes = [24, 32], strides = [1, 1]} : vector<48x128xf32> to vector<24x32xf32>
    %cst_30 = arith.constant dense<0.000000e+00> : vector<24x24xf32>
    %85 = tpu.matmul %83, %84, %cst_30 {dimension_numbers = #tpu.dot_dimension_numbers<[1], [1], [0], [0], [0, 0, 1, 0], [], []>} : vector<24x32xf32>, vector<24x32xf32>, vector<24x24xf32> -> vector<24x24xf32>
    %86 = vector.shape_cast %64 : vector<24x24xf32> to vector<1x24x24xf32>
    %87 = vector.shape_cast %67 : vector<24x24xf32> to vector<1x24x24xf32>
    %88 = vector.shape_cast %70 : vector<24x24xf32> to vector<1x24x24xf32>
    %89 = vector.shape_cast %73 : vector<24x24xf32> to vector<1x24x24xf32>
    %90 = vector.shape_cast %76 : vector<24x24xf32> to vector<1x24x24xf32>
    %91 = vector.shape_cast %79 : vector<24x24xf32> to vector<1x24x24xf32>
    %92 = vector.shape_cast %82 : vector<24x24xf32> to vector<1x24x24xf32>
    %93 = vector.shape_cast %85 : vector<24x24xf32> to vector<1x24x24xf32>
    %94 = tpu.concatenate %86, %87, %88, %89, %90, %91, %92, %93 in 0 : vector<1x24x24xf32>, vector<1x24x24xf32>, vector<1x24x24xf32>, vector<1x24x24xf32>, vector<1x24x24xf32>, vector<1x24x24xf32>, vector<1x24x24xf32>, vector<1x24x24xf32> -> vector<8x24x24xf32>
    %cst_31 = arith.constant 0.353553385 : f32
    %95 = vector.broadcast %cst_31 : f32 to vector<8x24x24xf32>
    %96 = arith.mulf %94, %95 : vector<8x24x24xf32>
    %97 = vector.shape_cast %10 : vector<1x24xf32> to vector<1x1x24xf32>
    %98 = vector.broadcast %97 : vector<1x1x24xf32> to vector<8x24x24xf32>
    %99 = arith.addf %96, %98 : vector<8x24x24xf32>
    %cst_32 = arith.constant dense<0xFF800000> : vector<8x24xf32>
    %100 = vector.multi_reduction <maximumf>, %99, %cst_32 [2] : vector<8x24x24xf32> to vector<8x24xf32>
    %101 = vector.shape_cast %100 : vector<8x24xf32> to vector<8x24x1xf32>
    %102 = vector.broadcast %101 : vector<8x24x1xf32> to vector<8x24x24xf32>
    %103 = arith.subf %99, %102 : vector<8x24x24xf32>
    %104 = math.exp %103 : vector<8x24x24xf32>
    %cst_33 = arith.constant dense<0.000000e+00> : vector<8x24xf32>
    %105 = vector.multi_reduction <add>, %104, %cst_33 [2] : vector<8x24x24xf32> to vector<8x24xf32>
    %106 = vector.shape_cast %105 : vector<8x24xf32> to vector<8x24x1xf32>
    %107 = tpu.reciprocal %106 {approx = true} : vector<8x24x1xf32> -> vector<8x24x1xf32>
    %108 = vector.broadcast %107 : vector<8x24x1xf32> to vector<8x24x24xf32>
    %109 = arith.mulf %104, %108 : vector<8x24x24xf32>
    %110 = vector.extract_strided_slice %109 {offsets = [0, 0, 0], sizes = [1, 24, 24], strides = [1, 1, 1]} : vector<8x24x24xf32> to vector<1x24x24xf32>
    %111 = vector.shape_cast %110 : vector<1x24x24xf32> to vector<24x24xf32>
    %112 = vector.extract_strided_slice %61 {offsets = [0, 0], sizes = [24, 32], strides = [1, 1]} : vector<48x128xf32> to vector<24x32xf32>
    %cst_34 = arith.constant dense<0.000000e+00> : vector<24x32xf32>
    %113 = tpu.matmul %111, %112, %cst_34 {dimension_numbers = #tpu.dot_dimension_numbers<[1], [0], [0], [1], [0, 0, 1, 1], [], []>} : vector<24x24xf32>, vector<24x32xf32>, vector<24x32xf32> -> vector<24x32xf32>
    %114 = vector.extract_strided_slice %109 {offsets = [1, 0, 0], sizes = [1, 24, 24], strides = [1, 1, 1]} : vector<8x24x24xf32> to vector<1x24x24xf32>
    %115 = vector.shape_cast %114 : vector<1x24x24xf32> to vector<24x24xf32>
    %116 = vector.extract_strided_slice %61 {offsets = [0, 32], sizes = [24, 32], strides = [1, 1]} : vector<48x128xf32> to vector<24x32xf32>
    %cst_35 = arith.constant dense<0.000000e+00> : vector<24x32xf32>
    %117 = tpu.matmul %115, %116, %cst_35 {dimension_numbers = #tpu.dot_dimension_numbers<[1], [0], [0], [1], [0, 0, 1, 1], [], []>} : vector<24x24xf32>, vector<24x32xf32>, vector<24x32xf32> -> vector<24x32xf32>
    %118 = vector.extract_strided_slice %109 {offsets = [2, 0, 0], sizes = [1, 24, 24], strides = [1, 1, 1]} : vector<8x24x24xf32> to vector<1x24x24xf32>
    %119 = vector.shape_cast %118 : vector<1x24x24xf32> to vector<24x24xf32>
    %120 = vector.extract_strided_slice %61 {offsets = [0, 64], sizes = [24, 32], strides = [1, 1]} : vector<48x128xf32> to vector<24x32xf32>
    %cst_36 = arith.constant dense<0.000000e+00> : vector<24x32xf32>
    %121 = tpu.matmul %119, %120, %cst_36 {dimension_numbers = #tpu.dot_dimension_numbers<[1], [0], [0], [1], [0, 0, 1, 1], [], []>} : vector<24x24xf32>, vector<24x32xf32>, vector<24x32xf32> -> vector<24x32xf32>
    %122 = vector.extract_strided_slice %109 {offsets = [3, 0, 0], sizes = [1, 24, 24], strides = [1, 1, 1]} : vector<8x24x24xf32> to vector<1x24x24xf32>
    %123 = vector.shape_cast %122 : vector<1x24x24xf32> to vector<24x24xf32>
    %124 = vector.extract_strided_slice %61 {offsets = [0, 96], sizes = [24, 32], strides = [1, 1]} : vector<48x128xf32> to vector<24x32xf32>
    %cst_37 = arith.constant dense<0.000000e+00> : vector<24x32xf32>
    %125 = tpu.matmul %123, %124, %cst_37 {dimension_numbers = #tpu.dot_dimension_numbers<[1], [0], [0], [1], [0, 0, 1, 1], [], []>} : vector<24x24xf32>, vector<24x32xf32>, vector<24x32xf32> -> vector<24x32xf32>
    %126 = tpu.concatenate %113, %117, %121, %125 in 1 : vector<24x32xf32>, vector<24x32xf32>, vector<24x32xf32>, vector<24x32xf32> -> vector<24x128xf32>
    %127 = vector.extract_strided_slice %109 {offsets = [4, 0, 0], sizes = [1, 24, 24], strides = [1, 1, 1]} : vector<8x24x24xf32> to vector<1x24x24xf32>
    %128 = vector.shape_cast %127 : vector<1x24x24xf32> to vector<24x24xf32>
    %129 = vector.extract_strided_slice %61 {offsets = [24, 0], sizes = [24, 32], strides = [1, 1]} : vector<48x128xf32> to vector<24x32xf32>
    %cst_38 = arith.constant dense<0.000000e+00> : vector<24x32xf32>
    %130 = tpu.matmul %128, %129, %cst_38 {dimension_numbers = #tpu.dot_dimension_numbers<[1], [0], [0], [1], [0, 0, 1, 1], [], []>} : vector<24x24xf32>, vector<24x32xf32>, vector<24x32xf32> -> vector<24x32xf32>
    %131 = vector.extract_strided_slice %109 {offsets = [5, 0, 0], sizes = [1, 24, 24], strides = [1, 1, 1]} : vector<8x24x24xf32> to vector<1x24x24xf32>
    %132 = vector.shape_cast %131 : vector<1x24x24xf32> to vector<24x24xf32>
    %133 = vector.extract_strided_slice %61 {offsets = [24, 32], sizes = [24, 32], strides = [1, 1]} : vector<48x128xf32> to vector<24x32xf32>
    %cst_39 = arith.constant dense<0.000000e+00> : vector<24x32xf32>
    %134 = tpu.matmul %132, %133, %cst_39 {dimension_numbers = #tpu.dot_dimension_numbers<[1], [0], [0], [1], [0, 0, 1, 1], [], []>} : vector<24x24xf32>, vector<24x32xf32>, vector<24x32xf32> -> vector<24x32xf32>
    %135 = vector.extract_strided_slice %109 {offsets = [6, 0, 0], sizes = [1, 24, 24], strides = [1, 1, 1]} : vector<8x24x24xf32> to vector<1x24x24xf32>
    %136 = vector.shape_cast %135 : vector<1x24x24xf32> to vector<24x24xf32>
    %137 = vector.extract_strided_slice %61 {offsets = [24, 64], sizes = [24, 32], strides = [1, 1]} : vector<48x128xf32> to vector<24x32xf32>
    %cst_40 = arith.constant dense<0.000000e+00> : vector<24x32xf32>
    %138 = tpu.matmul %136, %137, %cst_40 {dimension_numbers = #tpu.dot_dimension_numbers<[1], [0], [0], [1], [0, 0, 1, 1], [], []>} : vector<24x24xf32>, vector<24x32xf32>, vector<24x32xf32> -> vector<24x32xf32>
    %139 = vector.extract_strided_slice %109 {offsets = [7, 0, 0], sizes = [1, 24, 24], strides = [1, 1, 1]} : vector<8x24x24xf32> to vector<1x24x24xf32>
    %140 = vector.shape_cast %139 : vector<1x24x24xf32> to vector<24x24xf32>
    %141 = vector.extract_strided_slice %61 {offsets = [24, 96], sizes = [24, 32], strides = [1, 1]} : vector<48x128xf32> to vector<24x32xf32>
    %cst_41 = arith.constant dense<0.000000e+00> : vector<24x32xf32>
    %142 = tpu.matmul %140, %141, %cst_41 {dimension_numbers = #tpu.dot_dimension_numbers<[1], [0], [0], [1], [0, 0, 1, 1], [], []>} : vector<24x24xf32>, vector<24x32xf32>, vector<24x32xf32> -> vector<24x32xf32>
    %143 = tpu.concatenate %130, %134, %138, %142 in 1 : vector<24x32xf32>, vector<24x32xf32>, vector<24x32xf32>, vector<24x32xf32> -> vector<24x128xf32>
    %144 = tpu.concatenate %126, %143 in 0 : vector<24x128xf32>, vector<24x128xf32> -> vector<48x128xf32>
    %c0_42 = arith.constant 0 : index
    %c0_43 = arith.constant 0 : index
    %c0_44 = arith.constant 0 : index
    %145 = vector.load %arg6[%c0_42, %c0_43, %c0_44] : memref<2x128x128xf32, #tpu.memory_space<vmem>>, vector<1x128x128xf32>
    %146 = vector.shape_cast %145 : vector<1x128x128xf32> to vector<128x128xf32>
    %cst_45 = arith.constant dense<0.000000e+00> : vector<48x128xf32>
    %147 = tpu.matmul %144, %146, %cst_45 {dimension_numbers = #tpu.dot_dimension_numbers<[1], [0], [0], [1], [0, 0, 1, 1], [], []>} : vector<48x128xf32>, vector<128x128xf32>, vector<48x128xf32> -> vector<48x128xf32>
    %148 = arith.addf %20, %147 : vector<48x128xf32>
    %149 = vector.broadcast %27 : vector<1x128xf32> to vector<48x128xf32>
    %150 = arith.addf %148, %149 : vector<48x128xf32>
    %cst_46 = arith.constant dense<0.000000e+00> : vector<48xf32>
    %151 = vector.multi_reduction <add>, %150, %cst_46 [1] : vector<48x128xf32> to vector<48xf32>
    %152 = vector.shape_cast %151 : vector<48xf32> to vector<48x1xf32>
    %cst_47 = arith.constant 3.125000e-02 : f32
    %153 = vector.broadcast %cst_47 : f32 to vector<48x1xf32>
    %154 = arith.mulf %152, %153 : vector<48x1xf32>
    %155 = vector.broadcast %154 : vector<48x1xf32> to vector<48x128xf32>
    %156 = arith.subf %150, %155 : vector<48x128xf32>
    %157 = vector.broadcast %4 : vector<1x128xf32> to vector<48x128xf32>
    %158 = arith.mulf %156, %157 : vector<48x128xf32>
    %159 = arith.mulf %158, %158 : vector<48x128xf32>
    %cst_48 = arith.constant dense<0.000000e+00> : vector<48xf32>
    %160 = vector.multi_reduction <add>, %159, %cst_48 [1] : vector<48x128xf32> to vector<48xf32>
    %161 = vector.shape_cast %160 : vector<48xf32> to vector<48x1xf32>
    %cst_49 = arith.constant 3.125000e-02 : f32
    %162 = vector.broadcast %cst_49 : f32 to vector<48x1xf32>
    %163 = arith.mulf %161, %162 : vector<48x1xf32>
    %cst_50 = arith.constant 9.99999996E-13 : f32
    %164 = vector.broadcast %cst_50 : f32 to vector<48x1xf32>
    %165 = arith.addf %163, %164 : vector<48x1xf32>
    %166 = math.rsqrt %165 : vector<48x1xf32>
    %167 = vector.broadcast %166 : vector<48x1xf32> to vector<48x128xf32>
    %168 = arith.mulf %158, %167 : vector<48x128xf32>
    %169 = vector.broadcast %25 : vector<1x128xf32> to vector<48x128xf32>
    %170 = arith.mulf %168, %169 : vector<48x128xf32>
    %171 = vector.broadcast %26 : vector<1x128xf32> to vector<48x128xf32>
    %172 = arith.addf %170, %171 : vector<48x128xf32>
    %c0_51 = arith.constant 0 : index
    %c0_52 = arith.constant 0 : index
    %c0_53 = arith.constant 0 : index
    %173 = vector.load %arg7[%c0_51, %c0_52, %c0_53] : memref<2x128x128xf32, #tpu.memory_space<vmem>>, vector<1x128x128xf32>
    %174 = vector.shape_cast %173 : vector<1x128x128xf32> to vector<128x128xf32>
    %cst_54 = arith.constant dense<0.000000e+00> : vector<48x128xf32>
    %175 = tpu.matmul %172, %174, %cst_54 {dimension_numbers = #tpu.dot_dimension_numbers<[1], [0], [0], [1], [0, 0, 1, 1], [], []>} : vector<48x128xf32>, vector<128x128xf32>, vector<48x128xf32> -> vector<48x128xf32>
    %176 = vector.broadcast %28 : vector<1x128xf32> to vector<48x128xf32>
    %177 = arith.addf %175, %176 : vector<48x128xf32>
    %cst_55 = arith.constant 5.000000e-01 : f32
    %178 = vector.broadcast %cst_55 : f32 to vector<48x128xf32>
    %179 = arith.mulf %178, %177 : vector<48x128xf32>
    %cst_56 = arith.constant 0.707106769 : f32
    %180 = vector.broadcast %cst_56 : f32 to vector<48x128xf32>
    %181 = arith.mulf %177, %180 : vector<48x128xf32>
    %cst_57 = arith.constant 0.000000e+00 : f32
    %182 = vector.broadcast %cst_57 : f32 to vector<48x128xf32>
    %183 = arith.cmpf oge, %181, %182 : vector<48x128xf32>
    %cst_58 = arith.constant 1.000000e+00 : f32
    %cst_59 = arith.constant -1.000000e+00 : f32
    %184 = vector.broadcast %cst_58 : f32 to vector<48x128xf32>
    %185 = vector.broadcast %cst_59 : f32 to vector<48x128xf32>
    %186 = arith.select %183, %184, %185 : vector<48x128xi1>, vector<48x128xf32>
    %187 = math.absf %181 : vector<48x128xf32>
    %cst_60 = arith.constant 0.327591091 : f32
    %188 = vector.broadcast %cst_60 : f32 to vector<48x128xf32>
    %189 = arith.mulf %188, %187 : vector<48x128xf32>
    %cst_61 = arith.constant 1.000000e+00 : f32
    %190 = vector.broadcast %cst_61 : f32 to vector<48x128xf32>
    %191 = arith.addf %190, %189 : vector<48x128xf32>
    %cst_62 = arith.constant 1.000000e+00 : f32
    %192 = vector.broadcast %cst_62 : f32 to vector<48x128xf32>
    %193 = arith.divf %192, %191 : vector<48x128xf32>
    %cst_63 = arith.constant 1.06140542 : f32
    %194 = vector.broadcast %cst_63 : f32 to vector<48x128xf32>
    %195 = arith.mulf %194, %193 : vector<48x128xf32>
    %cst_64 = arith.constant -1.45315206 : f32
    %196 = vector.broadcast %cst_64 : f32 to vector<48x128xf32>
    %197 = arith.addf %195, %196 : vector<48x128xf32>
    %198 = arith.mulf %197, %193 : vector<48x128xf32>
    %cst_65 = arith.constant 1.42141378 : f32
    %199 = vector.broadcast %cst_65 : f32 to vector<48x128xf32>
    %200 = arith.addf %198, %199 : vector<48x128xf32>
    %201 = arith.mulf %200, %193 : vector<48x128xf32>
    %cst_66 = arith.constant -0.284496725 : f32
    %202 = vector.broadcast %cst_66 : f32 to vector<48x128xf32>
    %203 = arith.addf %201, %202 : vector<48x128xf32>
    %204 = arith.mulf %203, %193 : vector<48x128xf32>
    %cst_67 = arith.constant 0.254829586 : f32
    %205 = vector.broadcast %cst_67 : f32 to vector<48x128xf32>
    %206 = arith.addf %204, %205 : vector<48x128xf32>
    %207 = arith.mulf %206, %193 : vector<48x128xf32>
    %cst_68 = arith.constant 0.000000e+00 : f32
    %208 = vector.broadcast %cst_68 : f32 to vector<48x128xf32>
    %209 = arith.subf %208, %187 : vector<48x128xf32>
    %210 = arith.mulf %209, %187 : vector<48x128xf32>
    %211 = math.exp %210 : vector<48x128xf32>
    %212 = arith.mulf %207, %211 : vector<48x128xf32>
    %cst_69 = arith.constant 1.000000e+00 : f32
    %213 = vector.broadcast %cst_69 : f32 to vector<48x128xf32>
    %214 = arith.subf %213, %212 : vector<48x128xf32>
    %215 = arith.mulf %186, %214 : vector<48x128xf32>
    %cst_70 = arith.constant 1.000000e+00 : f32
    %216 = vector.broadcast %cst_70 : f32 to vector<48x128xf32>
    %217 = arith.addf %216, %215 : vector<48x128xf32>
    %218 = arith.mulf %179, %217 : vector<48x128xf32>
    %c0_71 = arith.constant 0 : index
    %c0_72 = arith.constant 0 : index
    %c0_73 = arith.constant 0 : index
    %219 = vector.load %arg8[%c0_71, %c0_72, %c0_73] : memref<2x128x128xf32, #tpu.memory_space<vmem>>, vector<1x128x128xf32>
    %220 = vector.shape_cast %219 : vector<1x128x128xf32> to vector<128x128xf32>
    %cst_74 = arith.constant dense<0.000000e+00> : vector<48x128xf32>
    %221 = tpu.matmul %218, %220, %cst_74 {dimension_numbers = #tpu.dot_dimension_numbers<[1], [0], [0], [1], [0, 0, 1, 1], [], []>} : vector<48x128xf32>, vector<128x128xf32>, vector<48x128xf32> -> vector<48x128xf32>
    %222 = arith.addf %150, %221 : vector<48x128xf32>
    %223 = vector.broadcast %29 : vector<1x128xf32> to vector<48x128xf32>
    %224 = arith.addf %222, %223 : vector<48x128xf32>
    %c1 = arith.constant 1 : index
    %c0_75 = arith.constant 0 : index
    %c0_76 = arith.constant 0 : index
    %225 = vector.load %arg9[%c1, %c0_75, %c0_76] : memref<2x8x128xf32, #tpu.memory_space<vmem>>, vector<1x8x128xf32>
    %226 = vector.shape_cast %225 : vector<1x8x128xf32> to vector<8x128xf32>
    %227 = vector.extract_strided_slice %226 {offsets = [0, 0], sizes = [1, 128], strides = [1, 1]} : vector<8x128xf32> to vector<1x128xf32>
    %228 = vector.extract_strided_slice %226 {offsets = [1, 0], sizes = [1, 128], strides = [1, 1]} : vector<8x128xf32> to vector<1x128xf32>
    %229 = vector.extract_strided_slice %226 {offsets = [2, 0], sizes = [1, 128], strides = [1, 1]} : vector<8x128xf32> to vector<1x128xf32>
    %230 = vector.extract_strided_slice %226 {offsets = [3, 0], sizes = [1, 128], strides = [1, 1]} : vector<8x128xf32> to vector<1x128xf32>
    %231 = vector.extract_strided_slice %226 {offsets = [4, 0], sizes = [1, 128], strides = [1, 1]} : vector<8x128xf32> to vector<1x128xf32>
    %232 = vector.extract_strided_slice %226 {offsets = [5, 0], sizes = [1, 128], strides = [1, 1]} : vector<8x128xf32> to vector<1x128xf32>
    %233 = vector.extract_strided_slice %226 {offsets = [6, 0], sizes = [1, 128], strides = [1, 1]} : vector<8x128xf32> to vector<1x128xf32>
    %cst_77 = arith.constant dense<0.000000e+00> : vector<48xf32>
    %234 = vector.multi_reduction <add>, %224, %cst_77 [1] : vector<48x128xf32> to vector<48xf32>
    %235 = vector.shape_cast %234 : vector<48xf32> to vector<48x1xf32>
    %cst_78 = arith.constant 3.125000e-02 : f32
    %236 = vector.broadcast %cst_78 : f32 to vector<48x1xf32>
    %237 = arith.mulf %235, %236 : vector<48x1xf32>
    %238 = vector.broadcast %237 : vector<48x1xf32> to vector<48x128xf32>
    %239 = arith.subf %224, %238 : vector<48x128xf32>
    %240 = vector.broadcast %4 : vector<1x128xf32> to vector<48x128xf32>
    %241 = arith.mulf %239, %240 : vector<48x128xf32>
    %242 = arith.mulf %241, %241 : vector<48x128xf32>
    %cst_79 = arith.constant dense<0.000000e+00> : vector<48xf32>
    %243 = vector.multi_reduction <add>, %242, %cst_79 [1] : vector<48x128xf32> to vector<48xf32>
    %244 = vector.shape_cast %243 : vector<48xf32> to vector<48x1xf32>
    %cst_80 = arith.constant 3.125000e-02 : f32
    %245 = vector.broadcast %cst_80 : f32 to vector<48x1xf32>
    %246 = arith.mulf %244, %245 : vector<48x1xf32>
    %cst_81 = arith.constant 9.99999996E-13 : f32
    %247 = vector.broadcast %cst_81 : f32 to vector<48x1xf32>
    %248 = arith.addf %246, %247 : vector<48x1xf32>
    %249 = math.rsqrt %248 : vector<48x1xf32>
    %250 = vector.broadcast %249 : vector<48x1xf32> to vector<48x128xf32>
    %251 = arith.mulf %241, %250 : vector<48x128xf32>
    %252 = vector.broadcast %227 : vector<1x128xf32> to vector<48x128xf32>
    %253 = arith.mulf %251, %252 : vector<48x128xf32>
    %254 = vector.broadcast %228 : vector<1x128xf32> to vector<48x128xf32>
    %255 = arith.addf %253, %254 : vector<48x128xf32>
    %c1_82 = arith.constant 1 : index
    %c0_83 = arith.constant 0 : index
    %c0_84 = arith.constant 0 : index
    %256 = vector.load %arg4[%c1_82, %c0_83, %c0_84] : memref<2x128x384xf32, #tpu.memory_space<vmem>>, vector<1x128x384xf32>
    %257 = vector.shape_cast %256 : vector<1x128x384xf32> to vector<128x384xf32>
    %cst_85 = arith.constant dense<0.000000e+00> : vector<48x384xf32>
    %258 = tpu.matmul %255, %257, %cst_85 {dimension_numbers = #tpu.dot_dimension_numbers<[1], [0], [0], [1], [0, 0, 1, 1], [], []>} : vector<48x128xf32>, vector<128x384xf32>, vector<48x384xf32> -> vector<48x384xf32>
    %c1_86 = arith.constant 1 : index
    %c0_87 = arith.constant 0 : index
    %c0_88 = arith.constant 0 : index
    %259 = vector.load %arg5[%c1_86, %c0_87, %c0_88] : memref<2x1x384xf32, #tpu.memory_space<vmem>>, vector<1x1x384xf32>
    %260 = vector.shape_cast %259 : vector<1x1x384xf32> to vector<1x384xf32>
    %261 = vector.broadcast %260 : vector<1x384xf32> to vector<48x384xf32>
    %262 = arith.addf %258, %261 : vector<48x384xf32>
    %263 = vector.extract_strided_slice %262 {offsets = [0, 0], sizes = [48, 128], strides = [1, 1]} : vector<48x384xf32> to vector<48x128xf32>
    %264 = vector.extract_strided_slice %262 {offsets = [0, 128], sizes = [48, 128], strides = [1, 1]} : vector<48x384xf32> to vector<48x128xf32>
    %265 = vector.extract_strided_slice %262 {offsets = [0, 256], sizes = [48, 128], strides = [1, 1]} : vector<48x384xf32> to vector<48x128xf32>
    %266 = vector.extract_strided_slice %263 {offsets = [0, 0], sizes = [24, 32], strides = [1, 1]} : vector<48x128xf32> to vector<24x32xf32>
    %267 = vector.extract_strided_slice %264 {offsets = [0, 0], sizes = [24, 32], strides = [1, 1]} : vector<48x128xf32> to vector<24x32xf32>
    %cst_89 = arith.constant dense<0.000000e+00> : vector<24x24xf32>
    %268 = tpu.matmul %266, %267, %cst_89 {dimension_numbers = #tpu.dot_dimension_numbers<[1], [1], [0], [0], [0, 0, 1, 0], [], []>} : vector<24x32xf32>, vector<24x32xf32>, vector<24x24xf32> -> vector<24x24xf32>
    %269 = vector.extract_strided_slice %263 {offsets = [0, 32], sizes = [24, 32], strides = [1, 1]} : vector<48x128xf32> to vector<24x32xf32>
    %270 = vector.extract_strided_slice %264 {offsets = [0, 32], sizes = [24, 32], strides = [1, 1]} : vector<48x128xf32> to vector<24x32xf32>
    %cst_90 = arith.constant dense<0.000000e+00> : vector<24x24xf32>
    %271 = tpu.matmul %269, %270, %cst_90 {dimension_numbers = #tpu.dot_dimension_numbers<[1], [1], [0], [0], [0, 0, 1, 0], [], []>} : vector<24x32xf32>, vector<24x32xf32>, vector<24x24xf32> -> vector<24x24xf32>
    %272 = vector.extract_strided_slice %263 {offsets = [0, 64], sizes = [24, 32], strides = [1, 1]} : vector<48x128xf32> to vector<24x32xf32>
    %273 = vector.extract_strided_slice %264 {offsets = [0, 64], sizes = [24, 32], strides = [1, 1]} : vector<48x128xf32> to vector<24x32xf32>
    %cst_91 = arith.constant dense<0.000000e+00> : vector<24x24xf32>
    %274 = tpu.matmul %272, %273, %cst_91 {dimension_numbers = #tpu.dot_dimension_numbers<[1], [1], [0], [0], [0, 0, 1, 0], [], []>} : vector<24x32xf32>, vector<24x32xf32>, vector<24x24xf32> -> vector<24x24xf32>
    %275 = vector.extract_strided_slice %263 {offsets = [0, 96], sizes = [24, 32], strides = [1, 1]} : vector<48x128xf32> to vector<24x32xf32>
    %276 = vector.extract_strided_slice %264 {offsets = [0, 96], sizes = [24, 32], strides = [1, 1]} : vector<48x128xf32> to vector<24x32xf32>
    %cst_92 = arith.constant dense<0.000000e+00> : vector<24x24xf32>
    %277 = tpu.matmul %275, %276, %cst_92 {dimension_numbers = #tpu.dot_dimension_numbers<[1], [1], [0], [0], [0, 0, 1, 0], [], []>} : vector<24x32xf32>, vector<24x32xf32>, vector<24x24xf32> -> vector<24x24xf32>
    %278 = vector.extract_strided_slice %263 {offsets = [24, 0], sizes = [24, 32], strides = [1, 1]} : vector<48x128xf32> to vector<24x32xf32>
    %279 = vector.extract_strided_slice %264 {offsets = [24, 0], sizes = [24, 32], strides = [1, 1]} : vector<48x128xf32> to vector<24x32xf32>
    %cst_93 = arith.constant dense<0.000000e+00> : vector<24x24xf32>
    %280 = tpu.matmul %278, %279, %cst_93 {dimension_numbers = #tpu.dot_dimension_numbers<[1], [1], [0], [0], [0, 0, 1, 0], [], []>} : vector<24x32xf32>, vector<24x32xf32>, vector<24x24xf32> -> vector<24x24xf32>
    %281 = vector.extract_strided_slice %263 {offsets = [24, 32], sizes = [24, 32], strides = [1, 1]} : vector<48x128xf32> to vector<24x32xf32>
    %282 = vector.extract_strided_slice %264 {offsets = [24, 32], sizes = [24, 32], strides = [1, 1]} : vector<48x128xf32> to vector<24x32xf32>
    %cst_94 = arith.constant dense<0.000000e+00> : vector<24x24xf32>
    %283 = tpu.matmul %281, %282, %cst_94 {dimension_numbers = #tpu.dot_dimension_numbers<[1], [1], [0], [0], [0, 0, 1, 0], [], []>} : vector<24x32xf32>, vector<24x32xf32>, vector<24x24xf32> -> vector<24x24xf32>
    %284 = vector.extract_strided_slice %263 {offsets = [24, 64], sizes = [24, 32], strides = [1, 1]} : vector<48x128xf32> to vector<24x32xf32>
    %285 = vector.extract_strided_slice %264 {offsets = [24, 64], sizes = [24, 32], strides = [1, 1]} : vector<48x128xf32> to vector<24x32xf32>
    %cst_95 = arith.constant dense<0.000000e+00> : vector<24x24xf32>
    %286 = tpu.matmul %284, %285, %cst_95 {dimension_numbers = #tpu.dot_dimension_numbers<[1], [1], [0], [0], [0, 0, 1, 0], [], []>} : vector<24x32xf32>, vector<24x32xf32>, vector<24x24xf32> -> vector<24x24xf32>
    %287 = vector.extract_strided_slice %263 {offsets = [24, 96], sizes = [24, 32], strides = [1, 1]} : vector<48x128xf32> to vector<24x32xf32>
    %288 = vector.extract_strided_slice %264 {offsets = [24, 96], sizes = [24, 32], strides = [1, 1]} : vector<48x128xf32> to vector<24x32xf32>
    %cst_96 = arith.constant dense<0.000000e+00> : vector<24x24xf32>
    %289 = tpu.matmul %287, %288, %cst_96 {dimension_numbers = #tpu.dot_dimension_numbers<[1], [1], [0], [0], [0, 0, 1, 0], [], []>} : vector<24x32xf32>, vector<24x32xf32>, vector<24x24xf32> -> vector<24x24xf32>
    %290 = vector.shape_cast %268 : vector<24x24xf32> to vector<1x24x24xf32>
    %291 = vector.shape_cast %271 : vector<24x24xf32> to vector<1x24x24xf32>
    %292 = vector.shape_cast %274 : vector<24x24xf32> to vector<1x24x24xf32>
    %293 = vector.shape_cast %277 : vector<24x24xf32> to vector<1x24x24xf32>
    %294 = vector.shape_cast %280 : vector<24x24xf32> to vector<1x24x24xf32>
    %295 = vector.shape_cast %283 : vector<24x24xf32> to vector<1x24x24xf32>
    %296 = vector.shape_cast %286 : vector<24x24xf32> to vector<1x24x24xf32>
    %297 = vector.shape_cast %289 : vector<24x24xf32> to vector<1x24x24xf32>
    %298 = tpu.concatenate %290, %291, %292, %293, %294, %295, %296, %297 in 0 : vector<1x24x24xf32>, vector<1x24x24xf32>, vector<1x24x24xf32>, vector<1x24x24xf32>, vector<1x24x24xf32>, vector<1x24x24xf32>, vector<1x24x24xf32>, vector<1x24x24xf32> -> vector<8x24x24xf32>
    %cst_97 = arith.constant 0.353553385 : f32
    %299 = vector.broadcast %cst_97 : f32 to vector<8x24x24xf32>
    %300 = arith.mulf %298, %299 : vector<8x24x24xf32>
    %301 = vector.shape_cast %10 : vector<1x24xf32> to vector<1x1x24xf32>
    %302 = vector.broadcast %301 : vector<1x1x24xf32> to vector<8x24x24xf32>
    %303 = arith.addf %300, %302 : vector<8x24x24xf32>
    %cst_98 = arith.constant dense<0xFF800000> : vector<8x24xf32>
    %304 = vector.multi_reduction <maximumf>, %303, %cst_98 [2] : vector<8x24x24xf32> to vector<8x24xf32>
    %305 = vector.shape_cast %304 : vector<8x24xf32> to vector<8x24x1xf32>
    %306 = vector.broadcast %305 : vector<8x24x1xf32> to vector<8x24x24xf32>
    %307 = arith.subf %303, %306 : vector<8x24x24xf32>
    %308 = math.exp %307 : vector<8x24x24xf32>
    %cst_99 = arith.constant dense<0.000000e+00> : vector<8x24xf32>
    %309 = vector.multi_reduction <add>, %308, %cst_99 [2] : vector<8x24x24xf32> to vector<8x24xf32>
    %310 = vector.shape_cast %309 : vector<8x24xf32> to vector<8x24x1xf32>
    %311 = tpu.reciprocal %310 {approx = true} : vector<8x24x1xf32> -> vector<8x24x1xf32>
    %312 = vector.broadcast %311 : vector<8x24x1xf32> to vector<8x24x24xf32>
    %313 = arith.mulf %308, %312 : vector<8x24x24xf32>
    %314 = vector.extract_strided_slice %313 {offsets = [0, 0, 0], sizes = [1, 24, 24], strides = [1, 1, 1]} : vector<8x24x24xf32> to vector<1x24x24xf32>
    %315 = vector.shape_cast %314 : vector<1x24x24xf32> to vector<24x24xf32>
    %316 = vector.extract_strided_slice %265 {offsets = [0, 0], sizes = [24, 32], strides = [1, 1]} : vector<48x128xf32> to vector<24x32xf32>
    %cst_100 = arith.constant dense<0.000000e+00> : vector<24x32xf32>
    %317 = tpu.matmul %315, %316, %cst_100 {dimension_numbers = #tpu.dot_dimension_numbers<[1], [0], [0], [1], [0, 0, 1, 1], [], []>} : vector<24x24xf32>, vector<24x32xf32>, vector<24x32xf32> -> vector<24x32xf32>
    %318 = vector.extract_strided_slice %313 {offsets = [1, 0, 0], sizes = [1, 24, 24], strides = [1, 1, 1]} : vector<8x24x24xf32> to vector<1x24x24xf32>
    %319 = vector.shape_cast %318 : vector<1x24x24xf32> to vector<24x24xf32>
    %320 = vector.extract_strided_slice %265 {offsets = [0, 32], sizes = [24, 32], strides = [1, 1]} : vector<48x128xf32> to vector<24x32xf32>
    %cst_101 = arith.constant dense<0.000000e+00> : vector<24x32xf32>
    %321 = tpu.matmul %319, %320, %cst_101 {dimension_numbers = #tpu.dot_dimension_numbers<[1], [0], [0], [1], [0, 0, 1, 1], [], []>} : vector<24x24xf32>, vector<24x32xf32>, vector<24x32xf32> -> vector<24x32xf32>
    %322 = vector.extract_strided_slice %313 {offsets = [2, 0, 0], sizes = [1, 24, 24], strides = [1, 1, 1]} : vector<8x24x24xf32> to vector<1x24x24xf32>
    %323 = vector.shape_cast %322 : vector<1x24x24xf32> to vector<24x24xf32>
    %324 = vector.extract_strided_slice %265 {offsets = [0, 64], sizes = [24, 32], strides = [1, 1]} : vector<48x128xf32> to vector<24x32xf32>
    %cst_102 = arith.constant dense<0.000000e+00> : vector<24x32xf32>
    %325 = tpu.matmul %323, %324, %cst_102 {dimension_numbers = #tpu.dot_dimension_numbers<[1], [0], [0], [1], [0, 0, 1, 1], [], []>} : vector<24x24xf32>, vector<24x32xf32>, vector<24x32xf32> -> vector<24x32xf32>
    %326 = vector.extract_strided_slice %313 {offsets = [3, 0, 0], sizes = [1, 24, 24], strides = [1, 1, 1]} : vector<8x24x24xf32> to vector<1x24x24xf32>
    %327 = vector.shape_cast %326 : vector<1x24x24xf32> to vector<24x24xf32>
    %328 = vector.extract_strided_slice %265 {offsets = [0, 96], sizes = [24, 32], strides = [1, 1]} : vector<48x128xf32> to vector<24x32xf32>
    %cst_103 = arith.constant dense<0.000000e+00> : vector<24x32xf32>
    %329 = tpu.matmul %327, %328, %cst_103 {dimension_numbers = #tpu.dot_dimension_numbers<[1], [0], [0], [1], [0, 0, 1, 1], [], []>} : vector<24x24xf32>, vector<24x32xf32>, vector<24x32xf32> -> vector<24x32xf32>
    %330 = tpu.concatenate %317, %321, %325, %329 in 1 : vector<24x32xf32>, vector<24x32xf32>, vector<24x32xf32>, vector<24x32xf32> -> vector<24x128xf32>
    %331 = vector.extract_strided_slice %313 {offsets = [4, 0, 0], sizes = [1, 24, 24], strides = [1, 1, 1]} : vector<8x24x24xf32> to vector<1x24x24xf32>
    %332 = vector.shape_cast %331 : vector<1x24x24xf32> to vector<24x24xf32>
    %333 = vector.extract_strided_slice %265 {offsets = [24, 0], sizes = [24, 32], strides = [1, 1]} : vector<48x128xf32> to vector<24x32xf32>
    %cst_104 = arith.constant dense<0.000000e+00> : vector<24x32xf32>
    %334 = tpu.matmul %332, %333, %cst_104 {dimension_numbers = #tpu.dot_dimension_numbers<[1], [0], [0], [1], [0, 0, 1, 1], [], []>} : vector<24x24xf32>, vector<24x32xf32>, vector<24x32xf32> -> vector<24x32xf32>
    %335 = vector.extract_strided_slice %313 {offsets = [5, 0, 0], sizes = [1, 24, 24], strides = [1, 1, 1]} : vector<8x24x24xf32> to vector<1x24x24xf32>
    %336 = vector.shape_cast %335 : vector<1x24x24xf32> to vector<24x24xf32>
    %337 = vector.extract_strided_slice %265 {offsets = [24, 32], sizes = [24, 32], strides = [1, 1]} : vector<48x128xf32> to vector<24x32xf32>
    %cst_105 = arith.constant dense<0.000000e+00> : vector<24x32xf32>
    %338 = tpu.matmul %336, %337, %cst_105 {dimension_numbers = #tpu.dot_dimension_numbers<[1], [0], [0], [1], [0, 0, 1, 1], [], []>} : vector<24x24xf32>, vector<24x32xf32>, vector<24x32xf32> -> vector<24x32xf32>
    %339 = vector.extract_strided_slice %313 {offsets = [6, 0, 0], sizes = [1, 24, 24], strides = [1, 1, 1]} : vector<8x24x24xf32> to vector<1x24x24xf32>
    %340 = vector.shape_cast %339 : vector<1x24x24xf32> to vector<24x24xf32>
    %341 = vector.extract_strided_slice %265 {offsets = [24, 64], sizes = [24, 32], strides = [1, 1]} : vector<48x128xf32> to vector<24x32xf32>
    %cst_106 = arith.constant dense<0.000000e+00> : vector<24x32xf32>
    %342 = tpu.matmul %340, %341, %cst_106 {dimension_numbers = #tpu.dot_dimension_numbers<[1], [0], [0], [1], [0, 0, 1, 1], [], []>} : vector<24x24xf32>, vector<24x32xf32>, vector<24x32xf32> -> vector<24x32xf32>
    %343 = vector.extract_strided_slice %313 {offsets = [7, 0, 0], sizes = [1, 24, 24], strides = [1, 1, 1]} : vector<8x24x24xf32> to vector<1x24x24xf32>
    %344 = vector.shape_cast %343 : vector<1x24x24xf32> to vector<24x24xf32>
    %345 = vector.extract_strided_slice %265 {offsets = [24, 96], sizes = [24, 32], strides = [1, 1]} : vector<48x128xf32> to vector<24x32xf32>
    %cst_107 = arith.constant dense<0.000000e+00> : vector<24x32xf32>
    %346 = tpu.matmul %344, %345, %cst_107 {dimension_numbers = #tpu.dot_dimension_numbers<[1], [0], [0], [1], [0, 0, 1, 1], [], []>} : vector<24x24xf32>, vector<24x32xf32>, vector<24x32xf32> -> vector<24x32xf32>
    %347 = tpu.concatenate %334, %338, %342, %346 in 1 : vector<24x32xf32>, vector<24x32xf32>, vector<24x32xf32>, vector<24x32xf32> -> vector<24x128xf32>
    %348 = tpu.concatenate %330, %347 in 0 : vector<24x128xf32>, vector<24x128xf32> -> vector<48x128xf32>
    %c1_108 = arith.constant 1 : index
    %c0_109 = arith.constant 0 : index
    %c0_110 = arith.constant 0 : index
    %349 = vector.load %arg6[%c1_108, %c0_109, %c0_110] : memref<2x128x128xf32, #tpu.memory_space<vmem>>, vector<1x128x128xf32>
    %350 = vector.shape_cast %349 : vector<1x128x128xf32> to vector<128x128xf32>
    %cst_111 = arith.constant dense<0.000000e+00> : vector<48x128xf32>
    %351 = tpu.matmul %348, %350, %cst_111 {dimension_numbers = #tpu.dot_dimension_numbers<[1], [0], [0], [1], [0, 0, 1, 1], [], []>} : vector<48x128xf32>, vector<128x128xf32>, vector<48x128xf32> -> vector<48x128xf32>
    %352 = arith.addf %224, %351 : vector<48x128xf32>
    %353 = vector.broadcast %231 : vector<1x128xf32> to vector<48x128xf32>
    %354 = arith.addf %352, %353 : vector<48x128xf32>
    %cst_112 = arith.constant dense<0.000000e+00> : vector<48xf32>
    %355 = vector.multi_reduction <add>, %354, %cst_112 [1] : vector<48x128xf32> to vector<48xf32>
    %356 = vector.shape_cast %355 : vector<48xf32> to vector<48x1xf32>
    %cst_113 = arith.constant 3.125000e-02 : f32
    %357 = vector.broadcast %cst_113 : f32 to vector<48x1xf32>
    %358 = arith.mulf %356, %357 : vector<48x1xf32>
    %359 = vector.broadcast %358 : vector<48x1xf32> to vector<48x128xf32>
    %360 = arith.subf %354, %359 : vector<48x128xf32>
    %361 = vector.broadcast %4 : vector<1x128xf32> to vector<48x128xf32>
    %362 = arith.mulf %360, %361 : vector<48x128xf32>
    %363 = arith.mulf %362, %362 : vector<48x128xf32>
    %cst_114 = arith.constant dense<0.000000e+00> : vector<48xf32>
    %364 = vector.multi_reduction <add>, %363, %cst_114 [1] : vector<48x128xf32> to vector<48xf32>
    %365 = vector.shape_cast %364 : vector<48xf32> to vector<48x1xf32>
    %cst_115 = arith.constant 3.125000e-02 : f32
    %366 = vector.broadcast %cst_115 : f32 to vector<48x1xf32>
    %367 = arith.mulf %365, %366 : vector<48x1xf32>
    %cst_116 = arith.constant 9.99999996E-13 : f32
    %368 = vector.broadcast %cst_116 : f32 to vector<48x1xf32>
    %369 = arith.addf %367, %368 : vector<48x1xf32>
    %370 = math.rsqrt %369 : vector<48x1xf32>
    %371 = vector.broadcast %370 : vector<48x1xf32> to vector<48x128xf32>
    %372 = arith.mulf %362, %371 : vector<48x128xf32>
    %373 = vector.broadcast %229 : vector<1x128xf32> to vector<48x128xf32>
    %374 = arith.mulf %372, %373 : vector<48x128xf32>
    %375 = vector.broadcast %230 : vector<1x128xf32> to vector<48x128xf32>
    %376 = arith.addf %374, %375 : vector<48x128xf32>
    %c1_117 = arith.constant 1 : index
    %c0_118 = arith.constant 0 : index
    %c0_119 = arith.constant 0 : index
    %377 = vector.load %arg7[%c1_117, %c0_118, %c0_119] : memref<2x128x128xf32, #tpu.memory_space<vmem>>, vector<1x128x128xf32>
    %378 = vector.shape_cast %377 : vector<1x128x128xf32> to vector<128x128xf32>
    %cst_120 = arith.constant dense<0.000000e+00> : vector<48x128xf32>
    %379 = tpu.matmul %376, %378, %cst_120 {dimension_numbers = #tpu.dot_dimension_numbers<[1], [0], [0], [1], [0, 0, 1, 1], [], []>} : vector<48x128xf32>, vector<128x128xf32>, vector<48x128xf32> -> vector<48x128xf32>
    %380 = vector.broadcast %232 : vector<1x128xf32> to vector<48x128xf32>
    %381 = arith.addf %379, %380 : vector<48x128xf32>
    %cst_121 = arith.constant 5.000000e-01 : f32
    %382 = vector.broadcast %cst_121 : f32 to vector<48x128xf32>
    %383 = arith.mulf %382, %381 : vector<48x128xf32>
    %cst_122 = arith.constant 0.707106769 : f32
    %384 = vector.broadcast %cst_122 : f32 to vector<48x128xf32>
    %385 = arith.mulf %381, %384 : vector<48x128xf32>
    %cst_123 = arith.constant 0.000000e+00 : f32
    %386 = vector.broadcast %cst_123 : f32 to vector<48x128xf32>
    %387 = arith.cmpf oge, %385, %386 : vector<48x128xf32>
    %cst_124 = arith.constant 1.000000e+00 : f32
    %cst_125 = arith.constant -1.000000e+00 : f32
    %388 = vector.broadcast %cst_124 : f32 to vector<48x128xf32>
    %389 = vector.broadcast %cst_125 : f32 to vector<48x128xf32>
    %390 = arith.select %387, %388, %389 : vector<48x128xi1>, vector<48x128xf32>
    %391 = math.absf %385 : vector<48x128xf32>
    %cst_126 = arith.constant 0.327591091 : f32
    %392 = vector.broadcast %cst_126 : f32 to vector<48x128xf32>
    %393 = arith.mulf %392, %391 : vector<48x128xf32>
    %cst_127 = arith.constant 1.000000e+00 : f32
    %394 = vector.broadcast %cst_127 : f32 to vector<48x128xf32>
    %395 = arith.addf %394, %393 : vector<48x128xf32>
    %cst_128 = arith.constant 1.000000e+00 : f32
    %396 = vector.broadcast %cst_128 : f32 to vector<48x128xf32>
    %397 = arith.divf %396, %395 : vector<48x128xf32>
    %cst_129 = arith.constant 1.06140542 : f32
    %398 = vector.broadcast %cst_129 : f32 to vector<48x128xf32>
    %399 = arith.mulf %398, %397 : vector<48x128xf32>
    %cst_130 = arith.constant -1.45315206 : f32
    %400 = vector.broadcast %cst_130 : f32 to vector<48x128xf32>
    %401 = arith.addf %399, %400 : vector<48x128xf32>
    %402 = arith.mulf %401, %397 : vector<48x128xf32>
    %cst_131 = arith.constant 1.42141378 : f32
    %403 = vector.broadcast %cst_131 : f32 to vector<48x128xf32>
    %404 = arith.addf %402, %403 : vector<48x128xf32>
    %405 = arith.mulf %404, %397 : vector<48x128xf32>
    %cst_132 = arith.constant -0.284496725 : f32
    %406 = vector.broadcast %cst_132 : f32 to vector<48x128xf32>
    %407 = arith.addf %405, %406 : vector<48x128xf32>
    %408 = arith.mulf %407, %397 : vector<48x128xf32>
    %cst_133 = arith.constant 0.254829586 : f32
    %409 = vector.broadcast %cst_133 : f32 to vector<48x128xf32>
    %410 = arith.addf %408, %409 : vector<48x128xf32>
    %411 = arith.mulf %410, %397 : vector<48x128xf32>
    %cst_134 = arith.constant 0.000000e+00 : f32
    %412 = vector.broadcast %cst_134 : f32 to vector<48x128xf32>
    %413 = arith.subf %412, %391 : vector<48x128xf32>
    %414 = arith.mulf %413, %391 : vector<48x128xf32>
    %415 = math.exp %414 : vector<48x128xf32>
    %416 = arith.mulf %411, %415 : vector<48x128xf32>
    %cst_135 = arith.constant 1.000000e+00 : f32
    %417 = vector.broadcast %cst_135 : f32 to vector<48x128xf32>
    %418 = arith.subf %417, %416 : vector<48x128xf32>
    %419 = arith.mulf %390, %418 : vector<48x128xf32>
    %cst_136 = arith.constant 1.000000e+00 : f32
    %420 = vector.broadcast %cst_136 : f32 to vector<48x128xf32>
    %421 = arith.addf %420, %419 : vector<48x128xf32>
    %422 = arith.mulf %383, %421 : vector<48x128xf32>
    %c1_137 = arith.constant 1 : index
    %c0_138 = arith.constant 0 : index
    %c0_139 = arith.constant 0 : index
    %423 = vector.load %arg8[%c1_137, %c0_138, %c0_139] : memref<2x128x128xf32, #tpu.memory_space<vmem>>, vector<1x128x128xf32>
    %424 = vector.shape_cast %423 : vector<1x128x128xf32> to vector<128x128xf32>
    %cst_140 = arith.constant dense<0.000000e+00> : vector<48x128xf32>
    %425 = tpu.matmul %422, %424, %cst_140 {dimension_numbers = #tpu.dot_dimension_numbers<[1], [0], [0], [1], [0, 0, 1, 1], [], []>} : vector<48x128xf32>, vector<128x128xf32>, vector<48x128xf32> -> vector<48x128xf32>
    %426 = arith.addf %354, %425 : vector<48x128xf32>
    %427 = vector.broadcast %233 : vector<1x128xf32> to vector<48x128xf32>
    %428 = arith.addf %426, %427 : vector<48x128xf32>
    %c0_141 = arith.constant 0 : index
    %c0_142 = arith.constant 0 : index
    %429 = vector.load %arg10[%c0_141, %c0_142] : memref<8x128xf32, #tpu.memory_space<vmem>>, vector<1x128xf32>
    %c1_143 = arith.constant 1 : index
    %c0_144 = arith.constant 0 : index
    %430 = vector.load %arg10[%c1_143, %c0_144] : memref<8x128xf32, #tpu.memory_space<vmem>>, vector<1x128xf32>
    %cst_145 = arith.constant dense<0.000000e+00> : vector<48xf32>
    %431 = vector.multi_reduction <add>, %428, %cst_145 [1] : vector<48x128xf32> to vector<48xf32>
    %432 = vector.shape_cast %431 : vector<48xf32> to vector<48x1xf32>
    %cst_146 = arith.constant 3.125000e-02 : f32
    %433 = vector.broadcast %cst_146 : f32 to vector<48x1xf32>
    %434 = arith.mulf %432, %433 : vector<48x1xf32>
    %435 = vector.broadcast %434 : vector<48x1xf32> to vector<48x128xf32>
    %436 = arith.subf %428, %435 : vector<48x128xf32>
    %437 = vector.broadcast %4 : vector<1x128xf32> to vector<48x128xf32>
    %438 = arith.mulf %436, %437 : vector<48x128xf32>
    %439 = arith.mulf %438, %438 : vector<48x128xf32>
    %cst_147 = arith.constant dense<0.000000e+00> : vector<48xf32>
    %440 = vector.multi_reduction <add>, %439, %cst_147 [1] : vector<48x128xf32> to vector<48xf32>
    %441 = vector.shape_cast %440 : vector<48xf32> to vector<48x1xf32>
    %cst_148 = arith.constant 3.125000e-02 : f32
    %442 = vector.broadcast %cst_148 : f32 to vector<48x1xf32>
    %443 = arith.mulf %441, %442 : vector<48x1xf32>
    %cst_149 = arith.constant 9.99999996E-13 : f32
    %444 = vector.broadcast %cst_149 : f32 to vector<48x1xf32>
    %445 = arith.addf %443, %444 : vector<48x1xf32>
    %446 = math.rsqrt %445 : vector<48x1xf32>
    %447 = vector.broadcast %446 : vector<48x1xf32> to vector<48x128xf32>
    %448 = arith.mulf %438, %447 : vector<48x128xf32>
    %449 = vector.broadcast %429 : vector<1x128xf32> to vector<48x128xf32>
    %450 = arith.mulf %448, %449 : vector<48x128xf32>
    %451 = vector.broadcast %430 : vector<1x128xf32> to vector<48x128xf32>
    %452 = arith.addf %450, %451 : vector<48x128xf32>
    %453 = vector.shape_cast %452 : vector<48x128xf32> to vector<2x24x128xf32>
    %c0_150 = arith.constant 0 : index
    %c0_151 = arith.constant 0 : index
    %c0_152 = arith.constant 0 : index
    %454 = vector.load %arg11[%c0_150, %c0_151, %c0_152] : memref<2x24x128xf32, #tpu.memory_space<vmem>>, vector<2x24x128xf32>
    tpu.vector_store %arg11[%c0_150, %c0_151, %c0_152], %453 {strides = array<i32>} : memref<2x24x128xf32, #tpu.memory_space<vmem>>, vector<2x24x128xf32>,
    return
  }
  func.func @transform_0(%arg0: i32) -> (i32, i32, i32) {
    %c0_i32 = arith.constant 0 : i32
    %c0_i32_0 = arith.constant 0 : i32
    %c0_i32_1 = arith.constant 0 : i32
    return %arg0, %c0_i32, %c0_i32_0 : i32, i32, i32
  }
  func.func @transform_1(%arg0: i32) -> (i32, i32) {
    %c0_i32 = arith.constant 0 : i32
    %c0_i32_0 = arith.constant 0 : i32
    %c0_i32_1 = arith.constant 0 : i32
    return %c0_i32, %c0_i32_0 : i32, i32
  }
  func.func @transform_2(%arg0: i32) -> (i32, i32) {
    %c0_i32 = arith.constant 0 : i32
    %c0_i32_0 = arith.constant 0 : i32
    %c0_i32_1 = arith.constant 0 : i32
    return %c0_i32, %c0_i32_0 : i32, i32
  }
  func.func @transform_3(%arg0: i32) -> (i32, i32, i32) {
    %c0_i32 = arith.constant 0 : i32
    %c0_i32_0 = arith.constant 0 : i32
    %c0_i32_1 = arith.constant 0 : i32
    %c0_i32_2 = arith.constant 0 : i32
    return %c0_i32, %c0_i32_0, %c0_i32_1 : i32, i32, i32
  }
  func.func @transform_4(%arg0: i32) -> (i32, i32, i32) {
    %c0_i32 = arith.constant 0 : i32
    %c0_i32_0 = arith.constant 0 : i32
    %c0_i32_1 = arith.constant 0 : i32
    %c0_i32_2 = arith.constant 0 : i32
    return %c0_i32, %c0_i32_0, %c0_i32_1 : i32, i32, i32
  }
  func.func @transform_5(%arg0: i32) -> (i32, i32, i32) {
    %c0_i32 = arith.constant 0 : i32
    %c0_i32_0 = arith.constant 0 : i32
    %c0_i32_1 = arith.constant 0 : i32
    %c0_i32_2 = arith.constant 0 : i32
    return %c0_i32, %c0_i32_0, %c0_i32_1 : i32, i32, i32
  }
  func.func @transform_6(%arg0: i32) -> (i32, i32, i32) {
    %c0_i32 = arith.constant 0 : i32
    %c0_i32_0 = arith.constant 0 : i32
    %c0_i32_1 = arith.constant 0 : i32
    %c0_i32_2 = arith.constant 0 : i32
    return %c0_i32, %c0_i32_0, %c0_i32_1 : i32, i32, i32
  }
  func.func @transform_7(%arg0: i32) -> (i32, i32, i32) {
    %c0_i32 = arith.constant 0 : i32
    %c0_i32_0 = arith.constant 0 : i32
    %c0_i32_1 = arith.constant 0 : i32
    %c0_i32_2 = arith.constant 0 : i32
    return %c0_i32, %c0_i32_0, %c0_i32_1 : i32, i32, i32
  }
  func.func @transform_8(%arg0: i32) -> (i32, i32, i32) {
    %c0_i32 = arith.constant 0 : i32
    %c0_i32_0 = arith.constant 0 : i32
    %c0_i32_1 = arith.constant 0 : i32
    %c0_i32_2 = arith.constant 0 : i32
    return %c0_i32, %c0_i32_0, %c0_i32_1 : i32, i32, i32
  }
  func.func @transform_9(%arg0: i32) -> (i32, i32) {
    %c0_i32 = arith.constant 0 : i32
    %c0_i32_0 = arith.constant 0 : i32
    %c0_i32_1 = arith.constant 0 : i32
    return %c0_i32, %c0_i32_0 : i32, i32
  }
  func.func @transform_10(%arg0: i32) -> (i32, i32, i32) {
    %c0_i32 = arith.constant 0 : i32
    %c0_i32_0 = arith.constant 0 : i32
    %c0_i32_1 = arith.constant 0 : i32
    return %arg0, %c0_i32, %c0_i32_0 : i32, i32, i32
  }
}

</mosaic_0001>

<bundles_post_ra>
// kernel: _encode_batch.1
= control target key start
LH: loop header
LB: loop body
LE: loop exit
PB: predicated region body
PF: predicated region fallthrough
CT: control target
= control target key end

     0   :  { %vm8703_vm1 = vmmov 0   ;;  %vm544_vm2 = vcmask 261120   ;;  %s8704_s11 = smov 64   ;;  %s8705_s12 = smov 96   ;;  %vm1413_vm5 = vcmask 195584   ;;  %vm2103_vm6 = vcmask 523264   ;;  %s11341_s1 = inlined_call_operand.vmem [shape: f32[256,128], index: 1, kind: input, shape index: {}]   ;;  %s11342_s0 = inlined_call_operand.vmem [shape: f32[2,24,256], index: 0, kind: input, shape index: {}]   ;;  %s11343_s2 = inlined_call_operand.vmem [shape: f32[24,128], index: 2, kind: input, shape index: {}]   ;;  %s11344_s3 = inlined_call_operand.vmem [shape: f32[2,128,384], index: 3, kind: input, shape index: {}]   ;;  %s11345_s8 = inlined_call_operand.vmem [shape: f32[2,8,128], index: 8, kind: input, shape index: {}]   ;;  %s11346_s4 = inlined_call_operand.vmem [shape: f32[2,1,384], index: 4, kind: input, shape index: {}]   ;;  %s11347_s5 = inlined_call_operand.vmem [shape: f32[2,128,128], index: 5, kind: input, shape index: {}]   ;;  %s11348_s6 = inlined_call_operand.vmem [shape: f32[2,128,128], index: 6, kind: input, shape index: {}]   ;;  %s11349_s7 = inlined_call_operand.vmem [shape: f32[2,128,128], index: 7, kind: input, shape index: {}]   ;;  %s11350_s9 = inlined_call_operand.vmem [shape: f32[8,128], index: 9, kind: input, shape index: {}]   ;;  %s11351_s10 = inlined_call_operand.vmem [shape: f32[2,24,128], index: 10, kind: output, shape index: {}]  }
   0x1   :  { %v70_v0 = vld [vmem:[%s11341_s1 + $0x80] sm:$0xff]  ;;  %v71_v1 = vld [vmem:[%s11341_s1 + $0x88] sm:$0xff]  ;;  %v72_v5 = vld [vmem:[%s11341_s1 + $0x90] sm:$0xff]  ;;  %s8706_s13 = smov 32   ;;  %vm2107_vm7 = vcmask 785408  }
   0x2   :  { %v54_v2 = vld [vmem:[%s11341_s1] sm:$0xff]  ;;  %v7717_v3 = vpack.c.bf16 %v71_v1, %v70_v0  ;;  %v55_v4 = vld [vmem:[%s11341_s1 + $0x8] sm:$0xff]  ;;  %v73_v6 = vld [vmem:[%s11341_s1 + $0x98] sm:$0xff] }
   0x3   :  { %v7719_v7 = vpack.c.bf16 %v55_v4, %v54_v2  ;;  %v7721_v8 = vpack.c.bf16 %v73_v6, %v72_v5  ;;  %v56_v9 = vld [vmem:[%s11341_s1 + $0x10] sm:$0xff]  ;;  %v57_v10 = vld [vmem:[%s11341_s1 + $0x18] sm:$0xff]  ;;  %v74_v11 = vld [vmem:[%s11341_s1 + $0xa0] sm:$0xff] }
   0x4   :  { %7718 = vmatprep.subr.bf16.mxu0 %v7717_v3  ;;  %v75_v12 = vld [vmem:[%s11341_s1 + $0xa8] sm:$0xff]  ;;  %v7723_v13 = vpack.c.bf16 %v57_v10, %v56_v9  ;;  %v58_v15 = vld [vmem:[%s11341_s1 + $0x20] sm:$0xff]  ;;  %v76_v17 = vld [vmem:[%s11341_s1 + $0xb0] sm:$0xff] }
   0x5   :  { %7720 = vmatpush3.bf16.msra.mxu0 %v7719_v7  ;;  %v7725_v14 = vpack.c.bf16 %v75_v12, %v74_v11  ;;  %v59_v16 = vld [vmem:[%s11341_s1 + $0x28] sm:$0xff]  ;;  %v77_v18 = vld [vmem:[%s11341_s1 + $0xb8] sm:$0xff]  ;;  %v60_v21 = vld [vmem:[%s11341_s1 + $0x30] sm:$0xff] }
   0x6   :  { %7722 = vmatprep.subr.bf16.mxu0 %v7721_v8  ;;  %v7727_v19 = vpack.c.bf16 %v59_v16, %v58_v15  ;;  %v7729_v20 = vpack.c.bf16 %v77_v18, %v76_v17  ;;  %v61_v22 = vld [vmem:[%s11341_s1 + $0x38] sm:$0xff]  ;;  %v78_v23 = vld [vmem:[%s11341_s1 + $0xc0] sm:$0xff]  ;;  %v79_v24 = vld [vmem:[%s11341_s1 + $0xc8] sm:$0xff] }
   0x7   :  { %v43_v25 = vld [vmem:[%s11342_s0 + $0x8] sm:$0xff]  ;;  %v7731_v26 = vpack.c.bf16 %v61_v22, %v60_v21  ;;  %v7733_v27 = vpack.c.bf16 %v79_v24, %v78_v23  ;;  %v62_v28 = vld [vmem:[%s11341_s1 + $0x40] sm:$0xff]  ;;  %v80_v30 = vld [vmem:[%s11341_s1 + $0xd0] sm:$0xff]  ;;  %v11354_v22 = vmov 0.0  }
   0x8   :  { %150 = vmatprep.mubr.f32.mxu0 %v43_v25  ;;  %v63_v29 = vld [vmem:[%s11341_s1 + $0x48] sm:$0xff]  ;;  %v81_v31 = vld [vmem:[%s11341_s1 + $0xd8] sm:$0xff]  ;;  %v64_v34 = vld [vmem:[%s11341_s1 + $0x50] sm:$0xff]  ;;  %412 = vmatprep.mubr.f32.mxu1 %v11354_v22 }
   0x9   :  { %7724 = vmatpush3.bf16.msra.mxu0 %v7723_v13  ;;  %v7735_v32 = vpack.c.bf16 %v63_v29, %v62_v28  ;;  %v7737_v33 = vpack.c.bf16 %v81_v31, %v80_v30  ;;  %v65_v35 = vld [vmem:[%s11341_s1 + $0x58] sm:$0xff]  ;;  %v82_v36 = vld [vmem:[%s11341_s1 + $0xe0] sm:$0xff]  ;;  %v83_v37 = vld [vmem:[%s11341_s1 + $0xe8] sm:$0xff] }
   0xa   :  { %7726 = vmatprep.subr.bf16.mxu0 %v7725_v14  ;;  %v7739_v38 = vpack.c.bf16 %v65_v35, %v64_v34  ;;  %v7741_v39 = vpack.c.bf16 %v83_v37, %v82_v36  ;;  %v66_v40 = vld [vmem:[%s11341_s1 + $0x60] sm:$0xff]  ;;  %v67_v41 = vld [vmem:[%s11341_s1 + $0x68] sm:$0xff]  ;;  %v84_v42 = vld [vmem:[%s11341_s1 + $0xf0] sm:$0xff] }
   0xb   :  { %v85_v43 = vld [vmem:[%s11341_s1 + $0xf8] sm:$0xff]  ;;  %v7743_v44 = vpack.c.bf16 %v67_v41, %v66_v40  ;;  %v68_v46 = vld [vmem:[%s11341_s1 + $0x70] sm:$0xff]  ;;  %v42_v49 = vld [vmem:[%s11342_s0] sm:$0xff] }
   0xc   :  { %v7745_v45 = vpack.c.bf16 %v85_v43, %v84_v42  ;;  %v69_v47 = vld [vmem:[%s11341_s1 + $0x78] sm:$0xff]  ;;  %v44_v51 = vld [vmem:[%s11342_s0 + $0x10] sm:$0xff]  ;;  %v47_v52 = vld [vmem:[%s11342_s0 + $0x28] sm:$0xff] }
   0xd   :  { %7728 = vmatpush3.bf16.msra.mxu0 %v7727_v19  ;;  %v7747_v48 = vpack.c.bf16 %v69_v47, %v68_v46  ;;  %v45_v50 = vld [vmem:[%s11342_s0 + $0x18] sm:$0xff]  ;;  %v46_v53 = vld [vmem:[%s11342_s0 + $0x20] sm:$0xff]  ;;  %v48_v55 = vld [vmem:[%s11342_s0 + $0x30] sm:$0xff] }
   0xe   :  { %7730 = vmatprep.subr.bf16.mxu0 %v7729_v20  ;;  %v49_v54 = vld [vmem:[%s11342_s0 + $0x38] sm:$0xff]  ;;  %v51_v56 = vld [vmem:[%s11342_s0 + $0x48] sm:$0xff]  ;;  %v50_v57 = vld [vmem:[%s11342_s0 + $0x40] sm:$0xff] }
   0xf   :  { %v53_v58 = vld [vmem:[%s11342_s0 + $0x58] sm:$0xff]  ;;  %v52_v59 = vld [vmem:[%s11342_s0 + $0x50] sm:$0xff]  ;;  %v181_v62 = vld [vmem:[%s11343_s2] sm:$0xff] }
  0x10   :  { %v182_v3 = vld [vmem:[%s11343_s2 + $0x8] sm:$0xff]  ;;  %v183_v8 = vld [vmem:[%s11343_s2 + $0x10] sm:$0xff]  ;;  %v287_v25 = vld [vmem:[%s11344_s3 + $0x20] sm:$0xff] }
  0x11   :  { %7732 = vmatpush3.bf16.msra.mxu0 %v7731_v26  ;;  %v284_v24 = vld [vmem:[%s11344_s3 + $0x8] sm:$0xff]  ;;  %v283_v26 = vld [vmem:[%s11344_s3] sm:$0xff]  ;;  %v286_v28 = vld [vmem:[%s11344_s3 + $0x18] sm:$0xff] }
  0x12   :  { %7734 = vmatprep.subr.bf16.mxu0 %v7733_v27  ;;  %v7749_v27 = vpack.c.bf16 %v287_v25, %v284_v24  ;;  %v290_v29 = vld [vmem:[%s11344_s3 + $0x38] sm:$0xff]  ;;  %v293_v30 = vld [vmem:[%s11344_s3 + $0x50] sm:$0xff]  ;;  %v7751_v31 = vpack.c.bf16 %v286_v28, %v283_v26  ;;  %v288_v34 = vld [vmem:[%s11344_s3 + $0x28] sm:$0xff] }
  0x13   :  { %v289_v35 = vld [vmem:[%s11344_s3 + $0x30] sm:$0xff]  ;;  %v292_v37 = vld [vmem:[%s11344_s3 + $0x48] sm:$0xff]  ;;  %v291_v41 = vld [vmem:[%s11344_s3 + $0x40] sm:$0xff] }
  0x14   :  { %7750 = vmatprep.subr.bf16.mxu1 %v7749_v27  ;;  %v7755_v40 = vpack.c.bf16 %v292_v37, %v289_v35  ;;  %v294_v42 = vld [vmem:[%s11344_s3 + $0x58] sm:$0xff]  ;;  %v300_v24 = vld [vmem:[%s11344_s3 + $0x88] sm:$0xff]  ;;  %v301_v25 = vld [vmem:[%s11344_s3 + $0x90] sm:$0xff] }
  0x15   :  { %7736 = vmatpush3.bf16.msra.mxu0 %v7735_v32  ;;  %v7753_v32 = vpack.c.bf16 %v293_v30, %v290_v29  ;;  %7752 = vmatpush1.bf16.msra.mxu1 %v7751_v31  ;;  %v298_v46 = vld [vmem:[%s11344_s3 + $0x78] sm:$0xff]  ;;  %v304_v26 = vld [vmem:[%s11344_s3 + $0xa8] sm:$0xff]  ;;  %v307_v37 = vld [vmem:[%s11344_s3 + $0xc0] sm:$0xff] }
  0x16   :  { %7738 = vmatprep.subr.bf16.mxu0 %v7737_v33  ;;  %v285_v33 = vld [vmem:[%s11344_s3 + $0x10] sm:$0xff]  ;;  %v7763_v30 = vpack.c.bf16 %v304_v26, %v301_v25  ;;  %vm9164_vm3 = vmpackc.low %vm544_vm2, %vm544_vm2 }
  0x17   :  { %v7781_v36 = vpack.c.bf16 %v288_v34, %v285_v33  ;;  %7754 = vmatprep.subr.bf16.mxu1 %v7753_v32  ;;  %v308_v32 = vld [vmem:[%s11344_s3 + $0xc8] sm:$0xff]  ;;  %v311_v33 = vld [vmem:[%s11344_s3 + $0xe0] sm:$0xff] }
  0x18   :  { %v303_v34 = vld [vmem:[%s11344_s3 + $0xa0] sm:$0xff]  ;;  %v7765_v35 = vpack.c.bf16 %v311_v33, %v308_v32 }
  0x19   :  { %7740 = vmatpush3.bf16.msra.mxu0 %v7739_v38  ;;  %v296_v38 = vld [vmem:[%s11344_s3 + $0x68] sm:$0xff]  ;;  %7756 = vmatpush1.bf16.msra.mxu1 %v7755_v40 }
  0x1a   :  { %7742 = vmatprep.subr.bf16.mxu0 %v7741_v39  ;;  %v299_v39 = vld [vmem:[%s11344_s3 + $0x80] sm:$0xff] }
  0x1b   :  { %v7757_v43 = vpack.c.bf16 %v299_v39, %v296_v38  ;;  %v310_v38 = vld [vmem:[%s11344_s3 + $0xd8] sm:$0xff] }
  0x1d   :  { %7744 = vmatpush3.bf16.msra.mxu0 %v7743_v44  ;;  %v7785_v44 = vpack.c.bf16 %v294_v42, %v291_v41  ;;  %7758 = vmatprep.subr.bf16.mxu1 %v7757_v43  ;;  %v7767_v41 = vpack.c.bf16 %v310_v38, %v307_v37  ;;  %v314_v42 = vld [vmem:[%s11344_s3 + $0xf8] sm:$0xff]  ;;  %v317_v43 = vld [vmem:[%s11344_s3 + $0x110] sm:$0xff] }
  0x1e   :  { %7746 = vmatprep.subr.bf16.mxu0 %v7745_v45  ;;  %v295_v45 = vld [vmem:[%s11344_s3 + $0x60] sm:$0xff] }
  0x1f   :  { %v7759_v47 = vpack.c.bf16 %v298_v46, %v295_v45  ;;  %v7769_v45 = vpack.c.bf16 %v317_v43, %v314_v42  ;;  %v312_v46 = vld [vmem:[%s11344_s3 + $0xe8] sm:$0xff] }
  0x21   :  { %7748 = vmatpush3.bf16.msra.mxu0 %v7747_v48  ;;  %7760 = vmatpush1.bf16.msra.mxu1 %v7759_v47  ;;  %v35_v48 = vlaneseq  ;;  %v313_v47 = vld [vmem:[%s11344_s3 + $0xf0] sm:$0xff] }
  0x22   :  { %7782 = vmatprep.subr.bf16.mxu0 %v7781_v36 }
  0x24   :  { %151 = vmatmul.mubr.f32.vlgmr.msra.gmra.mrb[0].mxu0 %v42_v49  ;;  %v8973_v49 = vand.u32 127, %v35_v48 }
  0x25   :  { %155 = vmatprep.mubr.f32.mxu0 %v45_v50  ;;  %7784 = vmatpush3.bf16.msra.mxu0 %v7781_v36  ;;  %v306_v36 = vld [vmem:[%s11344_s3 + $0xb8] sm:$0xff] }
  0x26   :  { %7786 = vmatprep.subr.bf16.mxu0 %v7785_v44  ;;  %vm37_vm0 = vcmp.lt.s32.totalorder %v8973_v49, 32  ;;  %v7793_v40 = vpack.c.bf16 %v306_v36, %v303_v34  ;;  %vm40_vm4 = vcmp.lt.s32.totalorder %v8973_v49, 17 }
  0x28   :  { %156 = vmatmul.mubr.f32.gmra.mrb[2].mxu0 %v44_v51 }
  0x29   :  { %160 = vmatprep.mubr.f32.mxu0 %v47_v52  ;;  %7788 = vmatpush3.bf16.msra.mxu0 %v7785_v44  ;;  %v8977_v52 = vsel %vm37_vm0, 1.0, %v11354_v22  ;;  %v309_v44 = vld [vmem:[%s11344_s3 + $0xd0] sm:$0xff] }
  0x2c   :  { %161 = vmatmul.mubr.f32.gmra.mrb[4].mxu0 %v46_v53 }
  0x2d   :  { %165 = vmatprep.mubr.f32.mxu0 %v49_v54 }
  0x30   :  { %166 = vmatmul.mubr.f32.gmra.mrb[6].mxu0 %v48_v55 }
  0x31   :  { %170 = vmatprep.mubr.f32.mxu0 %v51_v56 }
  0x34   :  { %171 = vmatmul.mubr.f32.gmra.mrb[8].mxu0 %v50_v57 }
  0x35   :  { %175 = vmatprep.mubr.f32.mxu0 %v53_v58 }
  0x38   :  { %176 = vmatmul.mubr.f32.gmra.mrb[10].mxu0 %v52_v59 }
  0xf7   :  { %v6523_v60 = vpop.f32.mrb[0].mxu0 }
  0xf8   :  { %v6524_v61 = vpop.f32.mrb[1].mxu0 }
  0xf9   :  { %v6525_v63 = vadd.f32 %v6524_v61, %v6523_v60 }
  0xfb   :  { %v8899_v0 = vadd.f32 %v6525_v63, %v181_v62  ;;  %v6526_v1 = vpop.f32.mrb[2].mxu0 }
  0xfc   :  { %v6527_v2 = vpop.f32.mrb[3].mxu0 }
  0xfd   :  { %v6528_v4 = vadd.f32 %v6527_v2, %v6526_v1  ;;  %191 = vadd.xlane.f32.xlu0 %v8899_v0 }
  0xff   :  { %v8905_v5 = vadd.f32 %v6528_v4, %v182_v3  ;;  %v6529_v6 = vpop.f32.mrb[4].mxu0 }
 0x100   :  { %v6530_v7 = vpop.f32.mrb[5].mxu0 }
 0x101   :  { %v6531_v9 = vadd.f32 %v6530_v7, %v6529_v6  ;;  %193 = vadd.xlane.f32.xlu0 %v8905_v5 }
 0x103   :  { %v8911_v10 = vadd.f32 %v6531_v9, %v183_v8  ;;  %v6532_v11 = vpop.f32.mrb[6].mxu0 }
 0x104   :  { %v6533_v12 = vpop.f32.mrb[7].mxu0 }
 0x105   :  { %v6534_v13 = vadd.f32 %v6533_v12, %v6532_v11  ;;  %195 = vadd.xlane.f32.xlu1 %v8911_v10 }
 0x107   :  { %v8914_v14 = vadd.f32 %v6534_v13, %v181_v62  ;;  %v6535_v15 = vpop.f32.mrb[8].mxu0 }
 0x108   :  { %v6536_v16 = vpop.f32.mrb[9].mxu0 }
 0x109   :  { %v6537_v17 = vadd.f32 %v6536_v16, %v6535_v15  ;;  %197 = vadd.xlane.f32.xlu1 %v8914_v14 }
 0x10b   :  { %v8917_v18 = vadd.f32 %v6537_v17, %v182_v3  ;;  %v6538_v19 = vpop.f32.mrb[10].mxu0  ;;  %v302_v17 = vld [vmem:[%s11344_s3 + $0x98] sm:$0xff] }
 0x10c   :  { %v6539_v20 = vpop.f32.mrb[11].mxu0 }
 0x10d   :  { %v6540_v21 = vadd.f32 %v6539_v20, %v6538_v19  ;;  %199 = vadd.xlane.f32.xlu0 %v8917_v18  ;;  %v305_v19 = vld [vmem:[%s11344_s3 + $0xb0] sm:$0xff] }
 0x10e   :  { %v297_v20 = vld [vmem:[%s11344_s3 + $0x70] sm:$0xff] }
 0x10f   :  { %v8921_v23 = vadd.f32 %v6540_v21, %v183_v8  ;;  %v7761_v21 = vpack.c.bf16 %v305_v19, %v302_v17  ;;  %v7789_v29 = vpack.c.bf16 %v300_v24, %v297_v20  ;;  %v327_v17 = vld [vmem:[%s11344_s3 + $0x160] sm:$0xff]  ;;  %v330_v19 = vld [vmem:[%s11344_s3 + $0x178] sm:$0xff] }
 0x110   :  { %v7809_v20 = vpack.c.bf16 %v330_v19, %v327_v17 }
 0x111   :  { %201 = vadd.xlane.f32.xlu1 %v8921_v23  ;;  %7762 = vmatprep.subr.bf16.mxu1 %v7761_v21 }
 0x112   :  { %7790 = vmatprep.subr.bf16.mxu0 %v7789_v29  ;;  %7764 = vmatpush1.bf16.msra.mxu1 %v7763_v30 }
 0x113   :  { %7792 = vmatpush3.bf16.msra.mxu0 %v7789_v29  ;;  %7766 = vmatprep.subr.bf16.mxu1 %v7765_v35  ;;  %v190_v35 = vld [vmem:[%s11345_s8] sm:$0xff] }
 0x114   :  { %7794 = vmatprep.subr.bf16.mxu0 %v7793_v40 }
 0x116   :  { %7768 = vmatpush1.bf16.msra.mxu1 %v7767_v41 }
 0x117   :  { %7796 = vmatpush3.bf16.msra.mxu0 %v7793_v40  ;;  %7770 = vmatprep.subr.bf16.mxu1 %v7769_v45 }
 0x18a   :  { %v192_v50 = vpop.xlane.xlu0 %191 }
 0x18b   :  { %v203_v51 = vmul.f32 0.03125, %v192_v50  ;;  %v316_v50 = vld [vmem:[%s11344_s3 + $0x108] sm:$0xff] }
 0x18d   :  { %v209_v53 = vsub.f32 %v8899_v0, %v203_v51  ;;  %v7797_v51 = vpack.c.bf16 %v312_v46, %v309_v44 }
 0x18e   :  { %v194_v54 = vpop.xlane.xlu0 %193 }
 0x18f   :  { %v204_v55 = vmul.f32 0.03125, %v194_v54  ;;  %v8981_v56 = vmul.f32 %v8977_v52, %v209_v53  ;;  %v7771_v53 = vpack.c.bf16 %v316_v50, %v313_v47  ;;  %7798 = vmatprep.subr.bf16.mxu0 %v7797_v51  ;;  %v320_v54 = vld [vmem:[%s11344_s3 + $0x128] sm:$0xff] }
 0x190   :  { %7800 = vmatpush3.bf16.msra.mxu0 %v7797_v51 }
 0x191   :  { %v210_v57 = vsub.f32 %v8905_v5, %v204_v55  ;;  %v221_v58 = vmul.f32 %v8981_v56, %v8981_v56  ;;  %v323_v55 = vld [vmem:[%s11344_s3 + $0x140] sm:$0xff]  ;;  %7772 = vmatpush1.bf16.msra.mxu1 %v7771_v53 }
 0x192   :  { %v196_v59 = vpop.xlane.xlu1 %195 }
 0x193   :  { %v205_v60 = vmul.f32 0.03125, %v196_v59  ;;  %227 = vadd.xlane.f32.xlu0 %v221_v58  ;;  %v8987_v61 = vmul.f32 %v8977_v52, %v210_v57  ;;  %v315_v57 = vld [vmem:[%s11344_s3 + $0x100] sm:$0xff]  ;;  %v7773_v58 = vpack.c.bf16 %v323_v55, %v320_v54  ;;  %v318_v59 = vld [vmem:[%s11344_s3 + $0x118] sm:$0xff] }
 0x195   :  { %v211_v62 = vsub.f32 %v8911_v10, %v205_v60  ;;  %v222_v63 = vmul.f32 %v8987_v61, %v8987_v61  ;;  %v319_v60 = vld [vmem:[%s11344_s3 + $0x120] sm:$0xff]  ;;  %7774 = vmatprep.subr.bf16.mxu1 %v7773_v58 }
 0x196   :  { %v198_v1 = vpop.xlane.xlu1 %197 }
 0x197   :  { %v206_v2 = vmul.f32 0.03125, %v198_v1  ;;  %229 = vadd.xlane.f32.xlu1 %v222_v63  ;;  %v8993_v3 = vmul.f32 %v8977_v52, %v211_v62  ;;  %v322_v62 = vld [vmem:[%s11344_s3 + $0x138] sm:$0xff]  ;;  %v7801_v63 = vpack.c.bf16 %v318_v59, %v315_v57 }
 0x198   :  { %v7775_v1 = vpack.c.bf16 %v322_v62, %v319_v60 }
 0x199   :  { %v212_v4 = vsub.f32 %v8914_v14, %v206_v2  ;;  %v223_v6 = vmul.f32 %v8993_v3, %v8993_v3  ;;  %7802 = vmatprep.subr.bf16.mxu0 %v7801_v63  ;;  %v326_v2 = vld [vmem:[%s11344_s3 + $0x158] sm:$0xff] }
 0x19a   :  { %v200_v7 = vpop.xlane.xlu0 %199  ;;  %7776 = vmatpush1.bf16.msra.mxu1 %v7775_v1  ;;  %7804 = vmatpush3.bf16.msra.mxu0 %v7801_v63 }
 0x19b   :  { %v207_v8 = vmul.f32 0.03125, %v200_v7  ;;  %231 = vadd.xlane.f32.xlu0 %v223_v6  ;;  %v8999_v9 = vmul.f32 %v8977_v52, %v212_v4  ;;  %v329_v4 = vld [vmem:[%s11344_s3 + $0x170] sm:$0xff] }
 0x19c   :  { %v321_v6 = vld [vmem:[%s11344_s3 + $0x130] sm:$0xff]  ;;  %v7777_v7 = vpack.c.bf16 %v329_v4, %v326_v2 }
 0x19d   :  { %v213_v11 = vsub.f32 %v8917_v18, %v207_v8  ;;  %v224_v12 = vmul.f32 %v8999_v9, %v8999_v9  ;;  %v324_v8 = vld [vmem:[%s11344_s3 + $0x148] sm:$0xff] }
 0x19e   :  { %v202_v13 = vpop.xlane.xlu1 %201  ;;  %7778 = vmatprep.subr.bf16.mxu1 %v7777_v7 }
 0x19f   :  { %v208_v15 = vmul.f32 0.03125, %v202_v13  ;;  %233 = vadd.xlane.f32.xlu1 %v224_v12  ;;  %v9005_v16 = vmul.f32 %v8977_v52, %v213_v11  ;;  %v325_v11 = vld [vmem:[%s11344_s3 + $0x150] sm:$0xff]  ;;  %v328_v12 = vld [vmem:[%s11344_s3 + $0x168] sm:$0xff]  ;;  %v7805_v13 = vpack.c.bf16 %v324_v8, %v321_v6 }
 0x1a1   :  { %v214_v27 = vsub.f32 %v8921_v23, %v208_v15  ;;  %v225_v28 = vmul.f32 %v9005_v16, %v9005_v16  ;;  %v7779_v15 = vpack.c.bf16 %v328_v12, %v325_v11  ;;  %7806 = vmatprep.subr.bf16.mxu0 %v7805_v13 }
 0x1a2   :  { %7808 = vmatpush3.bf16.msra.mxu0 %v7805_v13  ;;  %v11352_v13 = vmov 0.0|0.0  }
 0x1a3   :  { %235 = vadd.xlane.f32.xlu0 %v225_v28  ;;  %v9029_v31 = vmul.f32 %v8977_v52, %v214_v27  ;;  %7780 = vmatpush1.bf16.msra.mxu1 %v7779_v15  ;;  %v9112_v28 = vshrl.u32 %v35_v48, 7 }
 0x1a4   :  { %7810 = vmatprep.subr.bf16.mxu0 %v7809_v20  ;;  %7813 = vmatprep.subr.bf16.mxu1 %v11352_v13 }
 0x1a5   :  { %v226_v39 = vmul.f32 %v9029_v31, %v9029_v31  ;;  %v9115_v33 = vsub.s32 0, %v9112_v28  ;;  %v9121_v37 = vsub.s32 1, %v9112_v28 }
 0x1a6   :  { %7812 = vmatpush3.bf16.msra.mxu0 %v7809_v20 }
 0x1a7   :  { %237 = vadd.xlane.f32.xlu1 %v226_v39  ;;  %v266_v48 = vrot.slane %v190_v35, %v9115_v33  ;;  %v276_v43 = vrot.slane %v190_v35, %v9121_v37  ;;  %7829 = vmatprep.subr.bf16.mxu0 %v11352_v13 }
 0x220   :  { %v228_v21 = vpop.xlane.xlu0 %227 }
 0x221   :  { %v239_v24 = vmul.f32 0.03125, %v228_v21 }
 0x223   :  { %v245_v25 = vadd.f32 1e-12, %v239_v24 }
 0x224   :  { %v230_v26 = vpop.xlane.xlu1 %229 }
 0x225   :  { %8399 = vrsqrt.f32 %v245_v25  ;;  %v240_v27 = vmul.f32 0.03125, %v230_v26 }
 0x227   :  { %v246_v29 = vadd.f32 1e-12, %v240_v27 }
 0x228   :  { %v232_v30 = vpop.xlane.xlu0 %231 }
 0x229   :  { %8401 = vrsqrt.f32 %v246_v29  ;;  %v241_v32 = vmul.f32 0.03125, %v232_v30 }
 0x22b   :  { %v247_v34 = vadd.f32 1e-12, %v241_v32 }
 0x22c   :  { %v234_v36 = vpop.xlane.xlu1 %233 }
 0x22d   :  { %8403 = vrsqrt.f32 %v247_v34  ;;  %v242_v38 = vmul.f32 0.03125, %v234_v36 }
 0x22f   :  { %v8400_v39 = vpop.eup %8399  ;;  %v248_v40 = vadd.f32 1e-12, %v242_v38 }
 0x230   :  { %v236_v41 = vpop.xlane.xlu0 %235  ;;  %v257_v42 = vmul.f32 %v8400_v39, %v8981_v56 }
 0x231   :  { %8405 = vrsqrt.f32 %v248_v40  ;;  %v243_v44 = vmul.f32 0.03125, %v236_v41 }
 0x232   :  { %v267_v45 = vmul.f32 %v266_v48, %v257_v42 }
 0x233   :  { %v8402_v46 = vpop.eup %8401  ;;  %v249_v47 = vadd.f32 1e-12, %v243_v44 }
 0x234   :  { %v238_v50 = vpop.xlane.xlu1 %237  ;;  %v277_v51 = vadd.f32 %v276_v43, %v267_v45  ;;  %v258_v53 = vmul.f32 %v8402_v46, %v8987_v61 }
 0x235   :  { %8407 = vrsqrt.f32 %v249_v47  ;;  %v244_v54 = vmul.f32 0.03125, %v238_v50 }
 0x236   :  { %413 = vmatmul.mubr.f32.vlgmr.msra.gmra.mrb[0].mxu1 %v277_v51  ;;  %6941 = vmatprep.mubr.f32.mxu0 %v277_v51  ;;  %v268_v55 = vmul.f32 %v266_v48, %v258_v53 }
 0x237   :  { %v8404_v57 = vpop.eup %8403  ;;  %v250_v58 = vadd.f32 1e-12, %v244_v54  ;;  %418 = vmatprep.mubr.f32.mxu1 %v11354_v22 }
 0x238   :  { %v278_v56 = vadd.f32 %v276_v43, %v268_v55  ;;  %v259_v59 = vmul.f32 %v8404_v57, %v8993_v3 }
 0x239   :  { %8409 = vrsqrt.f32 %v250_v58 }
 0x23a   :  { %419 = vmatmul.mubr.f32.gmra.mrb[2].mxu1 %v278_v56  ;;  %6942 = vmatmul.mubr.f32.vlgmr.msra.gmra.mrb[12].mxu0 %v278_v56  ;;  %v269_v60 = vmul.f32 %v266_v48, %v259_v59 }
 0x23b   :  { %v8406_v62 = vpop.eup %8405  ;;  %424 = vmatprep.mubr.f32.mxu1 %v11354_v22 }
 0x23c   :  { %v279_v61 = vadd.f32 %v276_v43, %v269_v60  ;;  %v260_v63 = vmul.f32 %v8406_v62, %v8999_v9 }
 0x23e   :  { %425 = vmatmul.mubr.f32.gmra.mrb[4].mxu1 %v279_v61  ;;  %6944 = vmatprep.mubr.f32.mxu0 %v279_v61  ;;  %v270_v1 = vmul.f32 %v266_v48, %v260_v63 }
 0x23f   :  { %v8408_v2 = vpop.eup %8407  ;;  %430 = vmatprep.mubr.f32.mxu1 %v11354_v22 }
 0x240   :  { %v280_v4 = vadd.f32 %v276_v43, %v270_v1  ;;  %v261_v6 = vmul.f32 %v8408_v2, %v9005_v16  ;;  %v9143_v16 = vsub.s32 2, %v9112_v28 }
 0x242   :  { %431 = vmatmul.mubr.f32.gmra.mrb[6].mxu1 %v280_v4  ;;  %6945 = vmatmul.mubr.f32.gmra.mrb[14].mxu0 %v280_v4  ;;  %v271_v3 = vmul.f32 %v266_v48, %v261_v6 }
 0x243   :  { %v8410_v7 = vpop.eup %8409  ;;  %436 = vmatprep.mubr.f32.mxu1 %v11354_v22 }
 0x244   :  { %v281_v8 = vadd.f32 %v276_v43, %v271_v3  ;;  %v262_v11 = vmul.f32 %v8410_v7, %v9029_v31  ;;  %v331_v31 = vld [vmem:[%s11346_s4] sm:$0x7] }
 0x245   :  { %v9149_v19 = vrot.slane %v331_v31, %v9143_v16  ;;  %v9152_v20 = vrot.slane %v331_v31, %v9121_v37  ;;  %v9173_v40 = vrot.slane %v331_v31, %v9115_v33 }
 0x246   :  { %437 = vmatmul.mubr.f32.gmra.mrb[8].mxu1 %v281_v8  ;;  %6947 = vmatprep.mubr.f32.mxu0 %v281_v8  ;;  %v272_v9 = vmul.f32 %v266_v48, %v262_v11 }
 0x247   :  { %442 = vmatprep.mubr.f32.mxu1 %v11354_v22 }
 0x248   :  { %v282_v12 = vadd.f32 %v276_v43, %v272_v9 }
 0x24a   :  { %443 = vmatmul.mubr.f32.gmra.mrb[10].mxu1 %v282_v12  ;;  %6948 = vmatmul.mubr.f32.gmra.mrb[16].mxu0 %v282_v12 }
 0x24b   :  { %6956 = vmatprep.mubr.msk.f32.mxu1 %vm8703_vm1, %v11354_v22  ;;  %7016 = vmatprep.mubr.msk.f32.mxu0 %vm8703_vm1, %v11354_v22 }
 0x309   :  { %v414_v15 = vpop.f32.mrb[0].mxu1 }
 0x30a   :  { %v416_v17 = vpop.f32.mrb[1].mxu1  ;;  %v415_v51 = vadd.f32 %v414_v15, %v9173_v40 }
 0x30b   :  { %v417_v29 = vadd.f32 %v416_v17, %v9152_v20 }
 0x30d   :  { %v420_v21 = vpop.f32.mrb[2].mxu1  ;;  %v6943_v24 = vpop.f32.mrb[12].mxu0 }
 0x30e   :  { %v9155_v25 = vadd.f32 %v6943_v24, %v9149_v19  ;;  %v422_v26 = vpop.f32.mrb[3].mxu1  ;;  %v515_v27 = vpop.f32.mrb[13].mxu0  ;;  %v421_v42 = vadd.f32 %v420_v21, %v9173_v40 }
 0x30f   :  { %v423_v30 = vadd.f32 %v422_v26, %v9152_v20  ;;  %v9160_v32 = vadd.f32 %v515_v27, %v9149_v19 }
 0x311   :  { %v7814_v34 = vpack.c.bf16 %v423_v30, %v417_v29  ;;  %v426_v35 = vpop.f32.mrb[4].mxu1  ;;  %v8194_v36 = vpack.i.bf16 %v423_v30, %v417_v29  ;;  %v9170_v39 = vpack.i.bf16 %v9155_v25, %v9160_v32  ;;  %v7846_v41 = vpack.c.bf16 %v9155_v25, %v9160_v32 }
 0x312   :  { %v428_v48 = vpop.f32.mrb[5].mxu1  ;;  %v427_v62 = vadd.f32 %v426_v35, %v9173_v40 }
 0x313   :  { %8195 = vrot.lane.b32.xlu1 %v8194_v36, %s8704_s11  ;;  %8190 = vrot.lane.b32.xlu0 %v8194_v36, %s8705_s12  ;;  %v429_v43 = vadd.f32 %v428_v48, %v9152_v20 }
 0x314   :  { %7816 = vmatpush3.bf16.xpose.msk.msra.mxu1 %vm9164_vm3, %v7814_v34 }
 0x315   :  { %v432_v44 = vpop.f32.mrb[6].mxu1  ;;  %v6946_v45 = vpop.f32.mrb[14].mxu0  ;;  %6954 = vmatprep.subr.mxu1 %v11354_v22 }
 0x316   :  { %v9185_v46 = vadd.f32 %v6946_v45, %v9149_v19  ;;  %v434_v47 = vpop.f32.mrb[7].mxu1  ;;  %v9187_v50 = vpop.f32.mrb[15].mxu0  ;;  %v433_v7 = vadd.f32 %v432_v44, %v9173_v40 }
 0x317   :  { %645 = vrot.lane.b32.xlu0 %v421_v42, %s8705_s12  ;;  %653 = vrot.lane.b32.xlu1 %v429_v43, %s8705_s12  ;;  %v435_v55 = vadd.f32 %v434_v47, %v9152_v20  ;;  %v9268_v9 = vadd.f32 %v9187_v50, %v9149_v19 }
 0x319   :  { %v438_v53 = vpop.f32.mrb[8].mxu1 }
 0x31a   :  { %v440_v54 = vpop.f32.mrb[9].mxu1  ;;  %v439_v8 = vadd.f32 %v438_v53, %v9173_v40 }
 0x31b   :  { %v441_v57 = vadd.f32 %v440_v54, %v9152_v20  ;;  %757 = vrot.lane.b32.xlu0 %v429_v43, %s8704_s11  ;;  %643 = vrot.lane.b32.xlu1 %v415_v51, %s8705_s12 }
 0x31c   :  { %6955 = vmatpush3.xpose.msk.msra.mxu1 %vm544_vm2, %v429_v43 }
 0x31d   :  { %v7830_v58 = vpack.c.bf16 %v441_v57, %v435_v55  ;;  %v444_v56 = vpop.f32.mrb[10].mxu1  ;;  %v6949_v59 = vpop.f32.mrb[16].mxu0  ;;  %v8204_v60 = vpack.i.bf16 %v441_v57, %v435_v55  ;;  %7817 = vmatprep.subr.bf16.mxu1 %v11352_v13 }
 0x31e   :  { %v9200_v61 = vadd.f32 %v6949_v59, %v9149_v19  ;;  %v446_v63 = vpop.f32.mrb[11].mxu1  ;;  %v535_v1 = vpop.f32.mrb[17].mxu0  ;;  %v445_v11 = vadd.f32 %v444_v56, %v9173_v40 }
 0x31f   :  { %v9203_v2 = vadd.f32 %v535_v1, %v9149_v19  ;;  %6957 = vmatmul.mubr.msk.f32.vlgmr.msra.gmra.mrb[12].mxu1 %vm544_vm2, %v415_v51  ;;  %747 = vrot.lane.b32.xlu0 %v415_v51, %s8704_s11  ;;  %v447_v3 = vadd.f32 %v446_v63, %v9152_v20 }
 0x320   :  { %647 = vrot.lane.b32.xlu1 %v427_v62, %s8705_s12  ;;  %7832 = vmatpush3.bf16.xpose.msk.msra.mxu0 %vm9164_vm3, %v7830_v58 }
 0x321   :  { %6959 = vmatprep.mubr.msk.f32.mxu1 %vm8703_vm1, %v11354_v22  ;;  %7014 = vmatprep.subr.mxu0 %v11354_v22  ;;  %v9215_v4 = vpack.i.bf16 %v9203_v2, %v9185_v46 }
 0x323   :  { %6960 = vmatmul.mubr.msk.f32.gmra.mrb[14].mxu1 %vm544_vm2, %v421_v42  ;;  %751 = vrot.lane.b32.xlu0 %v427_v62, %s8704_s11 }
 0x324   :  { %8200 = vrot.lane.b32.xlu1 %v8194_v36, %s8706_s13  ;;  %6962 = vmatprep.mubr.msk.f32.mxu1 %vm8703_vm1, %v11354_v22 }
 0x327   :  { %6963 = vmatmul.mubr.msk.f32.gmra.mrb[16].mxu1 %vm544_vm2, %v427_v62  ;;  %8205 = vrot.lane.b32.xlu0 %v8204_v60, %s8705_s12 }
 0x328   :  { %749 = vrot.lane.b32.xlu1 %v421_v42, %s8704_s11  ;;  %7015 = vmatpush3.xpose.msk.msra.mxu0 %vm544_vm2, %v447_v3 }
 0x329   :  { %6971 = vmatprep.mubr.msk.f32.mxu1 %vm8703_vm1, %v11354_v22  ;;  %7837 = vmatprep.subr.bf16.mxu0 %v11352_v13 }
 0x32b   :  { %7017 = vmatmul.mubr.msk.f32.vlgmr.msra.gmra.mrb[18].mxu0 %vm544_vm2, %v433_v7  ;;  %853 = vrot.lane.b32.xlu0 %v421_v42, %s8706_s13 }
 0x32c   :  { %861 = vrot.lane.b32.xlu1 %v429_v43, %s8706_s13  ;;  %7019 = vmatprep.mubr.msk.f32.mxu0 %vm8703_vm1, %v11354_v22 }
 0x32f   :  { %7020 = vmatmul.mubr.msk.f32.gmra.mrb[20].mxu0 %vm544_vm2, %v439_v8  ;;  %1063 = vrot.lane.b32.xlu0 %v447_v3, %s8705_s12 }
 0x330   :  { %851 = vrot.lane.b32.xlu1 %v415_v51, %s8706_s13  ;;  %7022 = vmatprep.mubr.msk.f32.mxu0 %vm8703_vm1, %v11354_v22 }
 0x333   :  { %7023 = vmatmul.mubr.msk.f32.gmra.mrb[22].mxu0 %vm544_vm2, %v445_v11  ;;  %8215 = vrot.lane.b32.xlu0 %v8204_v60, %s8706_s13 }
 0x334   :  { %855 = vrot.lane.b32.xlu1 %v427_v62, %s8706_s13  ;;  %7046 = vmatprep.mubr.msk.f32.mxu0 %vm8703_vm1, %v11354_v22 }
 0x337   :  { %1055 = vrot.lane.b32.xlu0 %v439_v8, %s8705_s12 }
 0x338   :  { %8210 = vrot.lane.b32.xlu1 %v8204_v60, %s8704_s11 }
 0x33b   :  { %1167 = vrot.lane.b32.xlu0 %v447_v3, %s8704_s11 }
 0x33c   :  { %1053 = vrot.lane.b32.xlu1 %v433_v7, %s8705_s12 }
 0x33f   :  { %1157 = vrot.lane.b32.xlu0 %v433_v7, %s8704_s11 }
 0x340   :  { %1057 = vrot.lane.b32.xlu1 %v445_v11, %s8705_s12 }
 0x343   :  { %1159 = vrot.lane.b32.xlu0 %v439_v8, %s8704_s11 }
 0x344   :  { %1271 = vrot.lane.b32.xlu1 %v447_v3, %s8706_s13 }
 0x347   :  { %1161 = vrot.lane.b32.xlu0 %v445_v11, %s8704_s11 }
 0x348   :  { %1261 = vrot.lane.b32.xlu1 %v433_v7, %s8706_s13 }
 0x34b   :  { %8220 = vrot.lane.b32.xlu0 %v9170_v39, %s8705_s12 }
 0x34c   :  { %1263 = vrot.lane.b32.xlu1 %v439_v8, %s8706_s13 }
 0x34f   :  { %8225 = vrot.lane.b32.xlu0 %v9170_v39, %s8704_s11 }
 0x350   :  { %1265 = vrot.lane.b32.xlu1 %v445_v11, %s8706_s13 }
 0x353   :  { %1872 = vrot.lane.b32.xlu0 %v9268_v9, %s8704_s11 }
 0x354   :  { %1774 = vrot.lane.b32.xlu1 %v9268_v9, %s8705_s12 }
 0x358   :  { %8230 = vrot.lane.b32.xlu1 %v9170_v39, %s8706_s13 }
 0x35c   :  { %1970 = vrot.lane.b32.xlu1 %v9268_v9, %s8706_s13 }
 0x385   :  { %v8196_v12 = vpop.permute.xlu1 %8195  ;;  %v8191_v31 = vpop.permute.xlu0 %8190 }
 0x386   :  { %v8193_v15 = vunpack.i.h.bf16 %v8191_v31  ;;  %v8192_v17 = vunpack.i.l.bf16 %v8191_v31  ;;  %v8198_v27 = vunpack.i.h.bf16 %v8196_v12  ;;  %v8197_v29 = vunpack.i.l.bf16 %v8196_v12 }
 0x388   :  { %v7818_v20 = vpack.c.bf16 %v8193_v15, %v8192_v17  ;;  %v7822_v35 = vpack.c.bf16 %v8198_v27, %v8197_v29  ;;  %v8707_v27 = vmov -1e+30  }
 0x389   :  { %v654_v21 = vpop.permute.xlu1 %653  ;;  %v646_v19 = vpop.permute.xlu0 %645  ;;  %v9371_v29 = vsel %vm40_vm4, 0.0, %v8707_v27 }
 0x38a   :  { %7820 = vmatpush3.bf16.xpose.msk.msra.mxu1 %vm9164_vm3, %v7818_v20 }
 0x38b   :  { %6969 = vmatprep.subr.mxu1 %v11354_v22 }
 0x38d   :  { %v644_v24 = vpop.permute.xlu1 %643  ;;  %v758_v26 = vpop.permute.xlu0 %757 }
 0x391   :  { %v748_v30 = vpop.permute.xlu0 %747 }
 0x392   :  { %v648_v34 = vpop.permute.xlu1 %647  ;;  %6970 = vmatpush3.xpose.msk.msra.mxu1 %vm544_vm2, %v654_v21 }
 0x393   :  { %7821 = vmatprep.subr.bf16.mxu1 %v11352_v13 }
 0x395   :  { %v752_v36 = vpop.permute.xlu0 %751  ;;  %6972 = vmatmul.mubr.msk.f32.vlgmr.msra.gmra.mrb[18].mxu1 %vm544_vm2, %v644_v24 }
 0x396   :  { %v8201_v48 = vpop.permute.xlu1 %8200  ;;  %7824 = vmatpush3.bf16.xpose.msk.msra.mxu1 %vm9164_vm3, %v7822_v35  ;;  %6974 = vmatprep.mubr.msk.f32.mxu1 %vm8703_vm1, %v11354_v22 }
 0x397   :  { %6984 = vmatprep.subr.mxu1 %v11354_v22  ;;  %v8203_v42 = vunpack.i.h.bf16 %v8201_v48  ;;  %v8202_v43 = vunpack.i.l.bf16 %v8201_v48 }
 0x399   :  { %v8206_v39 = vpop.permute.xlu0 %8205  ;;  %6975 = vmatmul.mubr.msk.f32.gmra.mrb[20].mxu1 %vm544_vm2, %v646_v19  ;;  %v7826_v47 = vpack.c.bf16 %v8203_v42, %v8202_v43 }
 0x39a   :  { %v750_v40 = vpop.permute.xlu1 %749  ;;  %6977 = vmatprep.mubr.msk.f32.mxu1 %vm8703_vm1, %v11354_v22  ;;  %v8208_v55 = vunpack.i.h.bf16 %v8206_v39  ;;  %v8207_v57 = vunpack.i.l.bf16 %v8206_v39 }
 0x39c   :  { %v7834_v62 = vpack.c.bf16 %v8208_v55, %v8207_v57 }
 0x39d   :  { %v854_v44 = vpop.permute.xlu0 %853  ;;  %6978 = vmatmul.mubr.msk.f32.gmra.mrb[22].mxu1 %vm544_vm2, %v648_v34 }
 0x39e   :  { %v862_v45 = vpop.permute.xlu1 %861  ;;  %6985 = vmatpush3.xpose.msk.msra.mxu1 %vm544_vm2, %v758_v26  ;;  %6986 = vmatprep.mubr.msk.f32.mxu1 %vm8703_vm1, %v11354_v22 }
 0x39f   :  { %7825 = vmatprep.subr.bf16.mxu1 %v11352_v13 }
 0x3a1   :  { %v1064_v50 = vpop.permute.xlu0 %1063  ;;  %6987 = vmatmul.mubr.msk.f32.vlgmr.msra.gmra.mrb[24].mxu1 %vm544_vm2, %v748_v30 }
 0x3a2   :  { %v852_v51 = vpop.permute.xlu1 %851  ;;  %7828 = vmatpush3.bf16.xpose.msk.msra.mxu1 %vm9164_vm3, %v7826_v47  ;;  %6989 = vmatprep.mubr.msk.f32.mxu1 %vm8703_vm1, %v11354_v22 }
 0x3a3   :  { %6999 = vmatprep.subr.mxu1 %v11354_v22 }
 0x3a5   :  { %v8216_v53 = vpop.permute.xlu0 %8215  ;;  %6990 = vmatmul.mubr.msk.f32.gmra.mrb[26].mxu1 %vm544_vm2, %v750_v40 }
 0x3a6   :  { %v856_v54 = vpop.permute.xlu1 %855  ;;  %6992 = vmatprep.mubr.msk.f32.mxu1 %vm8703_vm1, %v11354_v22  ;;  %v8218_v11 = vunpack.i.h.bf16 %v8216_v53  ;;  %v8217_v12 = vunpack.i.l.bf16 %v8216_v53 }
 0x3a8   :  { %v7842_v17 = vpack.c.bf16 %v8218_v11, %v8217_v12 }
 0x3a9   :  { %v1056_v58 = vpop.permute.xlu0 %1055  ;;  %6993 = vmatmul.mubr.msk.f32.gmra.mrb[28].mxu1 %vm544_vm2, %v752_v36 }
 0x3aa   :  { %v8211_v56 = vpop.permute.xlu1 %8210  ;;  %7000 = vmatpush3.xpose.msk.msra.mxu1 %vm544_vm2, %v862_v45  ;;  %7001 = vmatprep.mubr.msk.f32.mxu1 %vm8703_vm1, %v11354_v22 }
 0x3ab   :  { %v8213_v59 = vunpack.i.h.bf16 %v8211_v56  ;;  %v8212_v60 = vunpack.i.l.bf16 %v8211_v56  ;;  %7833 = vmatprep.subr.bf16.mxu1 %v11352_v13 }
 0x3ad   :  { %v7838_v63 = vpack.c.bf16 %v8213_v59, %v8212_v60  ;;  %v1168_v1 = vpop.permute.xlu0 %1167  ;;  %7002 = vmatmul.mubr.msk.f32.vlgmr.msra.gmra.mrb[30].mxu1 %vm544_vm2, %v852_v51 }
 0x3ae   :  { %v1054_v3 = vpop.permute.xlu1 %1053  ;;  %7836 = vmatpush3.bf16.xpose.msk.msra.mxu1 %vm9164_vm3, %v7834_v62  ;;  %7004 = vmatprep.mubr.msk.f32.mxu1 %vm8703_vm1, %v11354_v22 }
 0x3af   :  { %7840 = vmatpush3.bf16.xpose.msk.msra.mxu0 %vm9164_vm3, %v7838_v63  ;;  %7029 = vmatprep.subr.mxu1 %v11354_v22 }
 0x3b0   :  { %7044 = vmatprep.subr.mxu0 %v11354_v22 }
 0x3b1   :  { %v1158_v7 = vpop.permute.xlu0 %1157  ;;  %7005 = vmatmul.mubr.msk.f32.gmra.mrb[32].mxu1 %vm544_vm2, %v854_v44 }
 0x3b2   :  { %v1058_v8 = vpop.permute.xlu1 %1057  ;;  %7007 = vmatprep.mubr.msk.f32.mxu1 %vm8703_vm1, %v11354_v22 }
 0x3b5   :  { %v1160_v31 = vpop.permute.xlu0 %1159  ;;  %7008 = vmatmul.mubr.msk.f32.gmra.mrb[34].mxu1 %vm544_vm2, %v856_v54 }
 0x3b6   :  { %v1272_v15 = vpop.permute.xlu1 %1271  ;;  %7030 = vmatpush3.xpose.msk.msra.mxu1 %vm544_vm2, %v1064_v50  ;;  %7031 = vmatprep.mubr.msk.f32.mxu1 %vm8703_vm1, %v11354_v22 }
 0x3b7   :  { %7045 = vmatpush3.xpose.msk.msra.mxu0 %vm544_vm2, %v1168_v1  ;;  %7841 = vmatprep.subr.bf16.mxu1 %v11352_v13 }
 0x3b8   :  { %7845 = vmatprep.subr.bf16.mxu0 %v11352_v13 }
 0x3b9   :  { %v1162_v20 = vpop.permute.xlu0 %1161  ;;  %7032 = vmatmul.mubr.msk.f32.vlgmr.msra.gmra.mrb[36].mxu1 %vm544_vm2, %v1054_v3 }
 0x3ba   :  { %v1262_v21 = vpop.permute.xlu1 %1261  ;;  %7047 = vmatmul.mubr.msk.f32.vlgmr.msra.gmra.mrb[24].mxu0 %vm544_vm2, %v1158_v7  ;;  %7844 = vmatpush3.bf16.xpose.msk.msra.mxu1 %vm9164_vm3, %v7842_v17 }
 0x3bb   :  { %7847 = vmatpush3.bf16.msra.mxu0 %v7846_v41  ;;  %7034 = vmatprep.mubr.msk.f32.mxu1 %vm8703_vm1, %v11354_v22 }
 0x3bc   :  { %7049 = vmatprep.mubr.msk.f32.mxu0 %vm8703_vm1, %v11354_v22  ;;  %7074 = vmatprep.subr.mxu0 %v11354_v22 }
 0x3bd   :  { %v8221_v19 = vpop.permute.xlu0 %8220  ;;  %7035 = vmatmul.mubr.msk.f32.gmra.mrb[38].mxu1 %vm544_vm2, %v1056_v58  ;;  %7059 = vmatprep.subr.mxu1 %v11354_v22 }
 0x3be   :  { %v1264_v24 = vpop.permute.xlu1 %1263  ;;  %7050 = vmatmul.mubr.msk.f32.gmra.mrb[26].mxu0 %vm544_vm2, %v1160_v31  ;;  %7037 = vmatprep.mubr.msk.f32.mxu1 %vm8703_vm1, %v11354_v22  ;;  %v8223_v25 = vunpack.i.h.bf16 %v8221_v19  ;;  %v8222_v32 = vunpack.i.l.bf16 %v8221_v19 }
 0x3bf   :  { %7075 = vmatpush3.msra.mxu0 %v9268_v9  ;;  %7052 = vmatprep.mubr.msk.f32.mxu0 %vm8703_vm1, %v11354_v22 }
 0x3c0   :  { %7851 = vmatprep.subr.bf16.mxu0 %v11352_v13  ;;  %v7849_v9 = vpack.c.bf16 %v8223_v25, %v8222_v32 }
 0x3c1   :  { %7038 = vmatmul.mubr.msk.f32.gmra.mrb[40].mxu1 %vm544_vm2, %v1058_v8 }
 0x3c2   :  { %7053 = vmatmul.mubr.msk.f32.gmra.mrb[28].mxu0 %vm544_vm2, %v1162_v20  ;;  %7060 = vmatpush3.xpose.msk.msra.mxu1 %vm544_vm2, %v1272_v15  ;;  %v1266_v41 = vpop.permute.xlu1 %1265 }
 0x3c3   :  { %7061 = vmatprep.mubr.msk.f32.mxu1 %vm8703_vm1, %v11354_v22  ;;  %7848 = vmatprep.subr.bf16.mxu1 %v11352_v13 }
 0x3c4   :  { %7076 = vmatprep.mubr.msk.f32.mxu0 %vm8703_vm1, %v11354_v22 }
 0x3c5   :  { %7062 = vmatmul.mubr.msk.f32.vlgmr.msra.gmra.mrb[42].mxu1 %vm544_vm2, %v1262_v21 }
 0x3c6   :  { %7850 = vmatpush3.bf16.msra.mxu1 %v7849_v9  ;;  %7064 = vmatprep.mubr.msk.f32.mxu1 %vm8703_vm1, %v11354_v22  ;;  %v1775_v26 = vpop.permute.xlu1 %1774 }
 0x3c7   :  { %7089 = vmatprep.subr.mxu1 %v11354_v22 }
 0x3c9   :  { %7065 = vmatmul.mubr.msk.f32.gmra.mrb[44].mxu1 %vm544_vm2, %v1264_v24 }
 0x3ca   :  { %7090 = vmatpush3.msra.mxu1 %v1775_v26  ;;  %7067 = vmatprep.mubr.msk.f32.mxu1 %vm8703_vm1, %v11354_v22 }
 0x3cb   :  { %7854 = vmatprep.subr.bf16.mxu1 %v11352_v13 }
 0x3cd   :  { %7068 = vmatmul.mubr.msk.f32.gmra.mrb[46].mxu1 %vm544_vm2, %v1266_v41 }
 0x3ce   :  { %7091 = vmatprep.mubr.msk.f32.mxu1 %vm8703_vm1, %v11354_v22 }
 0x3f2   :  { %v629_v30 = vpop.f32.mrb[12].mxu1 }
 0x3f3   :  { %v1365_v34 = vmul.f32 0.35355338, %v629_v30  ;;  %v6958_v35 = vpop.f32.mrb[13].mxu1 }
 0x3f5   :  { %v9374_v36 = vadd.f32 %v1365_v34, %v9371_v29 }
 0x3f6   :  { %v634_v48 = vpop.f32.mrb[14].mxu1 }
 0x3f7   :  { %v1366_v39 = vmul.f32 0.35355338, %v634_v48  ;;  %v6961_v40 = vpop.f32.mrb[15].mxu1  ;;  %v1414_v42 = vsel %vm1413_vm5, %v9374_v36, -inf }
 0x3f8   :  { %1415 = vmax.xlane.f32.xlu0 %v1414_v42 }
 0x3f9   :  { %v9379_v43 = vadd.f32 %v1366_v39, %v9371_v29 }
 0x3fa   :  { %v639_v49 = vpop.f32.mrb[16].mxu1 }
 0x3fb   :  { %v1367_v44 = vmul.f32 0.35355338, %v639_v49  ;;  %v6964_v45 = vpop.f32.mrb[17].mxu1  ;;  %v1417_v47 = vsel %vm1413_vm5, %v9379_v43, -inf }
 0x3fc   :  { %1418 = vmax.xlane.f32.xlu0 %v1417_v47 }
 0x3fd   :  { %v9384_v50 = vadd.f32 %v1367_v44, %v9371_v29  ;;  %v9423_v44 = vpop.permute.xlu0 %8225 }
 0x3fe   :  { %v1039_v51 = vpop.f32.mrb[18].mxu0 }
 0x3ff   :  { %v1377_v53 = vmul.f32 0.35355338, %v1039_v51  ;;  %v7018_v54 = vpop.f32.mrb[19].mxu0  ;;  %v1420_v55 = vsel %vm1413_vm5, %v9384_v50, -inf }
 0x400   :  { %1421 = vmax.xlane.f32.xlu0 %v1420_v55 }
 0x401   :  { %v9389_v57 = vadd.f32 %v1377_v53, %v9371_v29  ;;  %v9425_v53 = vpop.permute.xlu0 %1872 }
 0x402   :  { %v1044_v58 = vpop.f32.mrb[20].mxu0 }
 0x403   :  { %v1378_v56 = vmul.f32 0.35355338, %v1044_v58  ;;  %v7021_v59 = vpop.f32.mrb[21].mxu0  ;;  %v1450_v60 = vsel %vm1413_vm5, %v9389_v57, -inf }
 0x404   :  { %1451 = vmax.xlane.f32.xlu0 %v1450_v60 }
 0x405   :  { %v9394_v62 = vadd.f32 %v1378_v56, %v9371_v29 }
 0x406   :  { %v1049_v63 = vpop.f32.mrb[22].mxu0 }
 0x407   :  { %v1379_v1 = vmul.f32 0.35355338, %v1049_v63  ;;  %v7024_v3 = vpop.f32.mrb[23].mxu0  ;;  %v1453_v7 = vsel %vm1413_vm5, %v9394_v62, -inf }
 0x408   :  { %1454 = vmax.xlane.f32.xlu0 %v1453_v7 }
 0x409   :  { %v9399_v8 = vadd.f32 %v1379_v1, %v9371_v29 }
 0x40b   :  { %v1456_v11 = vsel %vm1413_vm5, %v9399_v8, -inf }
 0x40c   :  { %1457 = vmax.xlane.f32.xlu0 %v1456_v11 }
 0x468   :  { %v733_v12 = vpop.f32.mrb[18].mxu1 }
 0x469   :  { %v1368_v31 = vmul.f32 0.35355338, %v733_v12  ;;  %v6973_v15 = vpop.f32.mrb[19].mxu1 }
 0x46b   :  { %v9404_v17 = vadd.f32 %v1368_v31, %v9371_v29 }
 0x46c   :  { %v738_v20 = vpop.f32.mrb[20].mxu1 }
 0x46d   :  { %v1369_v21 = vmul.f32 0.35355338, %v738_v20  ;;  %v6976_v19 = vpop.f32.mrb[21].mxu1  ;;  %v1423_v24 = vsel %vm1413_vm5, %v9404_v17, -inf }
 0x46e   :  { %1424 = vmax.xlane.f32.xlu1 %v1423_v24 }
 0x46f   :  { %v9409_v25 = vadd.f32 %v1369_v21, %v9371_v29 }
 0x470   :  { %v743_v32 = vpop.f32.mrb[22].mxu1 }
 0x471   :  { %v1370_v41 = vmul.f32 0.35355338, %v743_v32  ;;  %v6979_v9 = vpop.f32.mrb[23].mxu1  ;;  %v1426_v26 = vsel %vm1413_vm5, %v9409_v25, -inf }
 0x472   :  { %1427 = vmax.xlane.f32.xlu0 %v1426_v26 }
 0x473   :  { %v9414_v27 = vadd.f32 %v1370_v41, %v9371_v29 }
 0x474   :  { %v837_v30 = vpop.f32.mrb[24].mxu1 }
 0x475   :  { %v1371_v34 = vmul.f32 0.35355338, %v837_v30  ;;  %v6988_v35 = vpop.f32.mrb[25].mxu1  ;;  %v1429_v48 = vsel %vm1413_vm5, %v9414_v27, -inf }
 0x476   :  { %1430 = vmax.xlane.f32.xlu1 %v1429_v48 }
 0x477   :  { %v9419_v39 = vadd.f32 %v1371_v34, %v9371_v29 }
 0x478   :  { %v842_v40 = vpop.f32.mrb[26].mxu1 }
 0x479   :  { %v6991_v42 = vpop.f32.mrb[27].mxu1  ;;  %v1432_v49 = vsel %vm1413_vm5, %v9419_v39, -inf  ;;  %v1372_v9 = vmul.f32 0.35355338, %v842_v40 }
 0x47a   :  { %1433 = vmax.xlane.f32.xlu0 %v1432_v49 }
 0x47c   :  { %v847_v45 = vpop.f32.mrb[28].mxu1 }
 0x47d   :  { %v6994_v47 = vpop.f32.mrb[29].mxu1 }
 0x480   :  { %v941_v51 = vpop.f32.mrb[30].mxu1 }
 0x481   :  { %v1374_v54 = vmul.f32 0.35355338, %v941_v51  ;;  %v7003_v55 = vpop.f32.mrb[31].mxu1 }
 0x483   :  { %v9428_v58 = vadd.f32 %v1374_v54, %v9371_v29 }
 0x484   :  { %v946_v56 = vpop.f32.mrb[32].mxu1 }
 0x485   :  { %v9430_v59 = vpop.xlane.xlu0 %1415  ;;  %v1375_v60 = vmul.f32 0.35355338, %v946_v56  ;;  %v7006_v63 = vpop.f32.mrb[33].mxu1  ;;  %v1441_v1 = vsel %vm1413_vm5, %v9428_v58, -inf }
 0x486   :  { %1442 = vmax.xlane.f32.xlu1 %v1441_v1  ;;  %v9460_v1 = vadd.f32 %v1372_v9, %v9371_v29 }
 0x487   :  { %v9435_v3 = vadd.f32 %v1375_v60, %v9371_v29 }
 0x488   :  { %v951_v7 = vpop.f32.mrb[34].mxu1 }
 0x489   :  { %v9437_v11 = vpop.xlane.xlu0 %1418  ;;  %v1376_v12 = vmul.f32 0.35355338, %v951_v7  ;;  %v7009_v31 = vpop.f32.mrb[35].mxu1  ;;  %v1444_v15 = vsel %vm1413_vm5, %v9435_v3, -inf }
 0x48a   :  { %1445 = vmax.xlane.f32.xlu1 %v1444_v15 }
 0x48b   :  { %v9442_v20 = vadd.f32 %v1376_v12, %v9371_v29 }
 0x48c   :  { %v1143_v21 = vpop.f32.mrb[36].mxu1 }
 0x48d   :  { %v1247_v19 = vpop.f32.mrb[24].mxu0  ;;  %v9444_v24 = vpop.xlane.xlu0 %1421  ;;  %v1380_v32 = vmul.f32 0.35355338, %v1143_v21  ;;  %v1447_v41 = vsel %vm1413_vm5, %v9442_v20, -inf }
 0x48e   :  { %v1383_v26 = vmul.f32 0.35355338, %v1247_v19  ;;  %v7033_v30 = vpop.f32.mrb[37].mxu1  ;;  %v7048_v34 = vpop.f32.mrb[25].mxu0  ;;  %1448 = vmax.xlane.f32.xlu1 %v1447_v41  ;;  %v1373_v19 = vmul.f32 0.35355338, %v847_v45 }
 0x48f   :  { %v9449_v35 = vadd.f32 %v1380_v32, %v9371_v29 }
 0x490   :  { %v1148_v48 = vpop.f32.mrb[38].mxu1  ;;  %v9452_v42 = vadd.f32 %v1383_v26, %v9371_v29  ;;  %v1435_v26 = vsel %vm1413_vm5, %v9460_v1, -inf }
 0x491   :  { %v1252_v49 = vpop.f32.mrb[26].mxu0  ;;  %v1452_v47 = vpop.xlane.xlu0 %1451  ;;  %v1381_v51 = vmul.f32 0.35355338, %v1148_v48  ;;  %v1459_v54 = vsel %vm1413_vm5, %v9449_v35, -inf }
 0x492   :  { %v1384_v55 = vmul.f32 0.35355338, %v1252_v49  ;;  %v1498_v40 = vsub.f32 %v9389_v57, %v1452_v47  ;;  %v7036_v56 = vpop.f32.mrb[39].mxu1  ;;  %v7051_v60 = vpop.f32.mrb[27].mxu0  ;;  %v1468_v63 = vsel %vm1413_vm5, %v9452_v42, -inf  ;;  %1460 = vmax.xlane.f32.xlu1 %v1459_v54  ;;  %v9480_v54 = vadd.f32 %v1373_v19, %v9371_v29 }
 0x493   :  { %1469 = vmax.xlane.f32.xlu0 %v1468_v63  ;;  %v9463_v7 = vadd.f32 %v1381_v51, %v9371_v29 }
 0x494   :  { %v1534_v12 = vmul.f32 1.442695, %v1498_v40  ;;  %v1153_v31 = vpop.f32.mrb[40].mxu1  ;;  %v9470_v9 = vadd.f32 %v1384_v55, %v9371_v29 }
 0x495   :  { %v1257_v15 = vpop.f32.mrb[28].mxu0  ;;  %v1382_v21 = vmul.f32 0.35355338, %v1153_v31  ;;  %v1462_v57 = vsel %vm1413_vm5, %v9463_v7, -inf  ;;  %v7039_v32 = vpop.f32.mrb[41].mxu1 }
 0x496   :  { %v7054_v41 = vpop.f32.mrb[29].mxu0  ;;  %1463 = vmax.xlane.f32.xlu1 %v1462_v57  ;;  %8411 = vpow2.f32 %v1534_v12  ;;  %v1385_v47 = vmul.f32 0.35355338, %v1257_v15  ;;  %v1471_v51 = vsel %vm1413_vm5, %v9470_v9, -inf  ;;  %v1438_v12 = vsel %vm1413_vm5, %v9480_v54, -inf }
 0x497   :  { %1436 = vmax.xlane.f32.xlu0 %v1435_v26  ;;  %v9473_v30 = vadd.f32 %v1382_v21, %v9371_v29 }
 0x498   :  { %v1351_v34 = vpop.f32.mrb[42].mxu1  ;;  %v9490_v31 = vadd.f32 %v1385_v47, %v9371_v29 }
 0x499   :  { %v1386_v48 = vmul.f32 0.35355338, %v1351_v34  ;;  %v7063_v49 = vpop.f32.mrb[43].mxu1  ;;  %v1465_v45 = vsel %vm1413_vm5, %v9473_v30, -inf }
 0x49a   :  { %1466 = vmax.xlane.f32.xlu1 %v1465_v45  ;;  %v1474_v26 = vsel %vm1413_vm5, %v9490_v31, -inf  ;;  %v1486_v45 = vsub.f32 %v9374_v36, %v9430_v59 }
 0x49b   :  { %1472 = vmax.xlane.f32.xlu0 %v1471_v51  ;;  %v9483_v55 = vadd.f32 %v1386_v48, %v9371_v29  ;;  %v1487_v51 = vsub.f32 %v9379_v43, %v9437_v11 }
 0x49c   :  { %v1356_v40 = vpop.f32.mrb[44].mxu1  ;;  %v1510_v47 = vmul.f32 1.442695, %v1486_v45 }
 0x49d   :  { %v1387_v56 = vmul.f32 0.35355338, %v1356_v40  ;;  %v7066_v60 = vpop.f32.mrb[45].mxu1  ;;  %v1477_v63 = vsel %vm1413_vm5, %v9483_v55, -inf  ;;  %v1455_v40 = vpop.xlane.xlu0 %1454 }
 0x49e   :  { %1478 = vmax.xlane.f32.xlu1 %v1477_v63  ;;  %8413 = vpow2.f32 %v1510_v47  ;;  %v1488_v60 = vsub.f32 %v9384_v50, %v9444_v24 }
 0x49f   :  { %1439 = vmax.xlane.f32.xlu0 %v1438_v12  ;;  %v9493_v15 = vadd.f32 %v1387_v56, %v9371_v29  ;;  %v1512_v56 = vmul.f32 1.442695, %v1487_v51  ;;  %v1499_v12 = vsub.f32 %v9394_v62, %v1455_v40 }
 0x4a0   :  { %v1361_v21 = vpop.f32.mrb[46].mxu1  ;;  %v9497_v41 = vpop.eup %8411  ;;  %v1514_v63 = vmul.f32 1.442695, %v1488_v60 }
 0x4a1   :  { %v1388_v57 = vmul.f32 0.35355338, %v1361_v21  ;;  %v7069_v19 = vpop.f32.mrb[47].mxu1  ;;  %v1480_v32 = vsel %vm1413_vm5, %v9493_v15, -inf  ;;  %v1594_v34 = vsel %vm1413_vm5, %v9497_v41, 0.0  ;;  %8415 = vpow2.f32 %v1512_v56  ;;  %v1458_v21 = vpop.xlane.xlu0 %1457 }
 0x4a2   :  { %1481 = vmax.xlane.f32.xlu1 %v1480_v32  ;;  %8417 = vpow2.f32 %v1514_v63  ;;  %v1500_v19 = vsub.f32 %v9399_v8, %v1458_v21 }
 0x4a3   :  { %1475 = vmax.xlane.f32.xlu0 %v1474_v26  ;;  %v9504_v48 = vadd.f32 %v1388_v57, %v9371_v29  ;;  %v1536_v57 = vmul.f32 1.442695, %v1499_v12 }
 0x4a4   :  { %v1538_v59 = vmul.f32 1.442695, %v1500_v19 }
 0x4a5   :  { %v1483_v49 = vsel %vm1413_vm5, %v9504_v48, -inf  ;;  %8419 = vpow2.f32 %v1536_v57 }
 0x4a6   :  { %1595 = vadd.xlane.f32.xlu1 %v1594_v34  ;;  %8421 = vpow2.f32 %v1538_v59 }
 0x4a8   :  { %v9520_v36 = vpop.eup %8413 }
 0x4a9   :  { %v1558_v43 = vsel %vm1413_vm5, %v9520_v36, 0.0 }
 0x4aa   :  { %1484 = vmax.xlane.f32.xlu1 %v1483_v49  ;;  %v9540_v49 = vpop.permute.xlu1 %8230 }
 0x4ab   :  { %v9524_v11 = vpop.eup %8415 }
 0x4ac   :  { %v1561_v50 = vsel %vm1413_vm5, %v9524_v11, 0.0  ;;  %v9528_v62 = vpop.eup %8417 }
 0x4ad   :  { %v1564_v8 = vsel %vm1413_vm5, %v9528_v62, 0.0 }
 0x4ae   :  { %v9542_v45 = vpop.permute.xlu1 %1970 }
 0x4af   :  { %v9532_v24 = vpop.eup %8419 }
 0x4b0   :  { %v1597_v32 = vsel %vm1413_vm5, %v9532_v24, 0.0  ;;  %v9536_v26 = vpop.eup %8421 }
 0x4b1   :  { %v1600_v34 = vsel %vm1413_vm5, %v9536_v26, 0.0 }
 0x4b9   :  { %8235 = vrot.lane.b32.xlu0 %v9215_v4, %s8705_s12 }
 0x4bb   :  { %2207 = vrot.lane.b32.xlu1 %v9200_v61, %s8705_s12 }
 0x4d8   :  { %1559 = vadd.xlane.f32.xlu0 %v1558_v43 }
 0x4dc   :  { %1562 = vadd.xlane.f32.xlu0 %v1561_v50 }
 0x4e0   :  { %1565 = vadd.xlane.f32.xlu0 %v1564_v8 }
 0x4e4   :  { %1598 = vadd.xlane.f32.xlu0 %v1597_v32 }
 0x4e8   :  { %1601 = vadd.xlane.f32.xlu0 %v1600_v34 }
 0x4fb   :  { %v1425_v47 = vpop.xlane.xlu1 %1424 }
 0x4fc   :  { %v1489_v51 = vsub.f32 %v9404_v17, %v1425_v47 }
 0x4fe   :  { %v1516_v40 = vmul.f32 1.442695, %v1489_v51 }
 0x4ff   :  { %v1428_v56 = vpop.xlane.xlu0 %1427 }
 0x500   :  { %8423 = vpow2.f32 %v1516_v40  ;;  %v1490_v60 = vsub.f32 %v9409_v25, %v1428_v56 }
 0x502   :  { %v1518_v63 = vmul.f32 1.442695, %v1490_v60 }
 0x503   :  { %v1431_v12 = vpop.xlane.xlu1 %1430 }
 0x504   :  { %8425 = vpow2.f32 %v1518_v63  ;;  %v1491_v21 = vsub.f32 %v9414_v27, %v1431_v12 }
 0x506   :  { %v1520_v57 = vmul.f32 1.442695, %v1491_v21 }
 0x507   :  { %v1434_v19 = vpop.xlane.xlu0 %1433 }
 0x508   :  { %8427 = vpow2.f32 %v1520_v57  ;;  %v1492_v59 = vsub.f32 %v9419_v39, %v1434_v19 }
 0x50a   :  { %v9548_v43 = vpop.eup %8423  ;;  %v1522_v50 = vmul.f32 1.442695, %v1492_v59 }
 0x50b   :  { %v1567_v17 = vsel %vm1413_vm5, %v9548_v43, 0.0 }
 0x50c   :  { %8429 = vpow2.f32 %v1522_v50  ;;  %1568 = vadd.xlane.f32.xlu1 %v1567_v17 }
 0x50e   :  { %v9552_v8 = vpop.eup %8425 }
 0x50f   :  { %v1570_v25 = vsel %vm1413_vm5, %v9552_v8, 0.0 }
 0x510   :  { %1571 = vadd.xlane.f32.xlu1 %v1570_v25 }
 0x512   :  { %v9556_v27 = vpop.eup %8427 }
 0x513   :  { %v1443_v32 = vpop.xlane.xlu1 %1442  ;;  %v1573_v39 = vsel %vm1413_vm5, %v9556_v27, 0.0 }
 0x514   :  { %1574 = vadd.xlane.f32.xlu1 %v1573_v39  ;;  %v1495_v59 = vsub.f32 %v9428_v58, %v1443_v32 }
 0x516   :  { %v9560_v34 = vpop.eup %8429 }
 0x517   :  { %v1446_v47 = vpop.xlane.xlu1 %1445  ;;  %v1576_v51 = vsel %vm1413_vm5, %v9560_v34, 0.0 }
 0x518   :  { %1577 = vadd.xlane.f32.xlu0 %v1576_v51  ;;  %v1528_v51 = vmul.f32 1.442695, %v1495_v59  ;;  %v1496_v6 = vsub.f32 %v9435_v3, %v1446_v47 }
 0x51a   :  { %v1530_v58 = vmul.f32 1.442695, %v1496_v6 }
 0x51b   :  { %v1449_v40 = vpop.xlane.xlu1 %1448 }
 0x51f   :  { %v1461_v56 = vpop.xlane.xlu1 %1460 }
 0x520   :  { %v1470_v60 = vpop.xlane.xlu0 %1469 }
 0x521   :  { %v1504_v63 = vsub.f32 %v9452_v42, %v1470_v60 }
 0x523   :  { %v1546_v12 = vmul.f32 1.442695, %v1504_v63  ;;  %v1464_v21 = vpop.xlane.xlu1 %1463  ;;  %v1497_v63 = vsub.f32 %v9442_v20, %v1449_v40  ;;  %v1501_v20 = vsub.f32 %v9449_v35, %v1461_v56 }
 0x524   :  { %v1437_v57 = vpop.xlane.xlu0 %1436 }
 0x525   :  { %8431 = vpow2.f32 %v1546_v12  ;;  %v1493_v19 = vsub.f32 %v9460_v1, %v1437_v57 }
 0x527   :  { %v1524_v50 = vmul.f32 1.442695, %v1493_v19  ;;  %v1467_v17 = vpop.xlane.xlu1 %1466 }
 0x528   :  { %v1473_v25 = vpop.xlane.xlu0 %1472 }
 0x529   :  { %8433 = vpow2.f32 %v1524_v50  ;;  %v1505_v39 = vsub.f32 %v9470_v9, %v1473_v25  ;;  %v1502_v50 = vsub.f32 %v9463_v7, %v1464_v21 }
 0x52b   :  { %v1548_v13 = vmul.f32 1.442695, %v1505_v39  ;;  %v1479_v22 = vpop.xlane.xlu1 %1478 }
 0x52c   :  { %v1440_v42 = vpop.xlane.xlu0 %1439 }
 0x52d   :  { %8435 = vpow2.f32 %v1548_v13  ;;  %v1494_v60 = vsub.f32 %v9480_v54, %v1440_v42  ;;  %v1532_v13 = vmul.f32 1.442695, %v1497_v63  ;;  %v1503_v63 = vsub.f32 %v9473_v30, %v1467_v17 }
 0x52e   :  { %8437 = vpow2.f32 %v1528_v51 }
 0x52f   :  { %v9571_v1 = vpop.eup %8431  ;;  %v1526_v32 = vmul.f32 1.442695, %v1494_v60  ;;  %v1482_v12 = vpop.xlane.xlu1 %1481  ;;  %v1542_v60 = vmul.f32 1.442695, %v1502_v50 }
 0x530   :  { %v1476_v57 = vpop.xlane.xlu0 %1475  ;;  %v1508_v9 = vsub.f32 %v9493_v15, %v1482_v12  ;;  %v1612_v3 = vsel %vm1413_vm5, %v9571_v1, 0.0  ;;  %v1507_v12 = vsub.f32 %v9483_v55, %v1479_v22 }
 0x531   :  { %8439 = vpow2.f32 %v1526_v32  ;;  %v1506_v47 = vsub.f32 %v9490_v31, %v1476_v57  ;;  %1613 = vadd.xlane.f32.xlu0 %v1612_v3  ;;  %v1540_v31 = vmul.f32 1.442695, %v1501_v20  ;;  %v1544_v32 = vmul.f32 1.442695, %v1503_v63 }
 0x532   :  { %8441 = vpow2.f32 %v1530_v58  ;;  %v1554_v6 = vmul.f32 1.442695, %v1508_v9  ;;  %v1552_v3 = vmul.f32 1.442695, %v1507_v12 }
 0x533   :  { %v9577_v54 = vpop.eup %8433  ;;  %v1550_v40 = vmul.f32 1.442695, %v1506_v47  ;;  %v9580_v19 = vpop.xlane.xlu1 %1595 }
 0x534   :  { %v1579_v15 = vsel %vm1413_vm5, %v9577_v54, 0.0 }
 0x535   :  { %8443 = vpow2.f32 %v1550_v40  ;;  %1580 = vadd.xlane.f32.xlu0 %v1579_v15 }
 0x536   :  { %8445 = vpow2.f32 %v1532_v13 }
 0x537   :  { %v9584_v59 = vpop.eup %8435  ;;  %8447 = vpow2.f32 %v1554_v6  ;;  %v1485_v25 = vpop.xlane.xlu1 %1484 }
 0x538   :  { %v1509_v39 = vsub.f32 %v9504_v48, %v1485_v25  ;;  %v1615_v35 = vsel %vm1413_vm5, %v9584_v59, 0.0  ;;  %v9590_v56 = vpop.eup %8437  ;;  %8449 = vpow2.f32 %v1540_v31 }
 0x539   :  { %1616 = vadd.xlane.f32.xlu1 %v1615_v35  ;;  %v1585_v48 = vsel %vm1413_vm5, %v9590_v56, 0.0  ;;  %v9638_v35 = vpop.permute.xlu0 %8235 }
 0x53a   :  { %v1556_v51 = vmul.f32 1.442695, %v1509_v39 }
 0x53b   :  { %v9592_v42 = vpop.eup %8439 }
 0x53c   :  { %8451 = vpow2.f32 %v1556_v51  ;;  %v1582_v7 = vsel %vm1413_vm5, %v9592_v42, 0.0  ;;  %v9599_v21 = vpop.eup %8441 }
 0x53d   :  { %1583 = vadd.xlane.f32.xlu0 %v1582_v7  ;;  %1586 = vadd.xlane.f32.xlu1 %v1585_v48  ;;  %8453 = vpow2.f32 %v1542_v60  ;;  %v1588_v17 = vsel %vm1413_vm5, %v9599_v21, 0.0  ;;  %v8228_v7 = vunpack.i.h.bf16 %v9423_v44  ;;  %v8227_v48 = vunpack.i.l.bf16 %v9423_v44 }
 0x53e   :  { %8455 = vpow2.f32 %v1544_v32 }
 0x53f   :  { %v9601_v58 = vpop.eup %8443  ;;  %8457 = vpow2.f32 %v1552_v3 }
 0x540   :  { %v9604_v57 = vpop.eup %8445  ;;  %v1618_v30 = vsel %vm1413_vm5, %v9601_v58, 0.0 }
 0x541   :  { %v9610_v9 = vpop.eup %8447  ;;  %1619 = vadd.xlane.f32.xlu0 %v1618_v30  ;;  %1589 = vadd.xlane.f32.xlu1 %v1588_v17  ;;  %v1591_v22 = vsel %vm1413_vm5, %v9604_v57, 0.0  ;;  %v7852_v30 = vpack.c.bf16 %v8228_v7, %v8227_v48  ;;  %v11358_v17 = vmov 0.0  }
 0x542   :  { %v1624_v47 = vsel %vm1413_vm5, %v9610_v9, 0.0  ;;  %v9616_v55 = vpop.eup %8449 }
 0x543   :  { %v1603_v40 = vsel %vm1413_vm5, %v9616_v55, 0.0 }
 0x545   :  { %1625 = vadd.xlane.f32.xlu0 %v1624_v47  ;;  %1592 = vadd.xlane.f32.xlu1 %v1591_v22  ;;  %v11359_v47 = vmov 0.0|0.0   ;;  %v9663_v22 = vpop.permute.xlu1 %2207 }
 0x546   :  { %v9618_v13 = vpop.eup %8451 }
 0x547   :  { %v1627_v20 = vsel %vm1413_vm5, %v9618_v13, 0.0  ;;  %v9624_v6 = vpop.eup %8453 }
 0x548   :  { %v1606_v15 = vsel %vm1413_vm5, %v9624_v6, 0.0  ;;  %v9628_v31 = vpop.eup %8455 }
 0x549   :  { %1604 = vadd.xlane.f32.xlu1 %v1603_v40  ;;  %1628 = vadd.xlane.f32.xlu0 %v1627_v20  ;;  %v1609_v50 = vsel %vm1413_vm5, %v9628_v31, 0.0  ;;  %v9632_v25 = vpop.eup %8457 }
 0x54a   :  { %v1621_v39 = vsel %vm1413_vm5, %v9632_v25, 0.0 }
 0x54d   :  { %1607 = vadd.xlane.f32.xlu1 %v1606_v15 }
 0x551   :  { %1610 = vadd.xlane.f32.xlu1 %v1609_v50  ;;  %v8233_v50 = vunpack.i.h.bf16 %v9540_v49 }
 0x555   :  { %1622 = vadd.xlane.f32.xlu1 %v1621_v39 }
 0x55f   :  { %8240 = vrot.lane.b32.xlu0 %v9215_v4, %s8704_s11 }
 0x565   :  { %v1560_v51 = vpop.xlane.xlu0 %1559 }
 0x566   :  { %8459 = vrcp.f32 %v1560_v51  ;;  %8245 = vrot.lane.b32.xlu1 %v9215_v4, %s8706_s13 }
 0x569   :  { %v1563_v60 = vpop.xlane.xlu0 %1562 }
 0x56a   :  { %8461 = vrcp.f32 %v1563_v60  ;;  %2305 = vrot.lane.b32.xlu1 %v9200_v61, %s8704_s11 }
 0x56d   :  { %v1566_v63 = vpop.xlane.xlu0 %1565 }
 0x56e   :  { %8463 = vrcp.f32 %v1566_v63  ;;  %2403 = vrot.lane.b32.xlu1 %v9200_v61, %s8706_s13 }
 0x570   :  { %v8460_v32 = vpop.eup %8459 }
 0x571   :  { %v1654_v12 = vmul.f32 %v8460_v32, %v9520_v36  ;;  %v1599_v20 = vpop.xlane.xlu0 %1598 }
 0x573   :  { %7077 = vmatmul.mubr.msk.f32.vlgmr.msra.gmra.mrb[30].mxu0 %vm1413_vm5, %v1654_v12 }
 0x574   :  { %v8462_v4 = vpop.eup %8461  ;;  %7853 = vmatpush3.bf16.msra.mxu0 %v7852_v30  ;;  %7079 = vmatprep.mubr.msk.f32.mxu0 %vm8703_vm1, %v11358_v17 }
 0x575   :  { %7104 = vmatprep.subr.mxu0 %v11358_v17  ;;  %v1655_v3 = vmul.f32 %v8462_v4, %v9524_v11 }
 0x577   :  { %7080 = vmatmul.mubr.msk.f32.gmra.mrb[32].mxu0 %vm1413_vm5, %v1655_v3 }
 0x578   :  { %v8464_v44 = vpop.eup %8463  ;;  %7105 = vmatpush3.msra.mxu0 %v9425_v53  ;;  %7082 = vmatprep.mubr.msk.f32.mxu0 %vm8703_vm1, %v11358_v17  ;;  %v1602_v53 = vpop.xlane.xlu0 %1601 }
 0x579   :  { %v1656_v36 = vmul.f32 %v8464_v44, %v9528_v62  ;;  %7857 = vmatprep.subr.bf16.mxu0 %v11359_v47  ;;  %v8232_v62 = vunpack.i.l.bf16 %v9540_v49 }
 0x57b   :  { %7083 = vmatmul.mubr.msk.f32.gmra.mrb[34].mxu0 %vm1413_vm5, %v1656_v36  ;;  %v7855_v63 = vpack.c.bf16 %v8233_v50, %v8232_v62 }
 0x57c   :  { %7106 = vmatprep.mubr.msk.f32.mxu0 %vm8703_vm1, %v11358_v17 }
 0x599   :  { %v1569_v11 = vpop.xlane.xlu1 %1568 }
 0x59a   :  { %8465 = vrcp.f32 %v1569_v11  ;;  %v8238_v11 = vunpack.i.h.bf16 %v9638_v35 }
 0x59d   :  { %v1572_v40 = vpop.xlane.xlu1 %1571 }
 0x59e   :  { %8467 = vrcp.f32 %v1572_v40  ;;  %v8237_v40 = vunpack.i.l.bf16 %v9638_v35 }
 0x5a1   :  { %v1575_v15 = vpop.xlane.xlu1 %1574 }
 0x5a2   :  { %8469 = vrcp.f32 %v1575_v15 }
 0x5a4   :  { %v8466_v39 = vpop.eup %8465 }
 0x5a5   :  { %v1657_v51 = vmul.f32 %v8466_v39, %v9548_v43  ;;  %v1578_v60 = vpop.xlane.xlu0 %1577 }
 0x5a6   :  { %8471 = vrcp.f32 %v1578_v60 }
 0x5a7   :  { %7092 = vmatmul.mubr.msk.f32.vlgmr.msra.gmra.mrb[48].mxu1 %vm1413_vm5, %v1657_v51  ;;  %v7861_v51 = vpack.c.bf16 %v8238_v11, %v8237_v40 }
 0x5a8   :  { %v8468_v7 = vpop.eup %8467  ;;  %7856 = vmatpush3.bf16.msra.mxu1 %v7855_v63  ;;  %7094 = vmatprep.mubr.msk.f32.mxu1 %vm8703_vm1, %v11358_v17 }
 0x5a9   :  { %7119 = vmatprep.subr.mxu1 %v11358_v17  ;;  %v1658_v48 = vmul.f32 %v8468_v7, %v9552_v8 }
 0x5ab   :  { %7095 = vmatmul.mubr.msk.f32.gmra.mrb[50].mxu1 %vm1413_vm5, %v1658_v48 }
 0x5ac   :  { %v8470_v49 = vpop.eup %8469  ;;  %7120 = vmatpush3.msra.mxu1 %v9542_v45  ;;  %7097 = vmatprep.mubr.msk.f32.mxu1 %vm8703_vm1, %v11358_v17  ;;  %v11360_v45 = vpack.c.bf16 %v9203_v2, %v9185_v46 }
 0x5ad   :  { %v1659_v43 = vmul.f32 %v8470_v49, %v9556_v27  ;;  %7860 = vmatprep.subr.bf16.mxu1 %v11359_v47 }
 0x5af   :  { %7098 = vmatmul.mubr.msk.f32.gmra.mrb[52].mxu1 %vm1413_vm5, %v1659_v43 }
 0x5b0   :  { %v8472_v32 = vpop.eup %8471  ;;  %7121 = vmatprep.mubr.msk.f32.mxu1 %vm8703_vm1, %v11358_v17 }
 0x5b1   :  { %v1660_v8 = vmul.f32 %v8472_v32, %v9560_v34 }
 0x5b3   :  { %7107 = vmatmul.mubr.msk.f32.vlgmr.msra.gmra.mrb[36].mxu0 %vm1413_vm5, %v1660_v8 }
 0x5b4   :  { %7859 = vmatpush3.bf16.msra.mxu0 %v11360_v45  ;;  %7109 = vmatprep.mubr.msk.f32.mxu0 %vm8703_vm1, %v11358_v17 }
 0x5b5   :  { %7134 = vmatprep.subr.mxu0 %v11358_v17 }
 0x5b8   :  { %7135 = vmatpush3.msra.mxu0 %v9200_v61 }
 0x5b9   :  { %7863 = vmatprep.subr.bf16.mxu0 %v11359_v47 }
 0x5be   :  { %v1614_v27 = vpop.xlane.xlu0 %1613 }
 0x5c2   :  { %v1581_v12 = vpop.xlane.xlu0 %1580 }
 0x5c3   :  { %8473 = vrcp.f32 %v1581_v12 }
 0x5c6   :  { %v1617_v30 = vpop.xlane.xlu1 %1616 }
 0x5ca   :  { %v1584_v34 = vpop.xlane.xlu0 %1583  ;;  %v1587_v4 = vpop.xlane.xlu1 %1586 }
 0x5cb   :  { %8475 = vrcp.f32 %v1584_v34 }
 0x5cc   :  { %8477 = vrcp.f32 %v1587_v4 }
 0x5cd   :  { %v8474_v3 = vpop.eup %8473  ;;  %8479 = vrcp.f32 %v9580_v19 }
 0x5ce   :  { %v9693_v46 = vpop.xlane.xlu0 %1619  ;;  %v1590_v2 = vpop.xlane.xlu1 %1589  ;;  %v1661_v44 = vmul.f32 %v8474_v3, %v9577_v54 }
 0x5cf   :  { %8481 = vrcp.f32 %v1590_v2 }
 0x5d0   :  { %7110 = vmatmul.mubr.msk.f32.gmra.mrb[38].mxu0 %vm1413_vm5, %v1661_v44  ;;  %8483 = vrcp.f32 %v1599_v20 }
 0x5d1   :  { %7112 = vmatprep.mubr.msk.f32.mxu0 %vm8703_vm1, %v11358_v17 }
 0x5d2   :  { %v1626_v61 = vpop.xlane.xlu0 %1625  ;;  %v1593_v36 = vpop.xlane.xlu1 %1592 }
 0x5d3   :  { %8485 = vrcp.f32 %v1593_v36 }
 0x5d4   :  { %8487 = vrcp.f32 %v1602_v53 }
 0x5d5   :  { %v8476_v19 = vpop.eup %8475 }
 0x5d6   :  { %v8478_v15 = vpop.eup %8477  ;;  %v9701_v50 = vpop.xlane.xlu0 %1628  ;;  %v1662_v62 = vmul.f32 %v8476_v19, %v9592_v42 }
 0x5d7   :  { %v1605_v54 = vpop.xlane.xlu1 %1604  ;;  %v8480_v39 = vpop.eup %8479  ;;  %v1663_v20 = vmul.f32 %v8478_v15, %v9590_v56 }
 0x5d8   :  { %8489 = vrcp.f32 %v1605_v54  ;;  %7113 = vmatmul.mubr.msk.f32.gmra.mrb[40].mxu0 %vm1413_vm5, %v1662_v62  ;;  %v1666_v53 = vmul.f32 %v8480_v39, %v9497_v41 }
 0x5d9   :  { %7122 = vmatmul.mubr.msk.f32.vlgmr.msra.gmra.mrb[54].mxu1 %vm1413_vm5, %v1663_v20  ;;  %7136 = vmatprep.mubr.msk.f32.mxu0 %vm8703_vm1, %v11358_v17  ;;  %v8482_v35 = vpop.eup %8481  ;;  %v2542_v20 = vld [vmem:[%s11347_s5] sm:$0xff] }
 0x5da   :  { %7862 = vmatpush3.bf16.msra.mxu1 %v7861_v51  ;;  %v8241_v60 = vpop.permute.xlu0 %8240  ;;  %7124 = vmatprep.mubr.msk.f32.mxu1 %vm8703_vm1, %v11358_v17  ;;  %v8484_v42 = vpop.eup %8483  ;;  %v1664_v48 = vmul.f32 %v8482_v35, %v9599_v21  ;;  %v2543_v51 = vld [vmem:[%s11347_s5 + $0x8] sm:$0xff] }
 0x5db   :  { %v1608_v63 = vpop.xlane.xlu1 %1607  ;;  %v8243_v56 = vunpack.i.h.bf16 %v8241_v60  ;;  %v8242_v7 = vunpack.i.l.bf16 %v8241_v60  ;;  %7149 = vmatprep.subr.mxu1 %v11358_v17  ;;  %v1667_v32 = vmul.f32 %v8484_v42, %v9532_v24  ;;  %v7869_v35 = vpack.c.bf16 %v2543_v51, %v2542_v20  ;;  %v2547_v42 = vld [vmem:[%s11347_s5 + $0x28] sm:$0xff] }
 0x5dc   :  { %8491 = vrcp.f32 %v1608_v63  ;;  %7137 = vmatmul.mubr.msk.f32.vlgmr.msra.gmra.mrb[42].mxu0 %vm1413_vm5, %v1666_v53  ;;  %v2545_v53 = vld [vmem:[%s11347_s5 + $0x18] sm:$0xff]  ;;  %v2546_v63 = vld [vmem:[%s11347_s5 + $0x20] sm:$0xff] }
 0x5dd   :  { %8493 = vrcp.f32 %v1614_v27  ;;  %v7864_v49 = vpack.c.bf16 %v8243_v56, %v8242_v7  ;;  %7125 = vmatmul.mubr.msk.f32.gmra.mrb[56].mxu1 %vm1413_vm5, %v1664_v48  ;;  %7139 = vmatprep.mubr.msk.f32.mxu0 %vm8703_vm1, %v11358_v17  ;;  %v8486_v41 = vpop.eup %8485  ;;  %v7877_v48 = vpack.c.bf16 %v2547_v42, %v2546_v63 }
 0x5de   :  { %7150 = vmatpush3.msra.mxu1 %v9663_v22  ;;  %7127 = vmatprep.mubr.msk.f32.mxu1 %vm8703_vm1, %v11358_v17  ;;  %v8488_v8 = vpop.eup %8487  ;;  %v1665_v21 = vmul.f32 %v8486_v41, %v9604_v57  ;;  %v2549_v41 = vld [vmem:[%s11347_s5 + $0x38] sm:$0xff] }
 0x5df   :  { %v1611_v43 = vpop.xlane.xlu1 %1610  ;;  %7865 = vmatpush3.bf16.msra.mxu0 %v7864_v49  ;;  %7866 = vmatprep.subr.bf16.mxu1 %v11359_v47  ;;  %v1668_v24 = vmul.f32 %v8488_v8, %v9536_v26  ;;  %v2548_v49 = vld [vmem:[%s11347_s5 + $0x30] sm:$0xff] }
 0x5e0   :  { %8495 = vrcp.f32 %v1611_v43  ;;  %7140 = vmatmul.mubr.msk.f32.gmra.mrb[44].mxu0 %vm1413_vm5, %v1667_v32  ;;  %7164 = vmatprep.subr.mxu0 %v11358_v17 }
 0x5e1   :  { %8497 = vrcp.f32 %v1617_v30  ;;  %7128 = vmatmul.mubr.msk.f32.gmra.mrb[58].mxu1 %vm1413_vm5, %v1665_v21  ;;  %7142 = vmatprep.mubr.msk.f32.mxu0 %vm8703_vm1, %v11358_v17  ;;  %v7881_v21 = vpack.c.bf16 %v2549_v41, %v2548_v49 }
 0x5e2   :  { %v8490_v22 = vpop.eup %8489  ;;  %7151 = vmatprep.mubr.msk.f32.mxu1 %vm8703_vm1, %v11358_v17 }
 0x5e3   :  { %v1623_v45 = vpop.xlane.xlu1 %1622  ;;  %v1669_v57 = vmul.f32 %v8490_v22, %v9616_v55 }
 0x5e4   :  { %8499 = vrcp.f32 %v1623_v45  ;;  %7143 = vmatmul.mubr.msk.f32.gmra.mrb[46].mxu0 %vm1413_vm5, %v1668_v24 }
 0x5e5   :  { %8501 = vrcp.f32 %v9693_v46  ;;  %7152 = vmatmul.mubr.msk.f32.vlgmr.msra.gmra.mrb[60].mxu1 %vm1413_vm5, %v1669_v57  ;;  %7166 = vmatprep.mubr.msk.f32.mxu0 %vm8703_vm1, %v11358_v17 }
 0x5e6   :  { %v8492_v27 = vpop.eup %8491  ;;  %8503 = vrcp.f32 %v1626_v61  ;;  %7154 = vmatprep.mubr.msk.f32.mxu1 %vm8703_vm1, %v11358_v17 }
 0x5e7   :  { %v8246_v12 = vpop.permute.xlu1 %8245  ;;  %v1670_v26 = vmul.f32 %v8492_v27, %v9624_v6  ;;  %v8494_v30 = vpop.eup %8493  ;;  %8505 = vrcp.f32 %v9701_v50  ;;  %v2550_v27 = vld [vmem:[%s11347_s5 + $0x40] sm:$0xff] }
 0x5e8   :  { %v8248_v55 = vunpack.i.h.bf16 %v8246_v12  ;;  %v8247_v34 = vunpack.i.l.bf16 %v8246_v12  ;;  %v1672_v46 = vmul.f32 %v8494_v30, %v9571_v1  ;;  %v2551_v12 = vld [vmem:[%s11347_s5 + $0x48] sm:$0xff]  ;;  %v2552_v30 = vld [vmem:[%s11347_s5 + $0x50] sm:$0xff] }
 0x5e9   :  { %7155 = vmatmul.mubr.msk.f32.gmra.mrb[62].mxu1 %vm1413_vm5, %v1670_v26  ;;  %v7885_v26 = vpack.c.bf16 %v2551_v12, %v2550_v27 }
 0x5ea   :  { %v8496_v4 = vpop.eup %8495  ;;  %v7867_v3 = vpack.c.bf16 %v8248_v55, %v8247_v34  ;;  %7157 = vmatprep.mubr.msk.f32.mxu1 %vm8703_vm1, %v11358_v17  ;;  %v2553_v55 = vld [vmem:[%s11347_s5 + $0x58] sm:$0xff] }
 0x5eb   :  { %v2306_v2 = vpop.permute.xlu1 %2305  ;;  %v1671_v44 = vmul.f32 %v8496_v4, %v9628_v31  ;;  %v8498_v61 = vpop.eup %8497  ;;  %v7889_v34 = vpack.c.bf16 %v2553_v55, %v2552_v30  ;;  %v2554_v4 = vld [vmem:[%s11347_s5 + $0x60] sm:$0xff] }
 0x5ec   :  { %7165 = vmatpush3.msra.mxu0 %v2306_v2  ;;  %7868 = vmatpush3.bf16.msra.mxu1 %v7867_v3  ;;  %v1673_v31 = vmul.f32 %v8498_v61, %v9584_v59  ;;  %v2555_v3 = vld [vmem:[%s11347_s5 + $0x68] sm:$0xff] }
 0x5ed   :  { %7167 = vmatmul.mubr.msk.f32.vlgmr.msra.gmra.mrb[48].mxu0 %vm1413_vm5, %v1672_v46  ;;  %7179 = vmatprep.subr.mxu1 %v11358_v17  ;;  %v7893_v46 = vpack.c.bf16 %v2555_v3, %v2554_v4 }
 0x5ee   :  { %v8500_v6 = vpop.eup %8499  ;;  %7158 = vmatmul.mubr.msk.f32.gmra.mrb[64].mxu1 %vm1413_vm5, %v1671_v44  ;;  %7169 = vmatprep.mubr.msk.f32.mxu0 %vm8703_vm1, %v11358_v17 }
 0x5ef   :  { %v1675_v1 = vmul.f32 %v8500_v6, %v9632_v25  ;;  %v2404_v36 = vpop.permute.xlu1 %2403  ;;  %7181 = vmatprep.mubr.msk.f32.mxu1 %vm8703_vm1, %v11358_v17  ;;  %v8502_v11 = vpop.eup %8501  ;;  %7870 = vmatprep.subr.bf16.mxu0 %v7869_v35  ;;  %v2556_v6 = vld [vmem:[%s11347_s5 + $0x70] sm:$0xff] }
 0x5f0   :  { %7180 = vmatpush3.msra.mxu1 %v2404_v36  ;;  %v8504_v40 = vpop.eup %8503  ;;  %v1674_v25 = vmul.f32 %v8502_v11, %v9601_v58  ;;  %7872 = vmatpush3.bf16.msra.mxu0 %v7869_v35 }
 0x5f1   :  { %7170 = vmatmul.mubr.msk.f32.gmra.mrb[50].mxu0 %vm1413_vm5, %v1673_v31  ;;  %v1676_v19 = vmul.f32 %v8504_v40, %v9610_v9  ;;  %v8506_v15 = vpop.eup %8505 }
 0x5f2   :  { %7182 = vmatmul.mubr.msk.f32.vlgmr.msra.gmra.mrb[66].mxu1 %vm1413_vm5, %v1675_v1  ;;  %7172 = vmatprep.mubr.msk.f32.mxu0 %vm8703_vm1, %v11358_v17  ;;  %v1677_v59 = vmul.f32 %v8506_v15, %v9618_v13  ;;  %v2544_v13 = vld [vmem:[%s11347_s5 + $0x10] sm:$0xff]  ;;  %v2557_v1 = vld [vmem:[%s11347_s5 + $0x78] sm:$0xff] }
 0x5f3   :  { %7184 = vmatprep.mubr.msk.f32.mxu1 %vm8703_vm1, %v11358_v17  ;;  %v7873_v60 = vpack.c.bf16 %v2545_v53, %v2544_v13  ;;  %v7897_v36 = vpack.c.bf16 %v2557_v1, %v2556_v6 }
 0x5f5   :  { %7173 = vmatmul.mubr.msk.f32.gmra.mrb[52].mxu0 %vm1413_vm5, %v1674_v25  ;;  %7874 = vmatprep.subr.bf16.mxu0 %v7873_v60 }
 0x5f6   :  { %7185 = vmatmul.mubr.msk.f32.gmra.mrb[68].mxu1 %vm1413_vm5, %v1676_v19  ;;  %7876 = vmatpush3.bf16.msra.mxu0 %v7873_v60 }
 0x5f7   :  { %7187 = vmatprep.mubr.msk.f32.mxu1 %vm8703_vm1, %v11358_v17  ;;  %7878 = vmatprep.subr.bf16.mxu0 %v7877_v48 }
 0x5fa   :  { %7188 = vmatmul.mubr.msk.f32.gmra.mrb[70].mxu1 %vm1413_vm5, %v1677_v59  ;;  %7880 = vmatpush3.bf16.msra.mxu0 %v7877_v48 }
 0x5fb   :  { %7882 = vmatprep.subr.bf16.mxu0 %v7881_v21 }
 0x5fe   :  { %7884 = vmatpush3.bf16.msra.mxu0 %v7881_v21 }
 0x5ff   :  { %7886 = vmatprep.subr.bf16.mxu0 %v7885_v26 }
 0x602   :  { %7888 = vmatpush3.bf16.msra.mxu0 %v7885_v26 }
 0x603   :  { %7890 = vmatprep.subr.bf16.mxu0 %v7889_v34 }
 0x606   :  { %7892 = vmatpush3.bf16.msra.mxu0 %v7889_v34 }
 0x607   :  { %7894 = vmatprep.subr.bf16.mxu0 %v7893_v46 }
 0x60a   :  { %7896 = vmatpush3.bf16.msra.mxu0 %v7893_v46 }
 0x60b   :  { %7898 = vmatprep.subr.bf16.mxu0 %v7897_v36 }
 0x60e   :  { %7900 = vmatpush3.bf16.msra.mxu0 %v7897_v36 }
 0x646   :  { %v9770_v50 = vpop.f32.mrb[30].mxu0 }
 0x647   :  { %v7078_v54 = vpop.f32.mrb[31].mxu0 }
 0x64a   :  { %v9772_v62 = vpop.f32.mrb[32].mxu0 }
 0x64b   :  { %v7081_v58 = vpop.f32.mrb[33].mxu0 }
 0x64e   :  { %v9774_v39 = vpop.f32.mrb[34].mxu0 }
 0x64f   :  { %v7084_v9 = vpop.f32.mrb[35].mxu0 }
 0x67a   :  { %v1854_v56 = vpop.f32.mrb[48].mxu1 }
 0x67b   :  { %v7093_v7 = vpop.f32.mrb[49].mxu1 }
 0x67e   :  { %v1859_v43 = vpop.f32.mrb[50].mxu1 }
 0x67f   :  { %v8249_v32 = vpack.i.bf16 %v1859_v43, %v1854_v56  ;;  %v7096_v8 = vpop.f32.mrb[51].mxu1 }
 0x681   :  { %8250 = vrot.lane.b32.xlu0 %v8249_v32, %s8706_s13 }
 0x682   :  { %v1864_v22 = vpop.f32.mrb[52].mxu1 }
 0x683   :  { %v7099_v45 = vpop.f32.mrb[53].mxu1 }
 0x686   :  { %v1952_v24 = vpop.f32.mrb[36].mxu0 }
 0x687   :  { %v7108_v57 = vpop.f32.mrb[37].mxu0 }
 0x6a3   :  { %v1957_v2 = vpop.f32.mrb[38].mxu0 }
 0x6a4   :  { %v8254_v44 = vpack.i.bf16 %v1957_v2, %v1952_v24  ;;  %v7111_v61 = vpop.f32.mrb[39].mxu0 }
 0x6a6   :  { %8255 = vrot.lane.b32.xlu1 %v8254_v44, %s8704_s11 }
 0x6ab   :  { %v1962_v31 = vpop.f32.mrb[40].mxu0 }
 0x6ac   :  { %v2050_v11 = vpop.f32.mrb[54].mxu1  ;;  %v7114_v40 = vpop.f32.mrb[41].mxu0 }
 0x6ad   :  { %v7123_v25 = vpop.f32.mrb[55].mxu1 }
 0x6af   :  { %v9826_v19 = vpop.f32.mrb[42].mxu0 }
 0x6b0   :  { %v2055_v15 = vpop.f32.mrb[56].mxu1  ;;  %v7138_v59 = vpop.f32.mrb[43].mxu0 }
 0x6b1   :  { %v8259_v54 = vpack.i.bf16 %v2055_v15, %v2050_v11  ;;  %v7126_v58 = vpop.f32.mrb[57].mxu1 }
 0x6b3   :  { %8260 = vrot.lane.b32.xlu0 %v8259_v54, %s8705_s12  ;;  %v9829_v9 = vpop.f32.mrb[44].mxu0 }
 0x6b4   :  { %v2060_v20 = vpop.f32.mrb[58].mxu1  ;;  %v7141_v51 = vpop.f32.mrb[45].mxu0 }
 0x6b5   :  { %v7129_v13 = vpop.f32.mrb[59].mxu1 }
 0x6b7   :  { %v9831_v35 = vpop.f32.mrb[46].mxu0 }
 0x6b8   :  { %v2287_v53 = vpop.f32.mrb[60].mxu1  ;;  %v7144_v60 = vpop.f32.mrb[47].mxu0 }
 0x6b9   :  { %v8264_v63 = vpack.i.bf16 %v2287_v53, %v1864_v22  ;;  %v7153_v42 = vpop.f32.mrb[61].mxu1 }
 0x6bb   :  { %8265 = vrot.lane.b32.xlu1 %v8264_v63, %s8706_s13 }
 0x6bc   :  { %v2292_v56 = vpop.f32.mrb[62].mxu1 }
 0x6bd   :  { %v7156_v7 = vpop.f32.mrb[63].mxu1 }
 0x6c0   :  { %v2385_v48 = vpop.f32.mrb[48].mxu0 }
 0x6c1   :  { %v2297_v49 = vpop.f32.mrb[64].mxu1  ;;  %v8269_v41 = vpack.i.bf16 %v2385_v48, %v1962_v31  ;;  %v7168_v43 = vpop.f32.mrb[49].mxu0 }
 0x6c2   :  { %v8279_v32 = vpack.i.bf16 %v2297_v49, %v2292_v56  ;;  %v7159_v8 = vpop.f32.mrb[65].mxu1 }
 0x6c3   :  { %8270 = vrot.lane.b32.xlu0 %v8269_v41, %s8704_s11 }
 0x6c4   :  { %v2390_v21 = vpop.f32.mrb[50].mxu0 }
 0x6c5   :  { %v2483_v45 = vpop.f32.mrb[66].mxu1  ;;  %v7171_v24 = vpop.f32.mrb[51].mxu0 }
 0x6c6   :  { %v8274_v57 = vpack.i.bf16 %v2483_v45, %v2060_v20  ;;  %v7183_v27 = vpop.f32.mrb[67].mxu1 }
 0x6c7   :  { %8280 = vrot.lane.b32.xlu0 %v8279_v32, %s8706_s13 }
 0x6c8   :  { %8275 = vrot.lane.b32.xlu1 %v8274_v57, %s8705_s12  ;;  %v2395_v22 = vpop.f32.mrb[52].mxu0 }
 0x6c9   :  { %v8284_v12 = vpack.i.bf16 %v2395_v22, %v2390_v21  ;;  %v2488_v26 = vpop.f32.mrb[68].mxu1  ;;  %v7174_v30 = vpop.f32.mrb[53].mxu0 }
 0x6ca   :  { %v7186_v55 = vpop.f32.mrb[69].mxu1 }
 0x6cc   :  { %8285 = vrot.lane.b32.xlu1 %v8284_v12, %s8704_s11 }
 0x6cd   :  { %v2493_v34 = vpop.f32.mrb[70].mxu1 }
 0x6ce   :  { %v8289_v4 = vpack.i.bf16 %v2493_v34, %v2488_v26  ;;  %v7189_v3 = vpop.f32.mrb[71].mxu1 }
 0x6cf   :  { %v9867_v3 = vld [vmem:[%s11345_s8] sm:$0xff] }
 0x6d0   :  { %8290 = vrot.lane.b32.xlu0 %v8289_v4, %s8705_s12  ;;  %v2661_v4 = vsub.s32 4, %v9112_v28 }
 0x6f3   :  { %v8251_v46 = vpop.permute.xlu0 %8250 }
 0x6f4   :  { %v8253_v44 = vunpack.i.h.bf16 %v8251_v46  ;;  %v8252_v61 = vunpack.i.l.bf16 %v8251_v46 }
 0x6f6   :  { %v2101_v31 = vsel %vm544_vm2, %v9772_v62, %v8253_v44  ;;  %v2100_v25 = vsel %vm544_vm2, %v9770_v50, %v8252_v61 }
 0x718   :  { %v8256_v2 = vpop.permute.xlu1 %8255 }
 0x719   :  { %v8258_v6 = vunpack.i.h.bf16 %v8256_v2  ;;  %v8257_v1 = vunpack.i.l.bf16 %v8256_v2 }
 0x71b   :  { %v2104_v15 = vsel %vm2103_vm6, %v2100_v25, %v8257_v1  ;;  %v2105_v59 = vsel %vm2103_vm6, %v2101_v31, %v8258_v6 }
 0x725   :  { %v8261_v36 = vpop.permute.xlu0 %8260 }
 0x726   :  { %v8263_v11 = vunpack.i.h.bf16 %v8261_v36  ;;  %v8262_v40 = vunpack.i.l.bf16 %v8261_v36 }
 0x728   :  { %v2108_v54 = vsel %vm2107_vm7, %v2104_v15, %v8262_v40  ;;  %v2109_v58 = vsel %vm2107_vm7, %v2105_v59, %v8263_v11 }
 0x729   :  { %7222 = vmatprep.mubr.f32.mxu0 %v2108_v54 }
 0x72a   :  { %7223 = vmatmul.mubr.f32.vlgmr.msra.gmra.mrb[54].mxu0 %v2109_v58 }
 0x72d   :  { %v8266_v20 = vpop.permute.xlu1 %8265 }
 0x72e   :  { %v8268_v13 = vunpack.i.h.bf16 %v8266_v20  ;;  %v8267_v53 = vunpack.i.l.bf16 %v8266_v20  ;;  %v2764_v20 = vld [vmem:[%s11348_s6 + $0x18] sm:$0xff] }
 0x730   :  { %v2102_v50 = vsel %vm544_vm2, %v9774_v39, %v8267_v53  ;;  %v2533_v7 = vsel %vm544_vm2, %v9826_v19, %v8268_v13  ;;  %v2765_v13 = vld [vmem:[%s11348_s6 + $0x20] sm:$0xff]  ;;  %v2766_v53 = vld [vmem:[%s11348_s6 + $0x28] sm:$0xff] }
 0x735   :  { %v8271_v51 = vpop.permute.xlu0 %8270 }
 0x736   :  { %v8273_v62 = vunpack.i.h.bf16 %v8271_v51  ;;  %v8272_v60 = vunpack.i.l.bf16 %v8271_v51 }
 0x738   :  { %v2106_v49 = vsel %vm2103_vm6, %v2102_v50, %v8272_v60  ;;  %v2536_v41 = vsel %vm2103_vm6, %v2533_v7, %v8273_v62  ;;  %v7909_v62 = vpack.c.bf16 %v2766_v53, %v2765_v13 }
 0x739   :  { %v8281_v48 = vpop.permute.xlu0 %8280 }
 0x73a   :  { %v8276_v63 = vpop.permute.xlu1 %8275  ;;  %v8283_v21 = vunpack.i.h.bf16 %v8281_v48  ;;  %v8282_v45 = vunpack.i.l.bf16 %v8281_v48 }
 0x73b   :  { %v8278_v42 = vunpack.i.h.bf16 %v8276_v63  ;;  %v8277_v56 = vunpack.i.l.bf16 %v8276_v63 }
 0x73c   :  { %v2534_v19 = vsel %vm544_vm2, %v9829_v9, %v8282_v45  ;;  %v2535_v12 = vsel %vm544_vm2, %v9831_v35, %v8283_v21  ;;  %v2662_v9 = vrot.slane %v9867_v3, %v2661_v4  ;;  %v2767_v45 = vld [vmem:[%s11348_s6 + $0x30] sm:$0xff] }
 0x73d   :  { %v2110_v43 = vsel %vm2107_vm7, %v2106_v49, %v8277_v56  ;;  %v2539_v32 = vsel %vm2107_vm7, %v2536_v41, %v8278_v42 }
 0x73e   :  { %v8286_v8 = vpop.permute.xlu1 %8285  ;;  %7225 = vmatprep.mubr.f32.mxu0 %v2110_v43 }
 0x73f   :  { %7226 = vmatmul.mubr.f32.gmra.mrb[56].mxu0 %v2539_v32  ;;  %v8288_v24 = vunpack.i.h.bf16 %v8286_v8  ;;  %v8287_v57 = vunpack.i.l.bf16 %v8286_v8 }
 0x741   :  { %v2537_v26 = vsel %vm2103_vm6, %v2534_v19, %v8287_v57  ;;  %v2538_v30 = vsel %vm2103_vm6, %v2535_v12, %v8288_v24  ;;  %v2768_v24 = vld [vmem:[%s11348_s6 + $0x38] sm:$0xff] }
 0x742   :  { %v8291_v39 = vpop.permute.xlu0 %8290 }
 0x743   :  { %v8293_v27 = vunpack.i.h.bf16 %v8291_v39  ;;  %v8292_v22 = vunpack.i.l.bf16 %v8291_v39  ;;  %v7913_v39 = vpack.c.bf16 %v2768_v24, %v2767_v45 }
 0x745   :  { %v2540_v55 = vsel %vm2107_vm7, %v2537_v26, %v8292_v22  ;;  %v2541_v34 = vsel %vm2107_vm7, %v2538_v30, %v8293_v27  ;;  %v2769_v26 = vld [vmem:[%s11348_s6 + $0x40] sm:$0xff]  ;;  %v2770_v30 = vld [vmem:[%s11348_s6 + $0x48] sm:$0xff] }
 0x746   :  { %7228 = vmatprep.mubr.f32.mxu0 %v2540_v55 }
 0x747   :  { %7229 = vmatmul.mubr.f32.gmra.mrb[58].mxu0 %v2541_v34 }
 0x7fd   :  { %v7224_v35 = vpop.f32.mrb[54].mxu0 }
 0x7fe   :  { %v2654_v46 = vadd.f32 %v7224_v35, %v8905_v5  ;;  %v2624_v2 = vpop.f32.mrb[55].mxu0 }
 0x7ff   :  { %v2653_v44 = vadd.f32 %v2624_v2, %v8899_v0 }
 0x800   :  { %v9874_v61 = vadd.f32 %v2662_v9, %v2654_v46 }
 0x801   :  { %v9876_v6 = vadd.f32 %v2662_v9, %v2653_v44 }
 0x802   :  { %2671 = vadd.xlane.f32.xlu0 %v9874_v61 }
 0x803   :  { %2669 = vadd.xlane.f32.xlu1 %v9876_v6 }
 0x812   :  { %v7227_v1 = vpop.f32.mrb[56].mxu0 }
 0x813   :  { %v2634_v36 = vpop.f32.mrb[57].mxu0  ;;  %v2656_v11 = vadd.f32 %v7227_v1, %v8914_v14  ;;  %v2762_v14 = vld [vmem:[%s11348_s6 + $0x8] sm:$0xff] }
 0x814   :  { %v2655_v31 = vadd.f32 %v2634_v36, %v8911_v10  ;;  %v2761_v10 = vld [vmem:[%s11348_s6] sm:$0xff] }
 0x815   :  { %v9885_v5 = vadd.f32 %v2662_v9, %v2656_v11  ;;  %v2772_v11 = vld [vmem:[%s11348_s6 + $0x58] sm:$0xff] }
 0x816   :  { %v9882_v40 = vadd.f32 %v2662_v9, %v2655_v31  ;;  %v2771_v31 = vld [vmem:[%s11348_s6 + $0x50] sm:$0xff] }
 0x818   :  { %2673 = vadd.xlane.f32.xlu0 %v9882_v40 }
 0x81a   :  { %v7230_v0 = vpop.f32.mrb[58].mxu0 }
 0x81b   :  { %v2658_v25 = vadd.f32 %v7230_v0, %v8921_v23  ;;  %v2644_v15 = vpop.f32.mrb[59].mxu0  ;;  %v7901_v23 = vpack.c.bf16 %v2762_v14, %v2761_v10  ;;  %v7921_v0 = vpack.c.bf16 %v2772_v11, %v2771_v31  ;;  %v2773_v14 = vld [vmem:[%s11348_s6 + $0x60] sm:$0xff] }
 0x81c   :  { %v2657_v59 = vadd.f32 %v2644_v15, %v8917_v18  ;;  %2675 = vadd.xlane.f32.xlu0 %v9885_v5  ;;  %v2763_v18 = vld [vmem:[%s11348_s6 + $0x10] sm:$0xff] }
 0x81d   :  { %v9890_v54 = vadd.f32 %v2662_v9, %v2658_v25  ;;  %v7905_v51 = vpack.c.bf16 %v2764_v20, %v2763_v18  ;;  %7902 = vmatprep.subr.bf16.mxu1 %v7901_v23  ;;  %v2774_v18 = vld [vmem:[%s11348_s6 + $0x68] sm:$0xff]  ;;  %v2775_v20 = vld [vmem:[%s11348_s6 + $0x70] sm:$0xff] }
 0x81e   :  { %v9892_v58 = vadd.f32 %v2662_v9, %v2657_v59  ;;  %7904 = vmatpush3.bf16.msra.mxu1 %v7901_v23  ;;  %v7917_v9 = vpack.c.bf16 %v2770_v30, %v2769_v26  ;;  %v7925_v23 = vpack.c.bf16 %v2774_v18, %v2773_v14 }
 0x81f   :  { %7906 = vmatprep.subr.bf16.mxu1 %v7905_v51 }
 0x820   :  { %2679 = vadd.xlane.f32.xlu0 %v9890_v54  ;;  %2677 = vadd.xlane.f32.xlu1 %v9892_v58 }
 0x822   :  { %7908 = vmatpush3.bf16.msra.mxu1 %v7905_v51  ;;  %v2776_v51 = vld [vmem:[%s11348_s6 + $0x78] sm:$0xff] }
 0x823   :  { %7910 = vmatprep.subr.bf16.mxu1 %v7909_v62  ;;  %v7929_v13 = vpack.c.bf16 %v2776_v51, %v2775_v20 }
 0x826   :  { %7912 = vmatpush3.bf16.msra.mxu1 %v7909_v62 }
 0x827   :  { %7914 = vmatprep.subr.bf16.mxu1 %v7913_v39 }
 0x82a   :  { %7916 = vmatpush3.bf16.msra.mxu1 %v7913_v39 }
 0x82b   :  { %7918 = vmatprep.subr.bf16.mxu1 %v7917_v9 }
 0x82e   :  { %7920 = vmatpush3.bf16.msra.mxu1 %v7917_v9 }
 0x82f   :  { %7922 = vmatprep.subr.bf16.mxu1 %v7921_v0 }
 0x832   :  { %7924 = vmatpush3.bf16.msra.mxu1 %v7921_v0 }
 0x833   :  { %7926 = vmatprep.subr.bf16.mxu1 %v7925_v23 }
 0x836   :  { %7928 = vmatpush3.bf16.msra.mxu1 %v7925_v23 }
 0x837   :  { %7930 = vmatprep.subr.bf16.mxu1 %v7929_v13 }
 0x83a   :  { %7932 = vmatpush3.bf16.msra.mxu1 %v7929_v13 }
 0x88f   :  { %v2672_v60 = vpop.xlane.xlu0 %2671 }
 0x890   :  { %v2682_v63 = vmul.f32 0.03125, %v2672_v60  ;;  %v2670_v42 = vpop.xlane.xlu1 %2669 }
 0x891   :  { %v2681_v56 = vmul.f32 0.03125, %v2670_v42 }
 0x892   :  { %v2688_v50 = vsub.f32 %v9874_v61, %v2682_v63 }
 0x893   :  { %v2687_v7 = vsub.f32 %v9876_v6, %v2681_v56 }
 0x894   :  { %v9917_v48 = vmul.f32 %v8977_v52, %v2688_v50  ;;  %v2753_v50 = vsub.s32 3, %v9112_v28 }
 0x895   :  { %v9920_v49 = vmul.f32 %v8977_v52, %v2687_v7  ;;  %v2744_v7 = vrot.slane %v9867_v3, %v9143_v16 }
 0x896   :  { %v2700_v41 = vmul.f32 %v9917_v48, %v9917_v48 }
 0x897   :  { %v2699_v43 = vmul.f32 %v9920_v49, %v9920_v49 }
 0x898   :  { %2707 = vadd.xlane.f32.xlu0 %v2700_v41 }
 0x899   :  { %2705 = vadd.xlane.f32.xlu1 %v2699_v43 }
 0x8a5   :  { %v2674_v32 = vpop.xlane.xlu0 %2673 }
 0x8a6   :  { %v2683_v8 = vmul.f32 0.03125, %v2674_v32 }
 0x8a8   :  { %v2689_v21 = vsub.f32 %v9882_v40, %v2683_v8 }
 0x8a9   :  { %v2676_v57 = vpop.xlane.xlu0 %2675 }
 0x8aa   :  { %v9934_v27 = vmul.f32 %v8977_v52, %v2689_v21  ;;  %v2684_v22 = vmul.f32 0.03125, %v2676_v57  ;;  %v2754_v21 = vrot.slane %v9867_v3, %v2753_v50 }
 0x8ac   :  { %v2690_v19 = vsub.f32 %v9885_v5, %v2684_v22  ;;  %v2701_v12 = vmul.f32 %v9934_v27, %v9934_v27 }
 0x8ad   :  { %v2680_v55 = vpop.xlane.xlu0 %2679  ;;  %v2678_v34 = vpop.xlane.xlu1 %2677 }
 0x8ae   :  { %v9946_v35 = vmul.f32 %v8977_v52, %v2690_v19  ;;  %v2686_v46 = vmul.f32 0.03125, %v2680_v55  ;;  %v2685_v2 = vmul.f32 0.03125, %v2678_v34  ;;  %2709 = vadd.xlane.f32.xlu1 %v2701_v12 }
 0x8b0   :  { %v2692_v44 = vsub.f32 %v9890_v54, %v2686_v46  ;;  %v2691_v1 = vsub.f32 %v9892_v58, %v2685_v2  ;;  %v2702_v36 = vmul.f32 %v9946_v35, %v9946_v35 }
 0x8b2   :  { %v9959_v25 = vmul.f32 %v8977_v52, %v2692_v44  ;;  %v9962_v15 = vmul.f32 %v8977_v52, %v2691_v1  ;;  %2711 = vadd.xlane.f32.xlu0 %v2702_v36 }
 0x8b4   :  { %v2704_v59 = vmul.f32 %v9959_v25, %v9959_v25  ;;  %v2703_v10 = vmul.f32 %v9962_v15, %v9962_v15 }
 0x8b6   :  { %2715 = vadd.xlane.f32.xlu0 %v2704_v59  ;;  %2713 = vadd.xlane.f32.xlu1 %v2703_v10 }
 0x925   :  { %v2708_v53 = vpop.xlane.xlu0 %2707 }
 0x926   :  { %v2718_v62 = vmul.f32 0.03125, %v2708_v53  ;;  %v2706_v60 = vpop.xlane.xlu1 %2705 }
 0x927   :  { %v2717_v63 = vmul.f32 0.03125, %v2706_v60  ;;  %v3041_v60 = vld [vmem:[%s11349_s7 + $0x18] sm:$0xff] }
 0x928   :  { %v2724_v42 = vadd.f32 1e-12, %v2718_v62 }
 0x929   :  { %v2723_v56 = vadd.f32 1e-12, %v2717_v63 }
 0x92a   :  { %8507 = vrsqrt.f32 %v2724_v42  ;;  %v3042_v42 = vld [vmem:[%s11349_s7 + $0x20] sm:$0xff] }
 0x92b   :  { %8509 = vrsqrt.f32 %v2723_v56  ;;  %v3043_v56 = vld [vmem:[%s11349_s7 + $0x28] sm:$0xff] }
 0x934   :  { %v8508_v41 = vpop.eup %8507 }
 0x935   :  { %v8510_v43 = vpop.eup %8509  ;;  %v2736_v32 = vmul.f32 %v8508_v41, %v9917_v48  ;;  %v3044_v41 = vld [vmem:[%s11349_s7 + $0x30] sm:$0xff] }
 0x936   :  { %v2735_v8 = vmul.f32 %v8510_v43, %v9920_v49  ;;  %v3045_v43 = vld [vmem:[%s11349_s7 + $0x38] sm:$0xff] }
 0x937   :  { %v2746_v45 = vmul.f32 %v2744_v7, %v2736_v32  ;;  %v7945_v32 = vpack.c.bf16 %v3045_v43, %v3044_v41 }
 0x938   :  { %v2745_v24 = vmul.f32 %v2744_v7, %v2735_v8  ;;  %v3046_v8 = vld [vmem:[%s11349_s7 + $0x40] sm:$0xff] }
 0x939   :  { %v2756_v19 = vadd.f32 %v2754_v21, %v2746_v45 }
 0x93a   :  { %v2755_v39 = vadd.f32 %v2754_v21, %v2745_v24  ;;  %v3048_v24 = vld [vmem:[%s11349_s7 + $0x50] sm:$0xff] }
 0x93b   :  { %v2710_v57 = vpop.xlane.xlu1 %2709 }
 0x93c   :  { %v2719_v22 = vmul.f32 0.03125, %v2710_v57  ;;  %7263 = vmatprep.mubr.f32.mxu1 %v2755_v39  ;;  %v3049_v57 = vld [vmem:[%s11349_s7 + $0x58] sm:$0xff] }
 0x93d   :  { %7264 = vmatmul.mubr.f32.vlgmr.msra.gmra.mrb[72].mxu1 %v2756_v19  ;;  %v7953_v39 = vpack.c.bf16 %v3049_v57, %v3048_v24  ;;  %v3051_v19 = vld [vmem:[%s11349_s7 + $0x68] sm:$0xff] }
 0x93e   :  { %v2725_v12 = vadd.f32 1e-12, %v2719_v22  ;;  %v3050_v22 = vld [vmem:[%s11349_s7 + $0x60] sm:$0xff] }
 0x93f   :  { %v2712_v26 = vpop.xlane.xlu0 %2711 }
 0x940   :  { %8511 = vrsqrt.f32 %v2725_v12  ;;  %v2720_v30 = vmul.f32 0.03125, %v2712_v26  ;;  %v7957_v12 = vpack.c.bf16 %v3051_v19, %v3050_v22  ;;  %v3052_v26 = vld [vmem:[%s11349_s7 + $0x70] sm:$0xff] }
 0x942   :  { %v2726_v55 = vadd.f32 1e-12, %v2720_v30  ;;  %v3053_v30 = vld [vmem:[%s11349_s7 + $0x78] sm:$0xff] }
 0x943   :  { %v2716_v48 = vpop.xlane.xlu0 %2715  ;;  %v2714_v34 = vpop.xlane.xlu1 %2713 }
 0x944   :  { %8513 = vrsqrt.f32 %v2726_v55  ;;  %v2722_v49 = vmul.f32 0.03125, %v2716_v48  ;;  %v2721_v9 = vmul.f32 0.03125, %v2714_v34  ;;  %v7961_v55 = vpack.c.bf16 %v3053_v30, %v3052_v26 }
 0x945   :  { %v2779_v48 = vsub.s32 5, %v9112_v28 }
 0x946   :  { %v2728_v46 = vadd.f32 1e-12, %v2722_v49  ;;  %v2727_v2 = vadd.f32 1e-12, %v2721_v9 }
 0x947   :  { %v2780_v34 = vrot.slane %v9867_v3, %v2779_v48 }
 0x948   :  { %8515 = vrsqrt.f32 %v2728_v46 }
 0x949   :  { %8517 = vrsqrt.f32 %v2727_v2 }
 0x94a   :  { %v8512_v44 = vpop.eup %8511 }
 0x94b   :  { %v2737_v1 = vmul.f32 %v8512_v44, %v9934_v27  ;;  %v3038_v27 = vld [vmem:[%s11349_s7] sm:$0xff] }
 0x94d   :  { %v2747_v36 = vmul.f32 %v2744_v7, %v2737_v1 }
 0x94e   :  { %v8514_v31 = vpop.eup %8513 }
 0x94f   :  { %v2757_v11 = vadd.f32 %v2754_v21, %v2747_v36  ;;  %v2738_v0 = vmul.f32 %v8514_v31, %v9946_v35  ;;  %v3039_v35 = vld [vmem:[%s11349_s7 + $0x8] sm:$0xff] }
 0x951   :  { %7266 = vmatprep.mubr.f32.mxu1 %v2757_v11  ;;  %v2748_v59 = vmul.f32 %v2744_v7, %v2738_v0 }
 0x952   :  { %v8516_v10 = vpop.eup %8515 }
 0x953   :  { %v8518_v14 = vpop.eup %8517  ;;  %v2758_v18 = vadd.f32 %v2754_v21, %v2748_v59  ;;  %v2740_v23 = vmul.f32 %v8516_v10, %v9959_v25  ;;  %v7933_v25 = vpack.c.bf16 %v3039_v35, %v3038_v27 }
 0x954   :  { %v2739_v20 = vmul.f32 %v8518_v14, %v9962_v15  ;;  %v3040_v15 = vld [vmem:[%s11349_s7 + $0x10] sm:$0xff] }
 0x955   :  { %7267 = vmatmul.mubr.f32.gmra.mrb[74].mxu1 %v2758_v18  ;;  %v2750_v51 = vmul.f32 %v2744_v7, %v2740_v23  ;;  %7934 = vmatprep.subr.bf16.mxu0 %v7933_v25  ;;  %v7937_v63 = vpack.c.bf16 %v3041_v60, %v3040_v15 }
 0x956   :  { %v2749_v13 = vmul.f32 %v2744_v7, %v2739_v20  ;;  %7936 = vmatpush3.bf16.msra.mxu0 %v7933_v25  ;;  %v7941_v7 = vpack.c.bf16 %v3043_v56, %v3042_v42 }
 0x957   :  { %v2760_v53 = vadd.f32 %v2754_v21, %v2750_v51  ;;  %7938 = vmatprep.subr.bf16.mxu0 %v7937_v63 }
 0x958   :  { %v2759_v62 = vadd.f32 %v2754_v21, %v2749_v13  ;;  %v3047_v21 = vld [vmem:[%s11349_s7 + $0x48] sm:$0xff] }
 0x959   :  { %v7949_v45 = vpack.c.bf16 %v3047_v21, %v3046_v8 }
 0x95a   :  { %7269 = vmatprep.mubr.f32.mxu1 %v2759_v62  ;;  %7940 = vmatpush3.bf16.msra.mxu0 %v7937_v63 }
 0x95b   :  { %7270 = vmatmul.mubr.f32.gmra.mrb[76].mxu1 %v2760_v53  ;;  %7942 = vmatprep.subr.bf16.mxu0 %v7941_v7 }
 0x95c   :  { %3390 = vmatprep.mubr.f32.mxu1 %v11358_v17 }
 0x95e   :  { %7944 = vmatpush3.bf16.msra.mxu0 %v7941_v7 }
 0x95f   :  { %7946 = vmatprep.subr.bf16.mxu0 %v7945_v32 }
 0x962   :  { %7948 = vmatpush3.bf16.msra.mxu0 %v7945_v32 }
 0x963   :  { %7950 = vmatprep.subr.bf16.mxu0 %v7949_v45 }
 0x966   :  { %7952 = vmatpush3.bf16.msra.mxu0 %v7949_v45 }
 0x967   :  { %7954 = vmatprep.subr.bf16.mxu0 %v7953_v39 }
 0x96a   :  { %7956 = vmatpush3.bf16.msra.mxu0 %v7953_v39 }
 0x96b   :  { %7958 = vmatprep.subr.bf16.mxu0 %v7957_v12 }
 0x96e   :  { %7960 = vmatpush3.bf16.msra.mxu0 %v7957_v12 }
 0x96f   :  { %7962 = vmatprep.subr.bf16.mxu0 %v7961_v55 }
 0x972   :  { %7964 = vmatpush3.bf16.msra.mxu0 %v7961_v55 }
 0xa10   :  { %v7265_v49 = vpop.f32.mrb[72].mxu1 }
 0xa11   :  { %v10045_v9 = vadd.f32 %v7265_v49, %v2780_v34  ;;  %v2847_v46 = vpop.f32.mrb[73].mxu1 }
 0xa12   :  { %v10047_v2 = vadd.f32 %v2847_v46, %v2780_v34 }
 0xa13   :  { %v10050_v44 = vmul.f32 0.70710677, %v10045_v9 }
 0xa14   :  { %v10053_v1 = vmul.f32 0.70710677, %v10047_v2 }
 0xa15   :  { %v2901_v36 = vand.u32 2147483647, %v10050_v44  ;;  %vm2889_vm8 = vcmp.ge.f32.partialorder %v10050_v44, 0.0 }
 0xa16   :  { %v2900_v31 = vand.u32 2147483647, %v10053_v1  ;;  %vm2888_vm9 = vcmp.ge.f32.partialorder %v10053_v1, 0.0 }
 0xa17   :  { %v2907_v11 = vmul.f32 0.3275911, %v2901_v36  ;;  %v2985_v14 = vsub.f32 0.0, %v2901_v36 }
 0xa18   :  { %v2906_v0 = vmul.f32 0.3275911, %v2900_v31  ;;  %v2984_v27 = vsub.f32 0.0, %v2900_v31 }
 0xa19   :  { %v2913_v59 = vadd.f32 1.0, %v2907_v11  ;;  %v2991_v23 = vmul.f32 %v2985_v14, %v2901_v36 }
 0xa1a   :  { %v2912_v10 = vadd.f32 1.0, %v2906_v0  ;;  %v2990_v43 = vmul.f32 %v2984_v27, %v2900_v31 }
 0xa1b   :  { %8519 = vrcp.f32 %v2913_v59  ;;  %v2998_v15 = vmul.f32 1.442695, %v2991_v23 }
 0xa1c   :  { %8521 = vrcp.f32 %v2912_v10  ;;  %v2996_v26 = vmul.f32 1.442695, %v2990_v43 }
 0xa1d   :  { %8523 = vpow2.f32 %v2998_v15 }
 0xa25   :  { %v8520_v18 = vpop.eup %8519 }
 0xa26   :  { %v8522_v20 = vpop.eup %8521  ;;  %v2931_v51 = vmul.f32 1.0614054, %v8520_v18 }
 0xa27   :  { %v2930_v53 = vmul.f32 1.0614054, %v8522_v20 }
 0xa28   :  { %v7268_v13 = vpop.f32.mrb[74].mxu1  ;;  %v2937_v62 = vadd.f32 -1.4531521, %v2931_v51  ;;  %v8524_v51 = vpop.eup %8523 }
 0xa29   :  { %v10057_v35 = vadd.f32 %v7268_v13, %v2780_v34  ;;  %v2857_v25 = vpop.f32.mrb[75].mxu1  ;;  %v2936_v63 = vadd.f32 -1.4531521, %v2930_v53 }
 0xa2a   :  { %v10059_v60 = vadd.f32 %v2857_v25, %v2780_v34  ;;  %v2943_v42 = vmul.f32 %v8520_v18, %v2937_v62 }
 0xa2b   :  { %v10062_v56 = vmul.f32 0.70710677, %v10057_v35  ;;  %v2942_v45 = vmul.f32 %v8522_v20, %v2936_v63 }
 0xa2c   :  { %v10065_v7 = vmul.f32 0.70710677, %v10059_v60  ;;  %v2949_v41 = vadd.f32 1.4214138, %v2943_v42 }
 0xa2d   :  { %v2903_v32 = vand.u32 2147483647, %v10062_v56  ;;  %v2948_v36 = vadd.f32 1.4214138, %v2942_v45  ;;  %vm2891_vm10 = vcmp.ge.f32.partialorder %v10062_v56, 0.0 }
 0xa2e   :  { %v2902_v8 = vand.u32 2147483647, %v10065_v7  ;;  %v7271_v21 = vpop.f32.mrb[76].mxu1  ;;  %v2955_v24 = vmul.f32 %v8520_v18, %v2949_v41  ;;  %vm2890_vm11 = vcmp.ge.f32.partialorder %v10065_v7, 0.0 }
 0xa2f   :  { %v2909_v57 = vmul.f32 0.3275911, %v2903_v32  ;;  %v2867_v39 = vpop.f32.mrb[77].mxu1  ;;  %v10069_v19 = vadd.f32 %v7271_v21, %v2780_v34  ;;  %v2954_v14 = vmul.f32 %v8522_v20, %v2948_v36  ;;  %v2987_v27 = vsub.f32 0.0, %v2903_v32 }
 0xa30   :  { %v2908_v22 = vmul.f32 0.3275911, %v2902_v8  ;;  %v2961_v12 = vadd.f32 -0.28449672, %v2955_v24  ;;  %v10071_v55 = vadd.f32 %v2867_v39, %v2780_v34  ;;  %v2986_v15 = vsub.f32 0.0, %v2902_v8 }
 0xa31   :  { %v2915_v30 = vadd.f32 1.0, %v2909_v57  ;;  %v10074_v46 = vmul.f32 0.70710677, %v10069_v19  ;;  %v2960_v53 = vadd.f32 -0.28449672, %v2954_v14  ;;  %v2993_v45 = vmul.f32 %v2987_v27, %v2903_v32 }
 0xa32   :  { %v2914_v49 = vadd.f32 1.0, %v2908_v22  ;;  %v2967_v31 = vmul.f32 %v8520_v18, %v2961_v12  ;;  %v10078_v59 = vmul.f32 0.70710677, %v10071_v55  ;;  %v2992_v24 = vmul.f32 %v2986_v15, %v2902_v8 }
 0xa33   :  { %8525 = vrcp.f32 %v2915_v30  ;;  %v2905_v11 = vand.u32 2147483647, %v10074_v46  ;;  %v2966_v63 = vmul.f32 %v8522_v20, %v2960_v53  ;;  %v8708_v12 = vmov -1.0  }
 0xa34   :  { %8527 = vrcp.f32 %v2914_v49  ;;  %v2973_v0 = vadd.f32 0.2548296, %v2967_v31  ;;  %v2904_v34 = vand.u32 2147483647, %v10078_v59  ;;  %v3000_v14 = vmul.f32 1.442695, %v2992_v24 }
 0xa35   :  { %8529 = vpow2.f32 %v2996_v26  ;;  %v2911_v10 = vmul.f32 0.3275911, %v2905_v11  ;;  %v2972_v41 = vadd.f32 0.2548296, %v2966_v63  ;;  %v2895_v26 = vsel %vm2889_vm8, 1.0, %v8708_v12 }
 0xa36   :  { %v2979_v23 = vmul.f32 %v8520_v18, %v2973_v0  ;;  %v2910_v25 = vmul.f32 0.3275911, %v2904_v34  ;;  %v2989_v49 = vsub.f32 0.0, %v2905_v11  ;;  %v3002_v0 = vmul.f32 1.442695, %v2993_v45 }
 0xa37   :  { %v2917_v13 = vadd.f32 1.0, %v2911_v10  ;;  %v2978_v57 = vmul.f32 %v8522_v20, %v2972_v41  ;;  %v2894_v8 = vsel %vm2888_vm9, 1.0, %v8708_v12  ;;  %v2988_v20 = vsub.f32 0.0, %v2904_v34 }
 0xa38   :  { %v3009_v62 = vmul.f32 %v8524_v51, %v2979_v23  ;;  %v2916_v42 = vadd.f32 1.0, %v2910_v25  ;;  %v2995_v53 = vmul.f32 %v2989_v49, %v2905_v11  ;;  %v2876_v63 = vmul.f32 0.5, %v10047_v2 }
 0xa39   :  { %8531 = vrcp.f32 %v2917_v13  ;;  %v2877_v45 = vmul.f32 0.5, %v10045_v9  ;;  %v2994_v24 = vmul.f32 %v2988_v20, %v2904_v34  ;;  %vm2893_vm12 = vcmp.ge.f32.partialorder %v10074_v46, 0.0 }
 0xa3a   :  { %v3015_v21 = vsub.f32 1.0, %v3009_v62  ;;  %8533 = vrcp.f32 %v2916_v42  ;;  %vm2892_vm13 = vcmp.ge.f32.partialorder %v10078_v59, 0.0  ;;  %v3157_v59 = vsub.s32 6, %v9112_v28 }
 0xa3b   :  { %8535 = vpow2.f32 %v3002_v0  ;;  %v3004_v2 = vmul.f32 1.442695, %v2994_v24  ;;  %v2898_v46 = vsel %vm2892_vm13, 1.0, %v8708_v12 }
 0xa3c   :  { %v3021_v44 = vmul.f32 %v3015_v21, %v2895_v26  ;;  %8537 = vpow2.f32 %v3000_v14 }
 0xa3d   :  { %v8526_v43 = vpop.eup %8525 }
 0xa3e   :  { %v8528_v18 = vpop.eup %8527  ;;  %v2933_v39 = vmul.f32 1.0614054, %v8526_v43  ;;  %v3027_v25 = vadd.f32 1.0, %v3021_v44 }
 0xa3f   :  { %v8530_v22 = vpop.eup %8529  ;;  %v2932_v30 = vmul.f32 1.0614054, %v8528_v18 }
 0xa40   :  { %v3008_v36 = vmul.f32 %v8530_v22, %v2978_v57  ;;  %v2939_v31 = vadd.f32 -1.4531521, %v2933_v39  ;;  %v3006_v22 = vmul.f32 1.442695, %v2995_v53  ;;  %v3033_v49 = vmul.f32 %v3027_v25, %v2877_v45 }
 0xa41   :  { %v2938_v10 = vadd.f32 -1.4531521, %v2932_v30  ;;  %v2897_v45 = vsel %vm2891_vm10, 1.0, %v8708_v12 }
 0xa42   :  { %v3014_v32 = vsub.f32 1.0, %v3008_v36  ;;  %v2945_v23 = vmul.f32 %v8526_v43, %v2939_v31  ;;  %8539 = vpow2.f32 %v3006_v22 }
 0xa43   :  { %v2944_v51 = vmul.f32 %v8528_v18, %v2938_v10  ;;  %v8532_v13 = vpop.eup %8531  ;;  %8541 = vpow2.f32 %v3004_v2 }
 0xa44   :  { %v3020_v62 = vmul.f32 %v3014_v32, %v2894_v8  ;;  %v2951_v27 = vadd.f32 1.4214138, %v2945_v23  ;;  %v2935_v15 = vmul.f32 1.0614054, %v8532_v13  ;;  %v8534_v21 = vpop.eup %8533 }
 0xa45   :  { %v2950_v1 = vadd.f32 1.4214138, %v2944_v51  ;;  %v2934_v30 = vmul.f32 1.0614054, %v8534_v21  ;;  %v8536_v51 = vpop.eup %8535 }
 0xa46   :  { %v3026_v42 = vadd.f32 1.0, %v3020_v62  ;;  %v2957_v41 = vmul.f32 %v8526_v43, %v2951_v27  ;;  %v2941_v39 = vadd.f32 -1.4531521, %v2935_v15  ;;  %v8538_v27 = vpop.eup %8537 }
 0xa47   :  { %v2956_v57 = vmul.f32 %v8528_v18, %v2950_v1  ;;  %v2940_v0 = vadd.f32 -1.4531521, %v2934_v30 }
 0xa48   :  { %v3032_v26 = vmul.f32 %v3026_v42, %v2876_v63  ;;  %v2963_v11 = vadd.f32 -0.28449672, %v2957_v41  ;;  %v2947_v31 = vmul.f32 %v8532_v13, %v2941_v39 }
 0xa49   :  { %v2962_v36 = vadd.f32 -0.28449672, %v2956_v57  ;;  %v2946_v9 = vmul.f32 %v8534_v21, %v2940_v0  ;;  %v2896_v57 = vsel %vm2890_vm11, 1.0, %v8708_v12 }
 0xa4a   :  { %7304 = vmatprep.mubr.f32.mxu0 %v3032_v26  ;;  %v2969_v44 = vmul.f32 %v8526_v43, %v2963_v11  ;;  %v2953_v14 = vadd.f32 1.4214138, %v2947_v31  ;;  %v2879_v31 = vmul.f32 0.5, %v10057_v35  ;;  %v2880_v35 = vmul.f32 0.5, %v10071_v55 }
 0xa4b   :  { %7305 = vmatmul.mubr.f32.vlgmr.msra.gmra.mrb[60].mxu0 %v3033_v49  ;;  %v2968_v10 = vmul.f32 %v8528_v18, %v2962_v36  ;;  %v2952_v20 = vadd.f32 1.4214138, %v2946_v9  ;;  %v2878_v49 = vmul.f32 0.5, %v10059_v60 }
 0xa4c   :  { %v2975_v32 = vadd.f32 0.2548296, %v2969_v44  ;;  %v2959_v23 = vmul.f32 %v8532_v13, %v2953_v14  ;;  %v8540_v11 = vpop.eup %8539  ;;  %v2899_v14 = vsel %vm2893_vm12, 1.0, %v8708_v12 }
 0xa4d   :  { %v2974_v34 = vadd.f32 0.2548296, %v2968_v10  ;;  %v2958_v1 = vmul.f32 %v8534_v21, %v2952_v20  ;;  %v8542_v0 = vpop.eup %8541 }
 0xa4e   :  { %v2981_v8 = vmul.f32 %v8526_v43, %v2975_v32  ;;  %v2965_v62 = vadd.f32 -0.28449672, %v2959_v23 }
 0xa4f   :  { %v2980_v53 = vmul.f32 %v8528_v18, %v2974_v34  ;;  %v2964_v41 = vadd.f32 -0.28449672, %v2958_v1 }
 0xa50   :  { %v3011_v25 = vmul.f32 %v8536_v51, %v2981_v8  ;;  %v2971_v63 = vmul.f32 %v8532_v13, %v2965_v62  ;;  %v2881_v8 = vmul.f32 0.5, %v10069_v19 }
 0xa51   :  { %v3010_v15 = vmul.f32 %v8538_v27, %v2980_v53  ;;  %v2970_v18 = vmul.f32 %v8534_v21, %v2964_v41  ;;  %v3158_v53 = vrot.slane %v9867_v3, %v3157_v59 }
 0xa52   :  { %v3017_v42 = vsub.f32 1.0, %v3011_v25  ;;  %v2977_v43 = vadd.f32 0.2548296, %v2971_v63 }
 0xa53   :  { %v3016_v24 = vsub.f32 1.0, %v3010_v15  ;;  %v2976_v30 = vadd.f32 0.2548296, %v2970_v18  ;;  %v6323_v18 = vld [vmem:[%s11344_s3 + $0x198] sm:$0xff] }
 0xa54   :  { %v3023_v39 = vmul.f32 %v3017_v42, %v2897_v45  ;;  %v2983_v26 = vmul.f32 %v8532_v13, %v2977_v43 }
 0xa55   :  { %v3022_v22 = vmul.f32 %v3016_v24, %v2896_v57  ;;  %v2982_v44 = vmul.f32 %v8534_v21, %v2976_v30  ;;  %v6327_v30 = vld [vmem:[%s11344_s3 + $0x1b8] sm:$0xff] }
 0xa56   :  { %v3029_v56 = vadd.f32 1.0, %v3023_v39  ;;  %v3013_v36 = vmul.f32 %v8540_v11, %v2983_v26  ;;  %v6324_v39 = vld [vmem:[%s11344_s3 + $0x1a0] sm:$0xff]  ;;  %v6325_v26 = vld [vmem:[%s11344_s3 + $0x1a8] sm:$0xff] }
 0xa57   :  { %v3028_v7 = vadd.f32 1.0, %v3022_v22  ;;  %v3012_v32 = vmul.f32 %v8542_v0, %v2982_v44  ;;  %v6322_v22 = vld [vmem:[%s11344_s3 + $0x190] sm:$0xff]  ;;  %v6328_v44 = vld [vmem:[%s11344_s3 + $0x1c0] sm:$0xff]  ;;  %v6331_v0 = vld [vmem:[%s11344_s3 + $0x1d8] sm:$0xff] }
 0xa58   :  { %v3019_v10 = vsub.f32 1.0, %v3013_v36  ;;  %v3035_v13 = vmul.f32 %v3029_v56, %v2879_v31  ;;  %v7997_v56 = vpack.c.bf16 %v6325_v26, %v6322_v22  ;;  %v6329_v31 = vld [vmem:[%s11344_s3 + $0x1c8] sm:$0xff]  ;;  %v6340_v26 = vld [vmem:[%s11344_s3 + $0x220] sm:$0xff] }
 0xa59   :  { %v3034_v2 = vmul.f32 %v3028_v7, %v2878_v49  ;;  %v3018_v60 = vsub.f32 1.0, %v3012_v32  ;;  %v6330_v49 = vld [vmem:[%s11344_s3 + $0x1d0] sm:$0xff]  ;;  %v6332_v32 = vld [vmem:[%s11344_s3 + $0x1e0] sm:$0xff]  ;;  %v6341_v22 = vld [vmem:[%s11344_s3 + $0x228] sm:$0xff] }
 0xa5a   :  { %v3025_v9 = vmul.f32 %v3019_v10, %v2899_v14  ;;  %v6326_v7 = vld [vmem:[%s11344_s3 + $0x1b0] sm:$0xff]  ;;  %v7969_v36 = vpack.c.bf16 %v6330_v49, %v6327_v30  ;;  %7998 = vmatprep.subr.bf16.mxu0 %v7997_v56  ;;  %v8001_v10 = vpack.c.bf16 %v6331_v0, %v6328_v44  ;;  %v6333_v14 = vld [vmem:[%s11344_s3 + $0x1e8] sm:$0xff]  ;;  %v6343_v30 = vld [vmem:[%s11344_s3 + $0x238] sm:$0xff] }
 0xa5b   :  { %7307 = vmatprep.mubr.f32.mxu0 %v3034_v2  ;;  %v3024_v34 = vmul.f32 %v3018_v60, %v2898_v46  ;;  %v7971_v2 = vpack.c.bf16 %v6329_v31, %v6326_v7  ;;  %8000 = vmatpush3.bf16.msra.mxu0 %v7997_v56  ;;  %v6335_v60 = vld [vmem:[%s11344_s3 + $0x1f8] sm:$0xff]  ;;  %v6334_v46 = vld [vmem:[%s11344_s3 + $0x1f0] sm:$0xff]  ;;  %v8009_v7 = vpack.c.bf16 %v6343_v30, %v6340_v26  ;;  %v6345_v31 = vld [vmem:[%s11344_s3 + $0x248] sm:$0xff] }
 0xa5c   :  { %7308 = vmatmul.mubr.f32.gmra.mrb[62].mxu0 %v3035_v13  ;;  %v3031_v23 = vadd.f32 1.0, %v3025_v9  ;;  %v6336_v13 = vld [vmem:[%s11344_s3 + $0x200] sm:$0xff]  ;;  %8002 = vmatprep.subr.bf16.mxu0 %v8001_v10  ;;  %v6363_v30 = vld [vmem:[%s11344_s3 + $0x2d8] sm:$0xff] }
 0xa5d   :  { %v3030_v21 = vadd.f32 1.0, %v3024_v34  ;;  %v7973_v9 = vpack.c.bf16 %v6336_v13, %v6333_v14  ;;  %v6337_v34 = vld [vmem:[%s11344_s3 + $0x208] sm:$0xff]  ;;  %v6348_v44 = vld [vmem:[%s11344_s3 + $0x260] sm:$0xff]  ;;  %v6347_v13 = vld [vmem:[%s11344_s3 + $0x258] sm:$0xff] }
 0xa5e   :  { %v3037_v51 = vmul.f32 %v3031_v23, %v2881_v8  ;;  %v8005_v23 = vpack.c.bf16 %v6337_v34, %v6334_v46  ;;  %v6344_v14 = vld [vmem:[%s11344_s3 + $0x240] sm:$0xff]  ;;  %v6349_v46 = vld [vmem:[%s11344_s3 + $0x268] sm:$0xff] }
 0xa5f   :  { %v3036_v20 = vmul.f32 %v3030_v21, %v2880_v35  ;;  %v7975_v35 = vpack.c.bf16 %v6335_v60, %v6332_v32  ;;  %8004 = vmatpush3.bf16.msra.mxu0 %v8001_v10  ;;  %v7981_v10 = vpack.c.bf16 %v6348_v44, %v6345_v31  ;;  %v6346_v32 = vld [vmem:[%s11344_s3 + $0x250] sm:$0xff]  ;;  %v7983_v60 = vpack.c.bf16 %v6347_v13, %v6344_v14  ;;  %v6365_v31 = vld [vmem:[%s11344_s3 + $0x2e8] sm:$0xff]  ;;  %v6364_v44 = vld [vmem:[%s11344_s3 + $0x2e0] sm:$0xff] }
 0xa60   :  { %8006 = vmatprep.subr.bf16.mxu0 %v8005_v23 }
 0xa61   :  { %7310 = vmatprep.mubr.f32.mxu0 %v3036_v20 }
 0xa62   :  { %7311 = vmatmul.mubr.f32.gmra.mrb[64].mxu0 %v3037_v51 }
 0xa63   :  { %8008 = vmatpush3.bf16.msra.mxu0 %v8005_v23  ;;  %v8013_v23 = vpack.c.bf16 %v6349_v46, %v6346_v32 }
 0xa64   :  { %8010 = vmatprep.subr.bf16.mxu0 %v8009_v7 }
 0xa67   :  { %8012 = vmatpush3.bf16.msra.mxu0 %v8009_v7 }
 0xa68   :  { %8014 = vmatprep.subr.bf16.mxu0 %v8013_v23 }
 0xa6b   :  { %8016 = vmatpush3.bf16.msra.mxu0 %v8013_v23 }
 0xb1e   :  { %v7306_v62 = vpop.f32.mrb[60].mxu0 }
 0xb1f   :  { %v3150_v27 = vadd.f32 %v7306_v62, %v9874_v61  ;;  %v3120_v25 = vpop.f32.mrb[61].mxu0 }
 0xb20   :  { %v3149_v1 = vadd.f32 %v3120_v25, %v9876_v6 }
 0xb21   :  { %v10105_v55 = vadd.f32 %v3158_v53, %v3150_v27 }
 0xb22   :  { %v10107_v15 = vadd.f32 %v3158_v53, %v3149_v1 }
 0xb23   :  { %3169 = vadd.xlane.f32.xlu0 %v10105_v55 }
 0xb24   :  { %3167 = vadd.xlane.f32.xlu1 %v10107_v15 }
 0xb2f   :  { %v7309_v19 = vpop.f32.mrb[62].mxu0 }
 0xb30   :  { %v3152_v63 = vadd.f32 %v7309_v19, %v9885_v5  ;;  %v3130_v42 = vpop.f32.mrb[63].mxu0 }
 0xb31   :  { %v3151_v3 = vadd.f32 %v3130_v42, %v9882_v40  ;;  %v6321_v40 = vld [vmem:[%s11344_s3 + $0x188] sm:$0xff] }
 0xb32   :  { %v10113_v41 = vadd.f32 %v3158_v53, %v3152_v63 }
 0xb33   :  { %v10115_v61 = vadd.f32 %v3158_v53, %v3151_v3 }
 0xb34   :  { %3173 = vadd.xlane.f32.xlu0 %v10113_v41 }
 0xb35   :  { %3171 = vadd.xlane.f32.xlu1 %v10115_v61  ;;  %v7312_v6 = vpop.f32.mrb[64].mxu0 }
 0xb36   :  { %v3154_v45 = vadd.f32 %v7312_v6, %v9890_v54  ;;  %v3140_v24 = vpop.f32.mrb[65].mxu0  ;;  %v6320_v54 = vld [vmem:[%s11344_s3 + $0x180] sm:$0xff] }
 0xb37   :  { %v3153_v43 = vadd.f32 %v3140_v24, %v9892_v58  ;;  %v7965_v58 = vpack.c.bf16 %v6324_v39, %v6321_v40  ;;  %v7967_v11 = vpack.c.bf16 %v6323_v18, %v6320_v54  ;;  %v6339_v40 = vld [vmem:[%s11344_s3 + $0x218] sm:$0xff]  ;;  %v6342_v39 = vld [vmem:[%s11344_s3 + $0x230] sm:$0xff] }
 0xb38   :  { %v10121_v57 = vadd.f32 %v3158_v53, %v3154_v45  ;;  %v6338_v18 = vld [vmem:[%s11344_s3 + $0x210] sm:$0xff] }
 0xb39   :  { %v10123_v5 = vadd.f32 %v3158_v53, %v3153_v43  ;;  %7966 = vmatprep.subr.bf16.mxu1 %v7965_v58  ;;  %v7977_v58 = vpack.c.bf16 %v6342_v39, %v6339_v40  ;;  %v7979_v56 = vpack.c.bf16 %v6341_v22, %v6338_v18  ;;  %v6360_v40 = vld [vmem:[%s11344_s3 + $0x2c0] sm:$0xff]  ;;  %v6359_v18 = vld [vmem:[%s11344_s3 + $0x2b8] sm:$0xff]  ;;  %v6358_v22 = vld [vmem:[%s11344_s3 + $0x2b0] sm:$0xff] }
 0xb3a   :  { %3177 = vadd.xlane.f32.xlu0 %v10121_v57  ;;  %7968 = vmatpush1.bf16.msra.mxu1 %v7967_v11 }
 0xb3b   :  { %3175 = vadd.xlane.f32.xlu1 %v10123_v5  ;;  %7970 = vmatprep.subr.bf16.mxu1 %v7969_v36 }
 0xb3e   :  { %7972 = vmatpush1.bf16.msra.mxu1 %v7971_v2 }
 0xb3f   :  { %7974 = vmatprep.subr.bf16.mxu1 %v7973_v9 }
 0xb42   :  { %7976 = vmatpush1.bf16.msra.mxu1 %v7975_v35 }
 0xb43   :  { %7978 = vmatprep.subr.bf16.mxu1 %v7977_v58  ;;  %v6356_v58 = vld [vmem:[%s11344_s3 + $0x2a0] sm:$0xff] }
 0xb44   :  { %v7991_v26 = vpack.c.bf16 %v6359_v18, %v6356_v58 }
 0xb46   :  { %7980 = vmatpush1.bf16.msra.mxu1 %v7979_v56 }
 0xb47   :  { %7982 = vmatprep.subr.bf16.mxu1 %v7981_v10 }
 0xb4a   :  { %7984 = vmatpush1.bf16.msra.mxu1 %v7983_v60 }
 0xbb0   :  { %v3170_v21 = vpop.xlane.xlu0 %3169 }
 0xbb1   :  { %v3180_v8 = vmul.f32 0.03125, %v3170_v21  ;;  %v3168_v20 = vpop.xlane.xlu1 %3167  ;;  %v6351_v21 = vld [vmem:[%s11344_s3 + $0x278] sm:$0xff] }
 0xbb2   :  { %v3179_v51 = vmul.f32 0.03125, %v3168_v20 }
 0xbb3   :  { %v3186_v53 = vsub.f32 %v10105_v55, %v3180_v8  ;;  %v6354_v8 = vld [vmem:[%s11344_s3 + $0x290] sm:$0xff] }
 0xbb4   :  { %v3185_v62 = vsub.f32 %v10107_v15, %v3179_v51  ;;  %v7985_v51 = vpack.c.bf16 %v6354_v8, %v6351_v21 }
 0xbb5   :  { %v10184_v27 = vmul.f32 %v8977_v52, %v3186_v53  ;;  %v6350_v53 = vld [vmem:[%s11344_s3 + $0x270] sm:$0xff] }
 0xbb6   :  { %v10187_v25 = vmul.f32 %v8977_v52, %v3185_v62  ;;  %v6353_v62 = vld [vmem:[%s11344_s3 + $0x288] sm:$0xff]  ;;  %7986 = vmatprep.subr.bf16.mxu1 %v7985_v51 }
 0xbb7   :  { %v3198_v1 = vmul.f32 %v10184_v27, %v10184_v27 }
 0xbb8   :  { %v3197_v19 = vmul.f32 %v10187_v25, %v10187_v25 }
 0xbb9   :  { %3205 = vadd.xlane.f32.xlu0 %v3198_v1  ;;  %v6352_v1 = vld [vmem:[%s11344_s3 + $0x280] sm:$0xff] }
 0xbba   :  { %3203 = vadd.xlane.f32.xlu1 %v3197_v19 }
 0xbc1   :  { %v3174_v63 = vpop.xlane.xlu0 %3173 }
 0xbc2   :  { %v3182_v42 = vmul.f32 0.03125, %v3174_v63  ;;  %v3172_v3 = vpop.xlane.xlu1 %3171  ;;  %v7987_v63 = vpack.c.bf16 %v6353_v62, %v6350_v53 }
 0xbc3   :  { %v3181_v6 = vmul.f32 0.03125, %v3172_v3 }
 0xbc4   :  { %v3188_v45 = vsub.f32 %v10113_v41, %v3182_v42  ;;  %v6355_v42 = vld [vmem:[%s11344_s3 + $0x298] sm:$0xff]  ;;  %7988 = vmatpush1.bf16.msra.mxu1 %v7987_v63 }
 0xbc5   :  { %v3187_v24 = vsub.f32 %v10115_v61, %v3181_v6  ;;  %v8017_v6 = vpack.c.bf16 %v6355_v42, %v6352_v1 }
 0xbc6   :  { %v10196_v43 = vmul.f32 %v8977_v52, %v3188_v45 }
 0xbc7   :  { %v10205_v54 = vmul.f32 %v8977_v52, %v3187_v24  ;;  %v3178_v36 = vpop.xlane.xlu0 %3177  ;;  %v6357_v24 = vld [vmem:[%s11344_s3 + $0x2a8] sm:$0xff]  ;;  %8018 = vmatprep.subr.bf16.mxu0 %v8017_v6 }
 0xbc8   :  { %v3200_v11 = vmul.f32 %v10196_v43, %v10196_v43  ;;  %v3184_v0 = vmul.f32 0.03125, %v3178_v36  ;;  %v3176_v2 = vpop.xlane.xlu1 %3175  ;;  %v7989_v39 = vpack.c.bf16 %v6360_v40, %v6357_v24  ;;  %8020 = vmatpush3.bf16.msra.mxu0 %v8017_v6  ;;  %v6362_v36 = vld [vmem:[%s11344_s3 + $0x2d0] sm:$0xff] }
 0xbc9   :  { %v3199_v49 = vmul.f32 %v10205_v54, %v10205_v54  ;;  %v3183_v9 = vmul.f32 0.03125, %v3176_v2  ;;  %v6367_v2 = vld [vmem:[%s11344_s3 + $0x2f8] sm:$0xff] }
 0xbca   :  { %3209 = vadd.xlane.f32.xlu0 %v3200_v11  ;;  %v3190_v34 = vsub.f32 %v10121_v57, %v3184_v0  ;;  %v6361_v11 = vld [vmem:[%s11344_s3 + $0x2c8] sm:$0xff]  ;;  %7990 = vmatprep.subr.bf16.mxu1 %v7989_v39  ;;  %v7995_v0 = vpack.c.bf16 %v6365_v31, %v6362_v36  ;;  %v8025_v10 = vpack.c.bf16 %v6367_v2, %v6364_v44 }
 0xbcb   :  { %3207 = vadd.xlane.f32.xlu1 %v3199_v49  ;;  %v3189_v35 = vsub.f32 %v10123_v5, %v3183_v9  ;;  %v8021_v56 = vpack.c.bf16 %v6361_v11, %v6358_v22  ;;  %7992 = vmatpush1.bf16.msra.mxu1 %v7991_v26  ;;  %v6366_v49 = vld [vmem:[%s11344_s3 + $0x2f0] sm:$0xff] }
 0xbcc   :  { %v10250_v20 = vmul.f32 %v8977_v52, %v3190_v34  ;;  %v7993_v7 = vpack.c.bf16 %v6366_v49, %v6363_v30  ;;  %v6319_v34 = vld [vmem:[%s11345_s8 + $0x8] sm:$0xff] }
 0xbcd   :  { %v10262_v19 = vmul.f32 %v8977_v52, %v3189_v35  ;;  %8022 = vmatprep.subr.bf16.mxu0 %v8021_v56  ;;  %v3242_v23 = vrot.slane %v6319_v34, %v9115_v33  ;;  %v3252_v62 = vrot.slane %v6319_v34, %v9121_v37 }
 0xbce   :  { %v3202_v3 = vmul.f32 %v10250_v20, %v10250_v20  ;;  %8024 = vmatpush3.bf16.msra.mxu0 %v8021_v56  ;;  %7994 = vmatprep.subr.bf16.mxu1 %v7993_v7 }
 0xbcf   :  { %v3201_v45 = vmul.f32 %v10262_v19, %v10262_v19  ;;  %7996 = vmatpush1.bf16.msra.mxu1 %v7995_v0  ;;  %8026 = vmatprep.subr.bf16.mxu0 %v8025_v10 }
 0xbd0   :  { %3213 = vadd.xlane.f32.xlu0 %v3202_v3  ;;  %8029 = vmatprep.subr.bf16.mxu1 %v11359_v47 }
 0xbd1   :  { %3211 = vadd.xlane.f32.xlu1 %v3201_v45 }
 0xbd2   :  { %8028 = vmatpush3.bf16.msra.mxu0 %v8025_v10 }
 0xbd3   :  { %8037 = vmatprep.subr.bf16.mxu0 %v11359_v47 }
 0xc46   :  { %v3206_v14 = vpop.xlane.xlu0 %3205 }
 0xc47   :  { %v3216_v13 = vmul.f32 0.03125, %v3206_v14  ;;  %v3204_v32 = vpop.xlane.xlu1 %3203 }
 0xc48   :  { %v3215_v9 = vmul.f32 0.03125, %v3204_v32 }
 0xc49   :  { %v3222_v60 = vadd.f32 1e-12, %v3216_v13 }
 0xc4a   :  { %v3221_v46 = vadd.f32 1e-12, %v3215_v9 }
 0xc4b   :  { %8543 = vrsqrt.f32 %v3222_v60 }
 0xc4c   :  { %8545 = vrsqrt.f32 %v3221_v46 }
 0xc55   :  { %v8544_v35 = vpop.eup %8543 }
 0xc56   :  { %v8546_v21 = vpop.eup %8545  ;;  %v3234_v8 = vmul.f32 %v8544_v35, %v10184_v27 }
 0xc57   :  { %v3233_v51 = vmul.f32 %v8546_v21, %v10187_v25  ;;  %v3210_v53 = vpop.xlane.xlu0 %3209 }
 0xc58   :  { %v3218_v1 = vmul.f32 0.03125, %v3210_v53  ;;  %v3244_v63 = vmul.f32 %v3242_v23, %v3234_v8  ;;  %v3208_v42 = vpop.xlane.xlu1 %3207 }
 0xc59   :  { %v3243_v3 = vmul.f32 %v3242_v23, %v3233_v51  ;;  %v3217_v6 = vmul.f32 0.03125, %v3208_v42 }
 0xc5a   :  { %v3224_v45 = vadd.f32 1e-12, %v3218_v1  ;;  %v3254_v39 = vadd.f32 %v3252_v62, %v3244_v63 }
 0xc5b   :  { %v3253_v24 = vadd.f32 %v3252_v62, %v3243_v3  ;;  %v3223_v40 = vadd.f32 1e-12, %v3217_v6 }
 0xc5c   :  { %8547 = vrsqrt.f32 %v3224_v45 }
 0xc5d   :  { %3391 = vmatmul.mubr.f32.vlgmr.msra.gmra.mrb[78].mxu1 %v3253_v24  ;;  %7345 = vmatprep.mubr.f32.mxu0 %v3253_v24  ;;  %8549 = vrsqrt.f32 %v3223_v40  ;;  %v3214_v27 = vpop.xlane.xlu0 %3213 }
 0xc5e   :  { %7346 = vmatmul.mubr.f32.vlgmr.msra.gmra.mrb[66].mxu0 %v3254_v39  ;;  %3396 = vmatprep.mubr.f32.mxu1 %v11358_v17  ;;  %v3220_v25 = vmul.f32 0.03125, %v3214_v27  ;;  %v3212_v58 = vpop.xlane.xlu1 %3211 }
 0xc5f   :  { %v3219_v18 = vmul.f32 0.03125, %v3212_v58 }
 0xc60   :  { %v3226_v22 = vadd.f32 1e-12, %v3220_v25 }
 0xc61   :  { %3397 = vmatmul.mubr.f32.gmra.mrb[80].mxu1 %v3254_v39  ;;  %v3225_v26 = vadd.f32 1e-12, %v3219_v18 }
 0xc62   :  { %3402 = vmatprep.mubr.f32.mxu1 %v11358_v17  ;;  %8551 = vrsqrt.f32 %v3226_v22 }
 0xc63   :  { %8553 = vrsqrt.f32 %v3225_v26 }
 0xc66   :  { %v8548_v11 = vpop.eup %8547 }
 0xc67   :  { %v8550_v56 = vpop.eup %8549  ;;  %v3236_v30 = vmul.f32 %v8548_v11, %v10196_v43 }
 0xc68   :  { %v3235_v49 = vmul.f32 %v8550_v56, %v10205_v54 }
 0xc69   :  { %v3246_v7 = vmul.f32 %v3242_v23, %v3236_v30 }
 0xc6a   :  { %v3245_v36 = vmul.f32 %v3242_v23, %v3235_v49 }
 0xc6b   :  { %v3256_v44 = vadd.f32 %v3252_v62, %v3246_v7 }
 0xc6c   :  { %v3255_v31 = vadd.f32 %v3252_v62, %v3245_v36  ;;  %v8552_v0 = vpop.eup %8551 }
 0xc6d   :  { %v8554_v2 = vpop.eup %8553  ;;  %v3238_v10 = vmul.f32 %v8552_v0, %v10250_v20  ;;  %v6368_v20 = vld [vmem:[%s11346_s4 + $0x3] sm:$0x7] }
 0xc6e   :  { %3403 = vmatmul.mubr.f32.gmra.mrb[82].mxu1 %v3255_v31  ;;  %7348 = vmatprep.mubr.f32.mxu0 %v3255_v31  ;;  %v3237_v14 = vmul.f32 %v8554_v2, %v10262_v19  ;;  %v10333_v19 = vrot.slane %v6368_v20, %v9115_v33  ;;  %v10336_v9 = vrot.slane %v6368_v20, %v9143_v16 }
 0xc6f   :  { %7349 = vmatmul.mubr.f32.gmra.mrb[68].mxu0 %v3256_v44  ;;  %3408 = vmatprep.mubr.f32.mxu1 %v11358_v17  ;;  %v3248_v13 = vmul.f32 %v3242_v23, %v3238_v10  ;;  %v3318_v35 = vrot.slane %v6368_v20, %v9121_v37 }
 0xc70   :  { %v3247_v43 = vmul.f32 %v3242_v23, %v3237_v14 }
 0xc71   :  { %v3258_v32 = vadd.f32 %v3252_v62, %v3248_v13 }
 0xc72   :  { %3409 = vmatmul.mubr.f32.gmra.mrb[84].mxu1 %v3256_v44  ;;  %v3257_v54 = vadd.f32 %v3252_v62, %v3247_v43 }
 0xc73   :  { %3414 = vmatprep.mubr.f32.mxu1 %v11358_v17 }
 0xc74   :  { %7351 = vmatprep.mubr.f32.mxu0 %v3257_v54 }
 0xc75   :  { %7352 = vmatmul.mubr.f32.gmra.mrb[70].mxu0 %v3258_v32 }
 0xc76   :  { %3415 = vmatmul.mubr.f32.gmra.mrb[86].mxu1 %v3257_v54  ;;  %7390 = vmatprep.mubr.msk.f32.mxu0 %vm8703_vm1, %v11358_v17 }
 0xc77   :  { %3420 = vmatprep.mubr.f32.mxu1 %v11358_v17 }
 0xc7a   :  { %3421 = vmatmul.mubr.f32.gmra.mrb[88].mxu1 %v3258_v32 }
 0xc7b   :  { %7360 = vmatprep.mubr.msk.f32.mxu1 %vm8703_vm1, %v11358_v17 }
 0xd30   :  { %v3392_v60 = vpop.f32.mrb[78].mxu1 }
 0xd31   :  { %v3393_v46 = vadd.f32 %v3392_v60, %v10333_v19  ;;  %v3394_v34 = vpop.f32.mrb[79].mxu1  ;;  %v7347_v23 = vpop.f32.mrb[66].mxu0 }
 0xd32   :  { %v10341_v21 = vadd.f32 %v7347_v23, %v10336_v9  ;;  %v3493_v8 = vpop.f32.mrb[67].mxu0  ;;  %v3395_v63 = vadd.f32 %v3394_v34, %v3318_v35 }
 0xd33   :  { %v10344_v51 = vadd.f32 %v3493_v8, %v10336_v9  ;;  %3620 = vrot.lane.b32.xlu1 %v3393_v46, %s8705_s12 }
 0xd34   :  { %v3398_v33 = vpop.f32.mrb[80].mxu1 }
 0xd35   :  { %v3399_v53 = vadd.f32 %v3398_v33, %v10333_v19  ;;  %v3400_v62 = vpop.f32.mrb[81].mxu1  ;;  %v10350_v1 = vpack.i.bf16 %v10341_v21, %v10344_v51  ;;  %v8062_v37 = vpack.c.bf16 %v10341_v21, %v10344_v51 }
 0xd36   :  { %v3401_v42 = vadd.f32 %v3400_v62, %v3318_v35 }
 0xd37   :  { %3622 = vrot.lane.b32.xlu0 %v3399_v53, %s8705_s12 }
 0xd38   :  { %v8030_v3 = vpack.c.bf16 %v3401_v42, %v3395_v63  ;;  %v8294_v6 = vpack.i.bf16 %v3401_v42, %v3395_v63 }
 0xd3a   :  { %8032 = vmatpush3.bf16.xpose.msk.msra.mxu1 %vm9164_vm3, %v8030_v3  ;;  %8295 = vrot.lane.b32.xlu1 %v8294_v6, %s8705_s12 }
 0xd3b   :  { %7358 = vmatprep.subr.mxu1 %v11358_v17 }
 0xd3e   :  { %8300 = vrot.lane.b32.xlu1 %v8294_v6, %s8704_s11 }
 0xd41   :  { %v3404_v45 = vpop.f32.mrb[82].mxu1 }
 0xd42   :  { %8305 = vrot.lane.b32.xlu1 %v8294_v6, %s8706_s13  ;;  %v3405_v24 = vadd.f32 %v3404_v45, %v10333_v19  ;;  %v3406_v40 = vpop.f32.mrb[83].mxu1  ;;  %v7350_v39 = vpop.f32.mrb[68].mxu0 }
 0xd43   :  { %v3407_v27 = vadd.f32 %v3406_v40, %v3318_v35  ;;  %v3503_v25 = vpop.f32.mrb[69].mxu0  ;;  %v10380_v36 = vadd.f32 %v7350_v39, %v10336_v9 }
 0xd45   :  { %v3410_v58 = vpop.f32.mrb[84].mxu1  ;;  %3630 = vrot.lane.b32.xlu0 %v3407_v27, %s8705_s12  ;;  %7359 = vmatpush3.xpose.msk.msra.mxu1 %vm544_vm2, %v3407_v27 }
 0xd46   :  { %3624 = vrot.lane.b32.xlu1 %v3405_v24, %s8705_s12  ;;  %v3412_v18 = vpop.f32.mrb[85].mxu1  ;;  %8033 = vmatprep.subr.bf16.mxu1 %v11359_v47  ;;  %v10414_v54 = vadd.f32 %v3410_v58, %v10333_v19 }
 0xd47   :  { %v10371_v56 = vadd.f32 %v3412_v18, %v3318_v35 }
 0xd48   :  { %7361 = vmatmul.mubr.msk.f32.vlgmr.msra.gmra.mrb[90].mxu1 %vm544_vm2, %v3393_v46  ;;  %v7353_v26 = vpop.f32.mrb[70].mxu0 }
 0xd49   :  { %3724 = vrot.lane.b32.xlu0 %v3393_v46, %s8704_s11  ;;  %7363 = vmatprep.mubr.msk.f32.mxu1 %vm8703_vm1, %v11358_v17  ;;  %v3416_v22 = vpop.f32.mrb[86].mxu1  ;;  %v10374_v30 = vadd.f32 %v7353_v26, %v10336_v9  ;;  %v3513_v49 = vpop.f32.mrb[71].mxu0 }
 0xd4a   :  { %3726 = vrot.lane.b32.xlu1 %v3399_v53, %s8704_s11  ;;  %v3418_v11 = vpop.f32.mrb[87].mxu1  ;;  %v10383_v31 = vadd.f32 %v3513_v49, %v10336_v9  ;;  %v10417_v32 = vadd.f32 %v3416_v22, %v10333_v19 }
 0xd4b   :  { %v10376_v7 = vadd.f32 %v3418_v11, %v3318_v35 }
 0xd4c   :  { %7364 = vmatmul.mubr.msk.f32.gmra.mrb[92].mxu1 %vm544_vm2, %v3399_v53  ;;  %v10395_v14 = vpack.i.bf16 %v10383_v31, %v10380_v36  ;;  %v8074_v13 = vpack.c.bf16 %v10383_v31, %v10380_v36 }
 0xd4d   :  { %3828 = vrot.lane.b32.xlu0 %v3393_v46, %s8706_s13  ;;  %7366 = vmatprep.mubr.msk.f32.mxu1 %vm8703_vm1, %v11358_v17  ;;  %v8046_v44 = vpack.c.bf16 %v10376_v7, %v10371_v56  ;;  %v3422_v0 = vpop.f32.mrb[88].mxu1  ;;  %v8309_v2 = vpack.i.bf16 %v10376_v7, %v10371_v56 }
 0xd4e   :  { %3838 = vrot.lane.b32.xlu1 %v3407_v27, %s8706_s13  ;;  %v3424_v10 = vpop.f32.mrb[89].mxu1  ;;  %v10424_v20 = vadd.f32 %v3422_v0, %v10333_v19  ;;  %v10447_v19 = vadd.f32 %v3503_v25, %v10336_v9 }
 0xd4f   :  { %v10406_v43 = vadd.f32 %v3424_v10, %v3318_v35 }
 0xd50   :  { %7367 = vmatmul.mubr.msk.f32.gmra.mrb[94].mxu1 %vm544_vm2, %v3405_v24 }
 0xd51   :  { %3734 = vrot.lane.b32.xlu0 %v3407_v27, %s8704_s11  ;;  %7375 = vmatprep.mubr.msk.f32.mxu1 %vm8703_vm1, %v11358_v17 }
 0xd52   :  { %8310 = vrot.lane.b32.xlu1 %v8309_v2, %s8705_s12 }
 0xd55   :  { %3830 = vrot.lane.b32.xlu0 %v3399_v53, %s8706_s13 }
 0xd56   :  { %3728 = vrot.lane.b32.xlu1 %v3405_v24, %s8704_s11 }
 0xd59   :  { %3832 = vrot.lane.b32.xlu0 %v3405_v24, %s8706_s13 }
 0xd5a   :  { %4040 = vrot.lane.b32.xlu1 %v10406_v43, %s8705_s12 }
 0xd5d   :  { %8315 = vrot.lane.b32.xlu0 %v8309_v2, %s8704_s11 }
 0xd5e   :  { %8320 = vrot.lane.b32.xlu1 %v8309_v2, %s8706_s13 }
 0xd61   :  { %4030 = vrot.lane.b32.xlu0 %v10414_v54, %s8705_s12 }
 0xd62   :  { %4032 = vrot.lane.b32.xlu1 %v10417_v32, %s8705_s12 }
 0xd65   :  { %4034 = vrot.lane.b32.xlu0 %v10424_v20, %s8705_s12 }
 0xd66   :  { %4144 = vrot.lane.b32.xlu1 %v10406_v43, %s8704_s11 }
 0xd69   :  { %4248 = vrot.lane.b32.xlu0 %v10406_v43, %s8706_s13 }
 0xd6a   :  { %4134 = vrot.lane.b32.xlu1 %v10414_v54, %s8704_s11 }
 0xd6d   :  { %4238 = vrot.lane.b32.xlu0 %v10414_v54, %s8706_s13 }
 0xd6e   :  { %4136 = vrot.lane.b32.xlu1 %v10417_v32, %s8704_s11 }
 0xd71   :  { %4240 = vrot.lane.b32.xlu0 %v10417_v32, %s8706_s13 }
 0xd72   :  { %4138 = vrot.lane.b32.xlu1 %v10424_v20, %s8704_s11 }
 0xd75   :  { %4242 = vrot.lane.b32.xlu0 %v10424_v20, %s8706_s13 }
 0xd76   :  { %8325 = vrot.lane.b32.xlu1 %v10350_v1, %s8705_s12 }
 0xd79   :  { %4750 = vrot.lane.b32.xlu0 %v10447_v19, %s8705_s12 }
 0xd7a   :  { %8330 = vrot.lane.b32.xlu1 %v10350_v1, %s8704_s11 }
 0xd7d   :  { %8335 = vrot.lane.b32.xlu0 %v10350_v1, %s8706_s13 }
 0xd7e   :  { %4848 = vrot.lane.b32.xlu1 %v10447_v19, %s8704_s11 }
 0xd81   :  { %4946 = vrot.lane.b32.xlu0 %v10447_v19, %s8706_s13 }
 0xd82   :  { %8340 = vrot.lane.b32.xlu1 %v10395_v14, %s8705_s12 }
 0xda5   :  { %v3621_v9 = vpop.permute.xlu1 %3620 }
 0xda9   :  { %v3623_v53 = vpop.permute.xlu0 %3622 }
 0xdac   :  { %v8296_v60 = vpop.permute.xlu1 %8295 }
 0xdad   :  { %v8298_v46 = vunpack.i.h.bf16 %v8296_v60  ;;  %v8297_v34 = vunpack.i.l.bf16 %v8296_v60 }
 0xdaf   :  { %v8034_v23 = vpack.c.bf16 %v8298_v46, %v8297_v34 }
 0xdb0   :  { %v8301_v35 = vpop.permute.xlu1 %8300 }
 0xdb1   :  { %v8303_v8 = vunpack.i.h.bf16 %v8301_v35  ;;  %v8302_v33 = vunpack.i.l.bf16 %v8301_v35  ;;  %8036 = vmatpush3.bf16.xpose.msk.msra.mxu1 %vm9164_vm3, %v8034_v23 }
 0xdb2   :  { %7373 = vmatprep.subr.mxu1 %v11358_v17 }
 0xdb3   :  { %v8038_v62 = vpack.c.bf16 %v8303_v8, %v8302_v33 }
 0xdb4   :  { %v8306_v1 = vpop.permute.xlu1 %8305 }
 0xdb5   :  { %8040 = vmatpush3.bf16.xpose.msk.msra.mxu0 %vm9164_vm3, %v8038_v62  ;;  %v8308_v63 = vunpack.i.h.bf16 %v8306_v1  ;;  %v8307_v42 = vunpack.i.l.bf16 %v8306_v1 }
 0xdb6   :  { %7388 = vmatprep.subr.mxu0 %v11358_v17 }
 0xdb7   :  { %v3631_v3 = vpop.permute.xlu0 %3630  ;;  %v8042_v45 = vpack.c.bf16 %v8308_v63, %v8307_v42 }
 0xdb8   :  { %v3625_v6 = vpop.permute.xlu1 %3624 }
 0xdb9   :  { %7374 = vmatpush3.xpose.msk.msra.mxu1 %vm544_vm2, %v3631_v3 }
 0xdba   :  { %8041 = vmatprep.subr.bf16.mxu1 %v11359_v47 }
 0xdbb   :  { %v3725_v24 = vpop.permute.xlu0 %3724 }
 0xdbc   :  { %v3727_v40 = vpop.permute.xlu1 %3726  ;;  %7376 = vmatmul.mubr.msk.f32.vlgmr.msra.gmra.mrb[96].mxu1 %vm544_vm2, %v3621_v9 }
 0xdbd   :  { %8044 = vmatpush3.bf16.xpose.msk.msra.mxu1 %vm9164_vm3, %v8042_v45  ;;  %7378 = vmatprep.mubr.msk.f32.mxu1 %vm8703_vm1, %v11358_v17 }
 0xdbe   :  { %7403 = vmatprep.subr.mxu1 %v11358_v17 }
 0xdbf   :  { %v3829_v39 = vpop.permute.xlu0 %3828 }
 0xdc0   :  { %v3839_v27 = vpop.permute.xlu1 %3838  ;;  %7379 = vmatmul.mubr.msk.f32.gmra.mrb[98].mxu1 %vm544_vm2, %v3623_v53 }
 0xdc1   :  { %7381 = vmatprep.mubr.msk.f32.mxu1 %vm8703_vm1, %v11358_v17 }
 0xdc3   :  { %v3735_v25 = vpop.permute.xlu0 %3734 }
 0xdc4   :  { %v8311_v58 = vpop.permute.xlu1 %8310  ;;  %7382 = vmatmul.mubr.msk.f32.gmra.mrb[100].mxu1 %vm544_vm2, %v3625_v6  ;;  %7389 = vmatpush3.xpose.msk.msra.mxu0 %vm544_vm2, %v3735_v25 }
 0xdc5   :  { %v8313_v18 = vunpack.i.h.bf16 %v8311_v58  ;;  %v8312_v22 = vunpack.i.l.bf16 %v8311_v58  ;;  %7404 = vmatpush3.xpose.msk.msra.mxu1 %vm544_vm2, %v3839_v27  ;;  %7405 = vmatprep.mubr.msk.f32.mxu1 %vm8703_vm1, %v11358_v17 }
 0xdc6   :  { %8045 = vmatprep.subr.bf16.mxu0 %v11359_v47  ;;  %8049 = vmatprep.subr.bf16.mxu1 %v11359_v47 }
 0xdc7   :  { %v8050_v26 = vpack.c.bf16 %v8313_v18, %v8312_v22  ;;  %v3831_v11 = vpop.permute.xlu0 %3830  ;;  %7391 = vmatmul.mubr.msk.f32.vlgmr.msra.gmra.mrb[72].mxu0 %vm544_vm2, %v3725_v24 }
 0xdc8   :  { %v3729_v49 = vpop.permute.xlu1 %3728  ;;  %7406 = vmatmul.mubr.msk.f32.vlgmr.msra.gmra.mrb[102].mxu1 %vm544_vm2, %v3829_v39  ;;  %8048 = vmatpush3.bf16.xpose.msk.msra.mxu0 %vm9164_vm3, %v8046_v44 }
 0xdc9   :  { %8052 = vmatpush3.bf16.xpose.msk.msra.mxu1 %vm9164_vm3, %v8050_v26  ;;  %7393 = vmatprep.mubr.msk.f32.mxu0 %vm8703_vm1, %v11358_v17 }
 0xdca   :  { %7408 = vmatprep.mubr.msk.f32.mxu1 %vm8703_vm1, %v11358_v17  ;;  %7418 = vmatprep.subr.mxu0 %v11358_v17 }
 0xdcb   :  { %v3833_v0 = vpop.permute.xlu0 %3832  ;;  %7394 = vmatmul.mubr.msk.f32.gmra.mrb[74].mxu0 %vm544_vm2, %v3727_v40  ;;  %7433 = vmatprep.subr.mxu1 %v11358_v17 }
 0xdcc   :  { %v4041_v56 = vpop.permute.xlu1 %4040  ;;  %7409 = vmatmul.mubr.msk.f32.gmra.mrb[104].mxu1 %vm544_vm2, %v3831_v11  ;;  %7396 = vmatprep.mubr.msk.f32.mxu0 %vm8703_vm1, %v11358_v17 }
 0xdcd   :  { %7411 = vmatprep.mubr.msk.f32.mxu1 %vm8703_vm1, %v11358_v17 }
 0xdcf   :  { %v8316_v7 = vpop.permute.xlu0 %8315  ;;  %7397 = vmatmul.mubr.msk.f32.gmra.mrb[76].mxu0 %vm544_vm2, %v3729_v49 }
 0xdd0   :  { %v8321_v44 = vpop.permute.xlu1 %8320  ;;  %v8318_v2 = vunpack.i.h.bf16 %v8316_v7  ;;  %v8317_v10 = vunpack.i.l.bf16 %v8316_v7  ;;  %7412 = vmatmul.mubr.msk.f32.gmra.mrb[106].mxu1 %vm544_vm2, %v3833_v0  ;;  %7419 = vmatpush3.xpose.msk.msra.mxu0 %vm544_vm2, %v10406_v43 }
 0xdd1   :  { %v8323_v9 = vunpack.i.h.bf16 %v8321_v44  ;;  %v8322_v60 = vunpack.i.l.bf16 %v8321_v44  ;;  %7434 = vmatpush3.xpose.msk.msra.mxu1 %vm544_vm2, %v4041_v56  ;;  %7420 = vmatprep.mubr.msk.f32.mxu0 %vm8703_vm1, %v11358_v17 }
 0xdd2   :  { %v8054_v46 = vpack.c.bf16 %v8318_v2, %v8317_v10  ;;  %7435 = vmatprep.mubr.msk.f32.mxu1 %vm8703_vm1, %v11358_v17  ;;  %8053 = vmatprep.subr.bf16.mxu0 %v11359_v47 }
 0xdd3   :  { %v8058_v34 = vpack.c.bf16 %v8323_v9, %v8322_v60  ;;  %v4031_v23 = vpop.permute.xlu0 %4030  ;;  %7421 = vmatmul.mubr.msk.f32.vlgmr.msra.gmra.mrb[78].mxu0 %vm544_vm2, %v10414_v54  ;;  %8057 = vmatprep.subr.bf16.mxu1 %v11359_v47 }
 0xdd4   :  { %v4033_v43 = vpop.permute.xlu1 %4032  ;;  %7436 = vmatmul.mubr.msk.f32.vlgmr.msra.gmra.mrb[108].mxu1 %vm544_vm2, %v4031_v23  ;;  %8056 = vmatpush3.bf16.xpose.msk.msra.mxu0 %vm9164_vm3, %v8054_v46 }
 0xdd5   :  { %8060 = vmatpush3.bf16.xpose.msk.msra.mxu1 %vm9164_vm3, %v8058_v34  ;;  %7423 = vmatprep.mubr.msk.f32.mxu0 %vm8703_vm1, %v11358_v17 }
 0xdd6   :  { %7438 = vmatprep.mubr.msk.f32.mxu1 %vm8703_vm1, %v11358_v17  ;;  %7448 = vmatprep.subr.mxu0 %v11358_v17 }
 0xdd7   :  { %v4035_v54 = vpop.permute.xlu0 %4034  ;;  %7424 = vmatmul.mubr.msk.f32.gmra.mrb[80].mxu0 %vm544_vm2, %v10417_v32  ;;  %7463 = vmatprep.subr.mxu1 %v11358_v17 }
 0xdd8   :  { %v4145_v35 = vpop.permute.xlu1 %4144  ;;  %7439 = vmatmul.mubr.msk.f32.gmra.mrb[110].mxu1 %vm544_vm2, %v4033_v43  ;;  %7426 = vmatprep.mubr.msk.f32.mxu0 %vm8703_vm1, %v11358_v17 }
 0xdd9   :  { %7441 = vmatprep.mubr.msk.f32.mxu1 %vm8703_vm1, %v11358_v17 }
 0xddb   :  { %v4249_v38 = vpop.permute.xlu0 %4248  ;;  %7427 = vmatmul.mubr.msk.f32.gmra.mrb[82].mxu0 %vm544_vm2, %v10424_v20 }
 0xddc   :  { %v4135_v8 = vpop.permute.xlu1 %4134  ;;  %7442 = vmatmul.mubr.msk.f32.gmra.mrb[112].mxu1 %vm544_vm2, %v4035_v54  ;;  %7449 = vmatpush3.xpose.msk.msra.mxu0 %vm544_vm2, %v4145_v35 }
 0xddd   :  { %7464 = vmatpush3.xpose.msk.msra.mxu1 %vm544_vm2, %v4249_v38  ;;  %7450 = vmatprep.mubr.msk.f32.mxu0 %vm8703_vm1, %v11358_v17 }
 0xdde   :  { %7465 = vmatprep.mubr.msk.f32.mxu1 %vm8703_vm1, %v11358_v17  ;;  %8061 = vmatprep.subr.bf16.mxu0 %v11359_v47 }
 0xddf   :  { %v4239_v32 = vpop.permute.xlu0 %4238  ;;  %7451 = vmatmul.mubr.msk.f32.vlgmr.msra.gmra.mrb[84].mxu0 %vm544_vm2, %v4135_v8  ;;  %8064 = vmatprep.subr.bf16.mxu1 %v11359_v47 }
 0xde0   :  { %v4137_v20 = vpop.permute.xlu1 %4136  ;;  %7466 = vmatmul.mubr.msk.f32.vlgmr.msra.gmra.mrb[114].mxu1 %vm544_vm2, %v4239_v32  ;;  %8063 = vmatpush3.bf16.msra.mxu0 %v8062_v37 }
 0xde1   :  { %7453 = vmatprep.mubr.msk.f32.mxu0 %vm8703_vm1, %v11358_v17  ;;  %7468 = vmatprep.mubr.msk.f32.mxu1 %vm8703_vm1, %v11358_v17 }
 0xde2   :  { %7478 = vmatprep.subr.mxu0 %v11358_v17 }
 0xde3   :  { %v4241_v33 = vpop.permute.xlu0 %4240  ;;  %7454 = vmatmul.mubr.msk.f32.gmra.mrb[86].mxu0 %vm544_vm2, %v4137_v20 }
 0xde4   :  { %v4139_v53 = vpop.permute.xlu1 %4138  ;;  %7469 = vmatmul.mubr.msk.f32.gmra.mrb[116].mxu1 %vm544_vm2, %v4241_v33  ;;  %7479 = vmatpush3.msra.mxu0 %v10447_v19 }
 0xde5   :  { %7456 = vmatprep.mubr.msk.f32.mxu0 %vm8703_vm1, %v11358_v17  ;;  %7471 = vmatprep.mubr.msk.f32.mxu1 %vm8703_vm1, %v11358_v17 }
 0xde6   :  { %8067 = vmatprep.subr.bf16.mxu0 %v11359_v47 }
 0xde7   :  { %v4243_v21 = vpop.permute.xlu0 %4242  ;;  %7457 = vmatmul.mubr.msk.f32.gmra.mrb[88].mxu0 %vm544_vm2, %v4139_v53 }
 0xde8   :  { %v8326_v51 = vpop.permute.xlu1 %8325  ;;  %7472 = vmatmul.mubr.msk.f32.gmra.mrb[118].mxu1 %vm544_vm2, %v4243_v21  ;;  %7480 = vmatprep.mubr.msk.f32.mxu0 %vm8703_vm1, %v11358_v17 }
 0xde9   :  { %v8328_v37 = vunpack.i.h.bf16 %v8326_v51  ;;  %v8327_v62 = vunpack.i.l.bf16 %v8326_v51  ;;  %7495 = vmatprep.mubr.msk.f32.mxu1 %vm8703_vm1, %v11358_v17 }
 0xdeb   :  { %v8065_v19 = vpack.c.bf16 %v8328_v37, %v8327_v62  ;;  %v4751_v1 = vpop.permute.xlu0 %4750 }
 0xdec   :  { %v10607_v51 = vpop.permute.xlu1 %8330 }
 0xded   :  { %8066 = vmatpush3.bf16.msra.mxu1 %v8065_v19 }
 0xdee   :  { %7493 = vmatprep.subr.mxu1 %v11358_v17 }
 0xdf1   :  { %7494 = vmatpush3.msra.mxu1 %v4751_v1 }
 0xdf2   :  { %8070 = vmatprep.subr.bf16.mxu1 %v11359_v47 }
 0xe1b   :  { %v3606_v63 = vpop.f32.mrb[90].mxu1 }
 0xe1c   :  { %v4342_v42 = vmul.f32 0.35355338, %v3606_v63  ;;  %v7362_v3 = vpop.f32.mrb[91].mxu1 }
 0xe1e   :  { %v10575_v6 = vadd.f32 %v4342_v42, %v9371_v29 }
 0xe1f   :  { %v3611_v45 = vpop.f32.mrb[92].mxu1 }
 0xe20   :  { %v4343_v24 = vmul.f32 0.35355338, %v3611_v45  ;;  %v7365_v40 = vpop.f32.mrb[93].mxu1  ;;  %v4390_v39 = vsel %vm1413_vm5, %v10575_v6, -inf }
 0xe21   :  { %4391 = vmax.xlane.f32.xlu1 %v4390_v39 }
 0xe22   :  { %v10580_v27 = vadd.f32 %v4343_v24, %v9371_v29 }
 0xe23   :  { %v3616_v25 = vpop.f32.mrb[94].mxu1 }
 0xe24   :  { %v4344_v58 = vmul.f32 0.35355338, %v3616_v25  ;;  %v7368_v18 = vpop.f32.mrb[95].mxu1  ;;  %v4393_v22 = vsel %vm1413_vm5, %v10580_v27, -inf }
 0xe25   :  { %4394 = vmax.xlane.f32.xlu0 %v4393_v22 }
 0xe26   :  { %v10585_v26 = vadd.f32 %v4344_v58, %v9371_v29 }
 0xe28   :  { %v4396_v11 = vsel %vm1413_vm5, %v10585_v26, -inf }
 0xe29   :  { %4397 = vmax.xlane.f32.xlu1 %v4396_v11 }
 0xe8f   :  { %v3710_v49 = vpop.f32.mrb[96].mxu1 }
 0xe90   :  { %v4345_v0 = vmul.f32 0.35355338, %v3710_v49  ;;  %v7377_v56 = vpop.f32.mrb[97].mxu1  ;;  %v10624_v49 = vpop.permute.xlu1 %4848 }
 0xe92   :  { %v10590_v7 = vadd.f32 %v4345_v0, %v9371_v29 }
 0xe93   :  { %v3715_v44 = vpop.f32.mrb[98].mxu1 }
 0xe94   :  { %v4346_v2 = vmul.f32 0.35355338, %v3715_v44  ;;  %v7380_v10 = vpop.f32.mrb[99].mxu1  ;;  %v4399_v9 = vsel %vm1413_vm5, %v10590_v7, -inf }
 0xe95   :  { %4400 = vmax.xlane.f32.xlu0 %v4399_v9 }
 0xe96   :  { %v10595_v60 = vadd.f32 %v4346_v2, %v9371_v29 }
 0xe97   :  { %v3720_v46 = vpop.f32.mrb[100].mxu1 }
 0xe98   :  { %v4347_v34 = vmul.f32 0.35355338, %v3720_v46  ;;  %v7383_v23 = vpop.f32.mrb[101].mxu1  ;;  %v4402_v43 = vsel %vm1413_vm5, %v10595_v60, -inf }
 0xe99   :  { %4403 = vmax.xlane.f32.xlu0 %v4402_v43 }
 0xe9a   :  { %v10600_v54 = vadd.f32 %v4347_v34, %v9371_v29  ;;  %v3814_v35 = vpop.f32.mrb[72].mxu0 }
 0xe9b   :  { %v4348_v38 = vmul.f32 0.35355338, %v3814_v35  ;;  %v3918_v8 = vpop.f32.mrb[102].mxu1  ;;  %v7392_v32 = vpop.f32.mrb[73].mxu0 }
 0xe9c   :  { %v4351_v20 = vmul.f32 0.35355338, %v3918_v8  ;;  %v7407_v33 = vpop.f32.mrb[103].mxu1  ;;  %v4405_v53 = vsel %vm1413_vm5, %v10600_v54, -inf }
 0xe9d   :  { %v10605_v21 = vadd.f32 %v4348_v38, %v9371_v29  ;;  %4406 = vmax.xlane.f32.xlu0 %v4405_v53 }
 0xe9e   :  { %v10610_v37 = vadd.f32 %v4351_v20, %v9371_v29  ;;  %v3819_v62 = vpop.f32.mrb[74].mxu0  ;;  %v10641_v20 = vpop.permute.xlu1 %8340 }
 0xe9f   :  { %v4349_v19 = vmul.f32 0.35355338, %v3819_v62  ;;  %v3923_v1 = vpop.f32.mrb[104].mxu1  ;;  %v7395_v63 = vpop.f32.mrb[75].mxu0  ;;  %v4408_v42 = vsel %vm1413_vm5, %v10605_v21, -inf }
 0xea0   :  { %v4352_v3 = vmul.f32 0.35355338, %v3923_v1  ;;  %v7410_v45 = vpop.f32.mrb[105].mxu1  ;;  %4409 = vmax.xlane.f32.xlu1 %v4408_v42  ;;  %v4417_v24 = vsel %vm1413_vm5, %v10610_v37, -inf }
 0xea1   :  { %v10617_v40 = vadd.f32 %v4349_v19, %v9371_v29  ;;  %4418 = vmax.xlane.f32.xlu0 %v4417_v24 }
 0xea2   :  { %v10620_v39 = vadd.f32 %v4352_v3, %v9371_v29  ;;  %v3824_v25 = vpop.f32.mrb[76].mxu0 }
 0xea3   :  { %v4350_v58 = vmul.f32 0.35355338, %v3824_v25  ;;  %v3928_v18 = vpop.f32.mrb[106].mxu1  ;;  %v7398_v22 = vpop.f32.mrb[77].mxu0  ;;  %v4411_v11 = vsel %vm1413_vm5, %v10617_v40, -inf }
 0xea4   :  { %v4353_v0 = vmul.f32 0.35355338, %v3928_v18  ;;  %v7413_v56 = vpop.f32.mrb[107].mxu1  ;;  %4412 = vmax.xlane.f32.xlu1 %v4411_v11  ;;  %v4420_v44 = vsel %vm1413_vm5, %v10620_v39, -inf }
 0xea5   :  { %v10629_v2 = vadd.f32 %v4350_v58, %v9371_v29  ;;  %4421 = vmax.xlane.f32.xlu0 %v4420_v44 }
 0xea6   :  { %v10632_v10 = vadd.f32 %v4353_v0, %v9371_v29  ;;  %v4016_v9 = vpop.f32.mrb[78].mxu0 }
 0xea7   :  { %v4354_v46 = vmul.f32 0.35355338, %v4016_v9  ;;  %v7422_v34 = vpop.f32.mrb[79].mxu0  ;;  %v4120_v23 = vpop.f32.mrb[108].mxu1  ;;  %v4414_v43 = vsel %vm1413_vm5, %v10629_v2, -inf }
 0xea8   :  { %v4357_v35 = vmul.f32 0.35355338, %v4120_v23  ;;  %4415 = vmax.xlane.f32.xlu1 %v4414_v43  ;;  %v4423_v38 = vsel %vm1413_vm5, %v10632_v10, -inf  ;;  %v7437_v8 = vpop.f32.mrb[109].mxu1 }
 0xea9   :  { %v10639_v32 = vadd.f32 %v4354_v46, %v9371_v29  ;;  %4424 = vmax.xlane.f32.xlu0 %v4423_v38 }
 0xeaa   :  { %v10644_v33 = vadd.f32 %v4357_v35, %v9371_v29  ;;  %v4021_v53 = vpop.f32.mrb[80].mxu0 }
 0xeab   :  { %v4355_v62 = vmul.f32 0.35355338, %v4021_v53  ;;  %v7425_v19 = vpop.f32.mrb[81].mxu0  ;;  %v4125_v1 = vpop.f32.mrb[110].mxu1  ;;  %v4426_v63 = vsel %vm1413_vm5, %v10639_v32, -inf }
 0xeac   :  { %v4358_v42 = vmul.f32 0.35355338, %v4125_v1  ;;  %4427 = vmax.xlane.f32.xlu1 %v4426_v63  ;;  %v7440_v3 = vpop.f32.mrb[111].mxu1  ;;  %v4435_v45 = vsel %vm1413_vm5, %v10644_v33, -inf }
 0xead   :  { %v10651_v24 = vadd.f32 %v4355_v62, %v9371_v29  ;;  %4436 = vmax.xlane.f32.xlu0 %v4435_v45 }
 0xeae   :  { %v10654_v25 = vadd.f32 %v4358_v42, %v9371_v29  ;;  %v4392_v58 = vpop.xlane.xlu1 %4391  ;;  %v4026_v18 = vpop.f32.mrb[82].mxu0 }
 0xeaf   :  { %v4462_v22 = vsub.f32 %v10575_v6, %v4392_v58  ;;  %v4356_v11 = vmul.f32 0.35355338, %v4026_v18  ;;  %v7428_v0 = vpop.f32.mrb[83].mxu0  ;;  %v4130_v56 = vpop.f32.mrb[112].mxu1  ;;  %v4429_v44 = vsel %vm1413_vm5, %v10651_v24, -inf }
 0xeb0   :  { %v4359_v9 = vmul.f32 0.35355338, %v4130_v56  ;;  %4430 = vmax.xlane.f32.xlu1 %v4429_v44  ;;  %v7443_v46 = vpop.f32.mrb[113].mxu1  ;;  %v4438_v34 = vsel %vm1413_vm5, %v10654_v25, -inf }
 0xeb1   :  { %v10662_v23 = vadd.f32 %v4356_v11, %v9371_v29  ;;  %4439 = vmax.xlane.f32.xlu0 %v4438_v34  ;;  %v4486_v43 = vmul.f32 1.442695, %v4462_v22 }
 0xeb2   :  { %v10665_v35 = vadd.f32 %v4359_v9, %v9371_v29  ;;  %v4224_v6 = vpop.f32.mrb[84].mxu0 }
 0xeb3   :  { %v4360_v38 = vmul.f32 0.35355338, %v4224_v6  ;;  %v7452_v8 = vpop.f32.mrb[85].mxu0  ;;  %v4328_v53 = vpop.f32.mrb[114].mxu1  ;;  %v4432_v62 = vsel %vm1413_vm5, %v10662_v23, -inf  ;;  %8555 = vpow2.f32 %v4486_v43 }
 0xeb4   :  { %v4363_v19 = vmul.f32 0.35355338, %v4328_v53  ;;  %4433 = vmax.xlane.f32.xlu1 %v4432_v62  ;;  %v7467_v1 = vpop.f32.mrb[115].mxu1  ;;  %v4441_v63 = vsel %vm1413_vm5, %v10665_v35, -inf }
 0xeb5   :  { %v10672_v42 = vadd.f32 %v4360_v38, %v9371_v29  ;;  %4442 = vmax.xlane.f32.xlu0 %v4441_v63 }
 0xeb6   :  { %v10675_v3 = vadd.f32 %v4363_v19, %v9371_v29  ;;  %v4229_v45 = vpop.f32.mrb[86].mxu0 }
 0xeb7   :  { %v4361_v58 = vmul.f32 0.35355338, %v4229_v45  ;;  %v7455_v18 = vpop.f32.mrb[87].mxu0  ;;  %v4333_v22 = vpop.f32.mrb[116].mxu1  ;;  %v4444_v11 = vsel %vm1413_vm5, %v10672_v42, -inf }
 0xeb8   :  { %v4364_v0 = vmul.f32 0.35355338, %v4333_v22  ;;  %4445 = vmax.xlane.f32.xlu1 %v4444_v11  ;;  %v7470_v56 = vpop.f32.mrb[117].mxu1  ;;  %v4453_v44 = vsel %vm1413_vm5, %v10675_v3, -inf }
 0xeb9   :  { %v10682_v9 = vadd.f32 %v4361_v58, %v9371_v29  ;;  %4454 = vmax.xlane.f32.xlu0 %v4453_v44  ;;  %v4398_v44 = vpop.xlane.xlu1 %4397 }
 0xeba   :  { %v10685_v46 = vadd.f32 %v4364_v0, %v9371_v29  ;;  %v4234_v34 = vpop.f32.mrb[88].mxu0 }
 0xebb   :  { %v4362_v43 = vmul.f32 0.35355338, %v4234_v34  ;;  %v7458_v6 = vpop.f32.mrb[89].mxu0  ;;  %v4338_v38 = vpop.f32.mrb[118].mxu1  ;;  %v4447_v8 = vsel %vm1413_vm5, %v10682_v9, -inf }
 0xebc   :  { %v4365_v53 = vmul.f32 0.35355338, %v4338_v38  ;;  %4448 = vmax.xlane.f32.xlu1 %v4447_v8  ;;  %v7473_v62 = vpop.f32.mrb[119].mxu1  ;;  %v4456_v19 = vsel %vm1413_vm5, %v10685_v46, -inf }
 0xebd   :  { %v10692_v1 = vadd.f32 %v4362_v43, %v9371_v29  ;;  %4457 = vmax.xlane.f32.xlu0 %v4456_v19  ;;  %v10699_v58 = vpop.eup %8555  ;;  %v4464_v43 = vsub.f32 %v10585_v26, %v4398_v44 }
 0xebe   :  { %v10695_v63 = vadd.f32 %v4365_v53, %v9371_v29  ;;  %v4534_v22 = vsel %vm1413_vm5, %v10699_v58, 0.0  ;;  %v10711_v29 = vpop.permute.xlu0 %8335 }
 0xebf   :  { %v4450_v45 = vsel %vm1413_vm5, %v10692_v1, -inf  ;;  %v4490_v6 = vmul.f32 1.442695, %v4464_v43 }
 0xec0   :  { %4451 = vmax.xlane.f32.xlu1 %v4450_v45  ;;  %v4459_v18 = vsel %vm1413_vm5, %v10695_v63, -inf }
 0xec1   :  { %4460 = vmax.xlane.f32.xlu0 %v4459_v18 }
 0xec2   :  { %v10713_v11 = vpop.permute.xlu0 %4946 }
 0xec4   :  { %4535 = vadd.xlane.f32.xlu1 %v4534_v22 }
 0xec6   :  { %v4395_v0 = vpop.xlane.xlu0 %4394 }
 0xec7   :  { %v4463_v56 = vsub.f32 %v10580_v27, %v4395_v0 }
 0xec9   :  { %v4488_v34 = vmul.f32 1.442695, %v4463_v56 }
 0xecb   :  { %8557 = vpow2.f32 %v4488_v34 }
 0xecc   :  { %8559 = vpow2.f32 %v4490_v6 }
 0xed5   :  { %8345 = vrot.lane.b32.xlu1 %v10395_v14, %s8704_s11  ;;  %v10717_v38 = vpop.eup %8557 }
 0xed6   :  { %v4537_v8 = vsel %vm1413_vm5, %v10717_v38, 0.0 }
 0xed7   :  { %5181 = vrot.lane.b32.xlu0 %v10374_v30, %s8705_s12 }
 0xed9   :  { %8350 = vrot.lane.b32.xlu1 %v10395_v14, %s8706_s13  ;;  %v10721_v14 = vpop.eup %8559 }
 0xeda   :  { %v4540_v53 = vsel %vm1413_vm5, %v10721_v14, 0.0 }
 0xefd   :  { %4538 = vadd.xlane.f32.xlu1 %v4537_v8 }
 0xf01   :  { %4541 = vadd.xlane.f32.xlu1 %v4540_v53 }
 0xf22   :  { %v4401_v27 = vpop.xlane.xlu0 %4400 }
 0xf23   :  { %v4465_v62 = vsub.f32 %v10590_v7, %v4401_v27 }
 0xf25   :  { %v4492_v19 = vmul.f32 1.442695, %v4465_v62 }
 0xf26   :  { %v4404_v26 = vpop.xlane.xlu0 %4403 }
 0xf27   :  { %8561 = vpow2.f32 %v4492_v19  ;;  %v4466_v45 = vsub.f32 %v10595_v60, %v4404_v26 }
 0xf29   :  { %v4494_v18 = vmul.f32 1.442695, %v4466_v45 }
 0xf2a   :  { %v4407_v22 = vpop.xlane.xlu0 %4406 }
 0xf2b   :  { %8563 = vpow2.f32 %v4494_v18  ;;  %v4467_v0 = vsub.f32 %v10600_v54, %v4407_v22 }
 0xf2d   :  { %v4496_v56 = vmul.f32 1.442695, %v4467_v0  ;;  %v4410_v44 = vpop.xlane.xlu1 %4409 }
 0xf2e   :  { %v4468_v34 = vsub.f32 %v10605_v21, %v4410_v44  ;;  %v4419_v43 = vpop.xlane.xlu0 %4418 }
 0xf2f   :  { %8565 = vpow2.f32 %v4496_v56  ;;  %v4471_v6 = vsub.f32 %v10610_v37, %v4419_v43 }
 0xf30   :  { %v4498_v8 = vmul.f32 1.442695, %v4468_v34 }
 0xf31   :  { %v10730_v7 = vpop.eup %8561  ;;  %v4504_v53 = vmul.f32 1.442695, %v4471_v6  ;;  %v4413_v27 = vpop.xlane.xlu1 %4412 }
 0xf32   :  { %8567 = vpow2.f32 %v4498_v8  ;;  %v4469_v60 = vsub.f32 %v10617_v40, %v4413_v27  ;;  %v4422_v62 = vpop.xlane.xlu0 %4421  ;;  %v4543_v54 = vsel %vm1413_vm5, %v10730_v7, 0.0 }
 0xf33   :  { %8569 = vpow2.f32 %v4504_v53  ;;  %4544 = vadd.xlane.f32.xlu0 %v4543_v54  ;;  %v4472_v40 = vsub.f32 %v10620_v39, %v4422_v62 }
 0xf34   :  { %v4500_v19 = vmul.f32 1.442695, %v4469_v60 }
 0xf35   :  { %v10735_v21 = vpop.eup %8563  ;;  %v4416_v26 = vpop.xlane.xlu1 %4415  ;;  %v4506_v6 = vmul.f32 1.442695, %v4472_v40 }
 0xf36   :  { %8571 = vpow2.f32 %v4500_v19  ;;  %v4470_v37 = vsub.f32 %v10629_v2, %v4416_v26  ;;  %v4425_v45 = vpop.xlane.xlu0 %4424  ;;  %v4546_v18 = vsel %vm1413_vm5, %v10735_v21, 0.0 }
 0xf37   :  { %4547 = vadd.xlane.f32.xlu0 %v4546_v18  ;;  %v4473_v8 = vsub.f32 %v10632_v10, %v4425_v45 }
 0xf38   :  { %v4502_v22 = vmul.f32 1.442695, %v4470_v37 }
 0xf39   :  { %v10741_v0 = vpop.eup %8565  ;;  %v4428_v56 = vpop.xlane.xlu1 %4427  ;;  %v4508_v10 = vmul.f32 1.442695, %v4473_v8 }
 0xf3a   :  { %8573 = vpow2.f32 %v4502_v22  ;;  %v4474_v44 = vsub.f32 %v10639_v32, %v4428_v56  ;;  %v4437_v34 = vpop.xlane.xlu0 %4436  ;;  %v4549_v43 = vsel %vm1413_vm5, %v10741_v0, 0.0 }
 0xf3b   :  { %4550 = vadd.xlane.f32.xlu0 %v4549_v43  ;;  %v4477_v26 = vsub.f32 %v10644_v33, %v4437_v34 }
 0xf3c   :  { %v10746_v2 = vpop.eup %8567  ;;  %v4510_v53 = vmul.f32 1.442695, %v4474_v44 }
 0xf3d   :  { %v10749_v27 = vpop.eup %8569  ;;  %v4431_v39 = vpop.xlane.xlu1 %4430  ;;  %v4552_v60 = vsel %vm1413_vm5, %v10746_v2, 0.0  ;;  %v4516_v56 = vmul.f32 1.442695, %v4477_v26 }
 0xf3e   :  { %8575 = vpow2.f32 %v4510_v53  ;;  %v4475_v32 = vsub.f32 %v10651_v24, %v4431_v39  ;;  %4553 = vadd.xlane.f32.xlu1 %v4552_v60  ;;  %v4440_v62 = vpop.xlane.xlu0 %4439  ;;  %v4561_v54 = vsel %vm1413_vm5, %v10749_v27, 0.0 }
 0xf3f   :  { %4562 = vadd.xlane.f32.xlu0 %v4561_v54  ;;  %8577 = vpow2.f32 %v4506_v6  ;;  %v4478_v44 = vsub.f32 %v10654_v25, %v4440_v62 }
 0xf40   :  { %v10756_v19 = vpop.eup %8571  ;;  %v4512_v37 = vmul.f32 1.442695, %v4475_v32 }
 0xf41   :  { %v4434_v45 = vpop.xlane.xlu1 %4433  ;;  %v4555_v18 = vsel %vm1413_vm5, %v10756_v19, 0.0 }
 0xf42   :  { %8579 = vpow2.f32 %v4512_v37  ;;  %v4476_v24 = vsub.f32 %v10662_v23, %v4434_v45  ;;  %4556 = vadd.xlane.f32.xlu1 %v4555_v18  ;;  %v4443_v40 = vpop.xlane.xlu0 %4442  ;;  %v4518_v23 = vmul.f32 1.442695, %v4478_v44 }
 0xf43   :  { %8581 = vpow2.f32 %v4508_v10  ;;  %v4479_v39 = vsub.f32 %v10665_v35, %v4443_v40 }
 0xf44   :  { %v10762_v22 = vpop.eup %8573  ;;  %v4514_v43 = vmul.f32 1.442695, %v4476_v24 }
 0xf45   :  { %v4446_v6 = vpop.xlane.xlu1 %4445  ;;  %v4558_v33 = vsel %vm1413_vm5, %v10762_v22, 0.0  ;;  %v4520_v37 = vmul.f32 1.442695, %v4479_v39 }
 0xf46   :  { %8583 = vpow2.f32 %v4514_v43  ;;  %v4480_v34 = vsub.f32 %v10672_v42, %v4446_v6  ;;  %4559 = vadd.xlane.f32.xlu1 %v4558_v33  ;;  %v4455_v8 = vpop.xlane.xlu0 %4454 }
 0xf47   :  { %8585 = vpow2.f32 %v4516_v56  ;;  %v4483_v42 = vsub.f32 %v10675_v3, %v4455_v8 }
 0xf48   :  { %v10768_v53 = vpop.eup %8575  ;;  %v4522_v60 = vmul.f32 1.442695, %v4480_v34 }
 0xf49   :  { %v4449_v32 = vpop.xlane.xlu1 %4448  ;;  %v4570_v25 = vsel %vm1413_vm5, %v10768_v53, 0.0  ;;  %v10773_v62 = vpop.eup %8577  ;;  %v4528_v56 = vmul.f32 1.442695, %v4483_v42 }
 0xf4a   :  { %8587 = vpow2.f32 %v4522_v60  ;;  %v4481_v54 = vsub.f32 %v10682_v9, %v4449_v32  ;;  %v4458_v10 = vpop.xlane.xlu0 %4457  ;;  %4571 = vadd.xlane.f32.xlu0 %v4570_v25  ;;  %v4564_v24 = vsel %vm1413_vm5, %v10773_v62, 0.0 }
 0xf4b   :  { %8589 = vpow2.f32 %v4518_v23  ;;  %v4484_v6 = vsub.f32 %v10685_v46, %v4458_v10 }
 0xf4c   :  { %v10777_v26 = vpop.eup %8579  ;;  %v4524_v45 = vmul.f32 1.442695, %v4481_v54 }
 0xf4d   :  { %v4452_v35 = vpop.xlane.xlu1 %4451  ;;  %v4573_v18 = vsel %vm1413_vm5, %v10777_v26, 0.0  ;;  %v10783_v40 = vpop.eup %8581  ;;  %v4530_v60 = vmul.f32 1.442695, %v4484_v6 }
 0xf4e   :  { %8591 = vpow2.f32 %v4524_v45  ;;  %v4482_v9 = vsub.f32 %v10692_v1, %v4452_v35  ;;  %4574 = vadd.xlane.f32.xlu1 %v4573_v18  ;;  %4565 = vadd.xlane.f32.xlu0 %v4564_v24  ;;  %v4461_v3 = vpop.xlane.xlu0 %4460  ;;  %v4567_v1 = vsel %vm1413_vm5, %v10783_v40, 0.0  ;;  %v8333_v35 = vunpack.i.h.bf16 %v10607_v51 }
 0xf4f   :  { %v4485_v44 = vsub.f32 %v10695_v63, %v4461_v3  ;;  %8593 = vpow2.f32 %v4520_v37  ;;  %v8332_v18 = vunpack.i.l.bf16 %v10607_v51 }
 0xf50   :  { %v10787_v43 = vpop.eup %8583  ;;  %v4526_v33 = vmul.f32 1.442695, %v4482_v9 }
 0xf51   :  { %v4532_v34 = vmul.f32 1.442695, %v4485_v44  ;;  %v4536_v8 = vpop.xlane.xlu1 %4535  ;;  %v4576_v23 = vsel %vm1413_vm5, %v10787_v43, 0.0  ;;  %v10794_v39 = vpop.eup %8585 }
 0xf52   :  { %8595 = vpow2.f32 %v4526_v33  ;;  %4577 = vadd.xlane.f32.xlu1 %v4576_v23  ;;  %4568 = vadd.xlane.f32.xlu0 %v4567_v1  ;;  %v4579_v32 = vsel %vm1413_vm5, %v10794_v39, 0.0  ;;  %v8068_v33 = vpack.c.bf16 %v8333_v35, %v8332_v18  ;;  %v5182_v35 = vpop.permute.xlu0 %5181 }
 0xf53   :  { %8597 = vpow2.f32 %v4528_v56 }
 0xf54   :  { %v10796_v63 = vpop.eup %8587  ;;  %8599 = vrcp.f32 %v4536_v8 }
 0xf55   :  { %8601 = vpow2.f32 %v4532_v34  ;;  %v4588_v46 = vsel %vm1413_vm5, %v10796_v63, 0.0  ;;  %v10802_v25 = vpop.eup %8589  ;;  %v10843_v23 = vpop.permute.xlu1 %8345 }
 0xf56   :  { %4589 = vadd.xlane.f32.xlu1 %v4588_v46  ;;  %4580 = vadd.xlane.f32.xlu0 %v4579_v32  ;;  %8603 = vpow2.f32 %v4530_v60  ;;  %v4582_v42 = vsel %vm1413_vm5, %v10802_v25, 0.0 }
 0xf58   :  { %v10804_v54 = vpop.eup %8591 }
 0xf59   :  { %v4591_v10 = vsel %vm1413_vm5, %v10804_v54, 0.0  ;;  %v10810_v37 = vpop.eup %8593  ;;  %v10845_v1 = vpop.permute.xlu1 %8350 }
 0xf5a   :  { %4592 = vadd.xlane.f32.xlu1 %v4591_v10  ;;  %4583 = vadd.xlane.f32.xlu0 %v4582_v42  ;;  %v4585_v3 = vsel %vm1413_vm5, %v10810_v37, 0.0 }
 0xf5c   :  { %v10812_v45 = vpop.eup %8595 }
 0xf5d   :  { %v10816_v24 = vpop.eup %8597  ;;  %v4594_v9 = vsel %vm1413_vm5, %v10812_v45, 0.0 }
 0xf5e   :  { %v8600_v56 = vpop.eup %8599  ;;  %4595 = vadd.xlane.f32.xlu1 %v4594_v9  ;;  %4586 = vadd.xlane.f32.xlu0 %v4585_v3  ;;  %v4597_v51 = vsel %vm1413_vm5, %v10816_v24, 0.0 }
 0xf5f   :  { %v10822_v44 = vpop.eup %8601  ;;  %v4630_v6 = vmul.f32 %v8600_v56, %v10699_v58  ;;  %v8337_v56 = vunpack.i.l.bf16 %v10711_v29 }
 0xf60   :  { %v10828_v34 = vpop.eup %8603  ;;  %v4603_v8 = vsel %vm1413_vm5, %v10822_v44, 0.0 }
 0xf61   :  { %7481 = vmatmul.mubr.msk.f32.vlgmr.msra.gmra.mrb[90].mxu0 %vm1413_vm5, %v4630_v6  ;;  %v4600_v58 = vsel %vm1413_vm5, %v10828_v34, 0.0 }
 0xf62   :  { %8069 = vmatpush3.bf16.msra.mxu0 %v8068_v33  ;;  %4598 = vadd.xlane.f32.xlu0 %v4597_v51 }
 0xf63   :  { %7508 = vmatprep.subr.mxu0 %v11358_v17  ;;  %4604 = vadd.xlane.f32.xlu1 %v4603_v8 }
 0xf64   :  { %7483 = vmatprep.mubr.msk.f32.mxu0 %vm8703_vm1, %v11358_v17 }
 0xf66   :  { %7509 = vmatpush3.msra.mxu0 %v10624_v49  ;;  %4601 = vadd.xlane.f32.xlu0 %v4600_v58 }
 0xf67   :  { %8073 = vmatprep.subr.bf16.mxu0 %v11359_v47 }
 0xf74   :  { %5279 = vrot.lane.b32.xlu1 %v10374_v30, %s8704_s11 }
 0xf7c   :  { %5377 = vrot.lane.b32.xlu0 %v10374_v30, %s8706_s13 }
 0xf8a   :  { %v4539_v60 = vpop.xlane.xlu1 %4538 }
 0xf8b   :  { %8605 = vrcp.f32 %v4539_v60 }
 0xf8e   :  { %v4542_v46 = vpop.xlane.xlu1 %4541 }
 0xf8f   :  { %8607 = vrcp.f32 %v4542_v46 }
 0xf95   :  { %v8606_v32 = vpop.eup %8605 }
 0xf96   :  { %v4631_v49 = vmul.f32 %v8606_v32, %v10717_v38  ;;  %v8338_v38 = vunpack.i.h.bf16 %v10711_v29 }
 0xf98   :  { %7484 = vmatmul.mubr.msk.f32.gmra.mrb[92].mxu0 %vm1413_vm5, %v4631_v49  ;;  %v8071_v8 = vpack.c.bf16 %v8338_v38, %v8337_v56  ;;  %v8343_v49 = vunpack.i.h.bf16 %v10641_v20  ;;  %v8347_v56 = vunpack.i.l.bf16 %v10843_v23 }
 0xf99   :  { %v8608_v10 = vpop.eup %8607  ;;  %7486 = vmatprep.mubr.msk.f32.mxu0 %vm8703_vm1, %v11358_v17 }
 0xf9a   :  { %v4632_v42 = vmul.f32 %v8608_v10, %v10721_v14  ;;  %v8342_v10 = vunpack.i.l.bf16 %v10641_v20 }
 0xf9c   :  { %7487 = vmatmul.mubr.msk.f32.gmra.mrb[94].mxu0 %vm1413_vm5, %v4632_v42 }
 0xf9d   :  { %7510 = vmatprep.mubr.msk.f32.mxu0 %vm8703_vm1, %v11358_v17 }
 0xfc0   :  { %v4545_v18 = vpop.xlane.xlu0 %4544 }
 0xfc1   :  { %8609 = vrcp.f32 %v4545_v18 }
 0xfc4   :  { %v4548_v9 = vpop.xlane.xlu0 %4547 }
 0xfc5   :  { %8611 = vrcp.f32 %v4548_v9 }
 0xfc8   :  { %v4551_v3 = vpop.xlane.xlu0 %4550 }
 0xfc9   :  { %8613 = vrcp.f32 %v4551_v3 }
 0xfcb   :  { %v8610_v6 = vpop.eup %8609  ;;  %v4554_v33 = vpop.xlane.xlu1 %4553 }
 0xfcc   :  { %v4633_v14 = vmul.f32 %v8610_v6, %v10730_v7  ;;  %8615 = vrcp.f32 %v4554_v33  ;;  %v4563_v51 = vpop.xlane.xlu0 %4562 }
 0xfcd   :  { %8617 = vrcp.f32 %v4563_v51 }
 0xfce   :  { %7496 = vmatmul.mubr.msk.f32.vlgmr.msra.gmra.mrb[120].mxu1 %vm1413_vm5, %v4633_v14 }
 0xfcf   :  { %v8612_v58 = vpop.eup %8611  ;;  %8072 = vmatpush3.bf16.msra.mxu1 %v8071_v8  ;;  %v4557_v60 = vpop.xlane.xlu1 %4556  ;;  %7498 = vmatprep.mubr.msk.f32.mxu1 %vm8703_vm1, %v11358_v17 }
 0xfd0   :  { %8619 = vrcp.f32 %v4557_v60  ;;  %7523 = vmatprep.subr.mxu1 %v11358_v17  ;;  %v4634_v29 = vmul.f32 %v8612_v58, %v10735_v21 }
 0xfd2   :  { %7499 = vmatmul.mubr.msk.f32.gmra.mrb[122].mxu1 %vm1413_vm5, %v4634_v29 }
 0xfd3   :  { %v8614_v7 = vpop.eup %8613  ;;  %7524 = vmatpush3.msra.mxu1 %v10713_v11  ;;  %v4560_v46 = vpop.xlane.xlu1 %4559  ;;  %7501 = vmatprep.mubr.msk.f32.mxu1 %vm8703_vm1, %v11358_v17 }
 0xfd4   :  { %8621 = vrcp.f32 %v4560_v46  ;;  %v4635_v32 = vmul.f32 %v8614_v7, %v10741_v0  ;;  %8076 = vmatprep.subr.bf16.mxu1 %v11359_v47  ;;  %v8077_v0 = vpack.c.bf16 %v8343_v49, %v8342_v10  ;;  %v8353_v46 = vunpack.i.h.bf16 %v10845_v1 }
 0xfd6   :  { %v8616_v42 = vpop.eup %8615  ;;  %7502 = vmatmul.mubr.msk.f32.gmra.mrb[124].mxu1 %vm1413_vm5, %v4635_v32  ;;  %v8352_v32 = vunpack.i.l.bf16 %v10845_v1 }
 0xfd7   :  { %v8618_v21 = vpop.eup %8617  ;;  %v4636_v18 = vmul.f32 %v8616_v42, %v10746_v2  ;;  %v4572_v11 = vpop.xlane.xlu0 %4571  ;;  %7525 = vmatprep.mubr.msk.f32.mxu1 %vm8703_vm1, %v11358_v17 }
 0xfd8   :  { %v4639_v9 = vmul.f32 %v8618_v21, %v10749_v27  ;;  %8623 = vrcp.f32 %v4572_v11  ;;  %v8083_v1 = vpack.c.bf16 %v8353_v46, %v8352_v32  ;;  %v6450_v46 = vld [vmem:[%s11347_s5 + $0xc8] sm:$0xff]  ;;  %v6451_v32 = vld [vmem:[%s11347_s5 + $0xd0] sm:$0xff] }
 0xfd9   :  { %7511 = vmatmul.mubr.msk.f32.vlgmr.msra.gmra.mrb[96].mxu0 %vm1413_vm5, %v4636_v18 }
 0xfda   :  { %v8620_v3 = vpop.eup %8619  ;;  %7526 = vmatmul.mubr.msk.f32.vlgmr.msra.gmra.mrb[126].mxu1 %vm1413_vm5, %v4639_v9  ;;  %8075 = vmatpush3.bf16.msra.mxu0 %v8074_v13 }
 0xfdb   :  { %8078 = vmatpush3.bf16.msra.mxu1 %v8077_v0  ;;  %v4575_v20 = vpop.xlane.xlu1 %4574  ;;  %v4566_v2 = vpop.xlane.xlu0 %4565  ;;  %7513 = vmatprep.mubr.msk.f32.mxu0 %vm8703_vm1, %v11358_v17  ;;  %v4637_v38 = vmul.f32 %v8620_v3, %v10756_v19  ;;  %v8348_v19 = vunpack.i.h.bf16 %v10843_v23 }
 0xfdc   :  { %8625 = vrcp.f32 %v4575_v20  ;;  %7538 = vmatprep.subr.mxu0 %v11358_v17  ;;  %7553 = vmatprep.subr.mxu1 %v11358_v17 }
 0xfdd   :  { %8627 = vrcp.f32 %v4566_v2  ;;  %7514 = vmatmul.mubr.msk.f32.gmra.mrb[98].mxu0 %vm1413_vm5, %v4637_v38  ;;  %7528 = vmatprep.mubr.msk.f32.mxu1 %vm8703_vm1, %v11358_v17  ;;  %v8080_v33 = vpack.c.bf16 %v8348_v19, %v8347_v56  ;;  %v6441_v19 = vld [vmem:[%s11347_s5 + $0x80] sm:$0xff] }
 0xfde   :  { %v8622_v36 = vpop.eup %8621  ;;  %7539 = vmatpush3.msra.mxu0 %v10374_v30  ;;  %7516 = vmatprep.mubr.msk.f32.mxu0 %vm8703_vm1, %v11358_v17 }
 0xfdf   :  { %7554 = vmatpush3.msra.mxu1 %v5182_v35  ;;  %v4578_v31 = vpop.xlane.xlu1 %4577  ;;  %v4569_v13 = vpop.xlane.xlu0 %4568  ;;  %v4638_v27 = vmul.f32 %v8622_v36, %v10762_v22  ;;  %8079 = vmatprep.subr.bf16.mxu0 %v11359_v47 }
 0xfe0   :  { %8629 = vrcp.f32 %v4578_v31  ;;  %8082 = vmatprep.subr.bf16.mxu1 %v11359_v47 }
 0xfe1   :  { %8631 = vrcp.f32 %v4569_v13  ;;  %7517 = vmatmul.mubr.msk.f32.gmra.mrb[100].mxu0 %vm1413_vm5, %v4638_v27 }
 0xfe2   :  { %v8624_v30 = vpop.eup %8623  ;;  %7540 = vmatprep.mubr.msk.f32.mxu0 %vm8703_vm1, %v11358_v17 }
 0xfe3   :  { %v4642_v35 = vmul.f32 %v8624_v30, %v10768_v53  ;;  %v4590_v6 = vpop.xlane.xlu1 %4589  ;;  %v4581_v22 = vpop.xlane.xlu0 %4580 }
 0xfe4   :  { %8633 = vrcp.f32 %v4581_v22  ;;  %v6444_v22 = vld [vmem:[%s11347_s5 + $0x98] sm:$0xff] }
 0xfe5   :  { %7541 = vmatmul.mubr.msk.f32.vlgmr.msra.gmra.mrb[102].mxu0 %vm1413_vm5, %v4642_v35  ;;  %8635 = vrcp.f32 %v4590_v6  ;;  %v6443_v6 = vld [vmem:[%s11347_s5 + $0x90] sm:$0xff] }
 0xfe6   :  { %v8626_v14 = vpop.eup %8625  ;;  %8081 = vmatpush3.bf16.msra.mxu0 %v8080_v33  ;;  %7543 = vmatprep.mubr.msk.f32.mxu0 %vm8703_vm1, %v11358_v17  ;;  %v6445_v33 = vld [vmem:[%s11347_s5 + $0xa0] sm:$0xff] }
 0xfe7   :  { %v8628_v47 = vpop.eup %8627  ;;  %v4593_v23 = vpop.xlane.xlu1 %4592  ;;  %v4643_v8 = vmul.f32 %v8626_v14, %v10777_v26  ;;  %7568 = vmatprep.subr.mxu0 %v11358_v17  ;;  %v8089_v14 = vpack.c.bf16 %v6444_v22, %v6443_v6 }
 0xfe8   :  { %v4584_v51 = vpop.xlane.xlu0 %4583  ;;  %v4640_v53 = vmul.f32 %v8628_v47, %v10773_v62  ;;  %v6446_v47 = vld [vmem:[%s11347_s5 + $0xa8] sm:$0xff] }
 0xfe9   :  { %8637 = vrcp.f32 %v4584_v51  ;;  %7544 = vmatmul.mubr.msk.f32.gmra.mrb[104].mxu0 %vm1413_vm5, %v4643_v8  ;;  %v6447_v51 = vld [vmem:[%s11347_s5 + $0xb0] sm:$0xff]  ;;  %v6448_v8 = vld [vmem:[%s11347_s5 + $0xb8] sm:$0xff] }
 0xfea   :  { %v8630_v58 = vpop.eup %8629  ;;  %7529 = vmatmul.mubr.msk.f32.gmra.mrb[128].mxu1 %vm1413_vm5, %v4640_v53  ;;  %7546 = vmatprep.mubr.msk.f32.mxu0 %vm8703_vm1, %v11358_v17  ;;  %8639 = vrcp.f32 %v4593_v23  ;;  %v8093_v23 = vpack.c.bf16 %v6446_v47, %v6445_v33 }
 0xfeb   :  { %v8632_v60 = vpop.eup %8631  ;;  %v4596_v29 = vpop.xlane.xlu1 %4595  ;;  %7531 = vmatprep.mubr.msk.f32.mxu1 %vm8703_vm1, %v11358_v17  ;;  %v4644_v26 = vmul.f32 %v8630_v58, %v10787_v43 }
 0xfec   :  { %v4587_v7 = vpop.xlane.xlu0 %4586  ;;  %v4641_v62 = vmul.f32 %v8632_v60, %v10783_v40  ;;  %v8097_v60 = vpack.c.bf16 %v6448_v8, %v6447_v51 }
 0xfed   :  { %8641 = vrcp.f32 %v4587_v7  ;;  %7547 = vmatmul.mubr.msk.f32.gmra.mrb[106].mxu0 %vm1413_vm5, %v4644_v26 }
 0xfee   :  { %7532 = vmatmul.mubr.msk.f32.gmra.mrb[130].mxu1 %vm1413_vm5, %v4641_v62  ;;  %7570 = vmatprep.mubr.msk.f32.mxu0 %vm8703_vm1, %v11358_v17  ;;  %v8634_v49 = vpop.eup %8633  ;;  %8643 = vrcp.f32 %v4596_v29  ;;  %v6449_v62 = vld [vmem:[%s11347_s5 + $0xc0] sm:$0xff] }
 0xfef   :  { %7555 = vmatprep.mubr.msk.f32.mxu1 %vm8703_vm1, %v11358_v17  ;;  %v4645_v40 = vmul.f32 %v8634_v49, %v10794_v39  ;;  %v8636_v42 = vpop.eup %8635 }
 0xff0   :  { %v4599_v10 = vpop.xlane.xlu0 %4598  ;;  %v4605_v43 = vpop.xlane.xlu1 %4604  ;;  %v4648_v11 = vmul.f32 %v8636_v42, %v10796_v63 }
 0xff1   :  { %8645 = vrcp.f32 %v4599_v10  ;;  %v8101_v10 = vpack.c.bf16 %v6450_v46, %v6449_v62 }
 0xff2   :  { %7556 = vmatmul.mubr.msk.f32.vlgmr.msra.gmra.mrb[132].mxu1 %vm1413_vm5, %v4645_v40  ;;  %v6452_v40 = vld [vmem:[%s11347_s5 + $0xd8] sm:$0xff] }
 0xff3   :  { %v8638_v21 = vpop.eup %8637  ;;  %8084 = vmatpush3.bf16.msra.mxu1 %v8083_v1  ;;  %7558 = vmatprep.mubr.msk.f32.mxu1 %vm8703_vm1, %v11358_v17  ;;  %v8105_v42 = vpack.c.bf16 %v6452_v40, %v6451_v32  ;;  %v6453_v1 = vld [vmem:[%s11347_s5 + $0xe0] sm:$0xff] }
 0xff4   :  { %v4602_v18 = vpop.xlane.xlu0 %4601  ;;  %v5280_v9 = vpop.permute.xlu1 %5279  ;;  %v4646_v0 = vmul.f32 %v8638_v21, %v10802_v25  ;;  %7583 = vmatprep.subr.mxu1 %v11358_v17  ;;  %v6454_v21 = vld [vmem:[%s11347_s5 + $0xe8] sm:$0xff] }
 0xff5   :  { %8647 = vrcp.f32 %v4602_v18  ;;  %v8640_v39 = vpop.eup %8639  ;;  %7569 = vmatpush3.msra.mxu0 %v5280_v9 }
 0xff6   :  { %7559 = vmatmul.mubr.msk.f32.gmra.mrb[134].mxu1 %vm1413_vm5, %v4646_v0  ;;  %7571 = vmatmul.mubr.msk.f32.vlgmr.msra.gmra.mrb[108].mxu0 %vm1413_vm5, %v4648_v11  ;;  %8649 = vrcp.f32 %v4605_v43  ;;  %v4649_v25 = vmul.f32 %v8640_v39, %v10804_v54  ;;  %v8109_v39 = vpack.c.bf16 %v6454_v21, %v6453_v1 }
 0xff7   :  { %v8642_v3 = vpop.eup %8641  ;;  %7561 = vmatprep.mubr.msk.f32.mxu1 %vm8703_vm1, %v11358_v17  ;;  %7573 = vmatprep.mubr.msk.f32.mxu0 %vm8703_vm1, %v11358_v17 }
 0xff8   :  { %v5378_v20 = vpop.permute.xlu0 %5377  ;;  %v4647_v63 = vmul.f32 %v8642_v3, %v10810_v37  ;;  %v8644_v2 = vpop.eup %8643 }
 0xff9   :  { %7584 = vmatpush3.msra.mxu1 %v5378_v20  ;;  %v4650_v31 = vmul.f32 %v8644_v2, %v10812_v45  ;;  %v6456_v2 = vld [vmem:[%s11347_s5 + $0xf8] sm:$0xff] }
 0xffa   :  { %7562 = vmatmul.mubr.msk.f32.gmra.mrb[136].mxu1 %vm1413_vm5, %v4647_v63  ;;  %7574 = vmatmul.mubr.msk.f32.gmra.mrb[110].mxu0 %vm1413_vm5, %v4649_v25  ;;  %v6455_v25 = vld [vmem:[%s11347_s5 + $0xf0] sm:$0xff] }
 0xffb   :  { %v8646_v38 = vpop.eup %8645  ;;  %7576 = vmatprep.mubr.msk.f32.mxu0 %vm8703_vm1, %v11358_v17  ;;  %7585 = vmatprep.mubr.msk.f32.mxu1 %vm8703_vm1, %v11358_v17 }
 0xffc   :  { %v4651_v36 = vmul.f32 %v8646_v38, %v10816_v24 }
 0xffe   :  { %7577 = vmatmul.mubr.msk.f32.gmra.mrb[112].mxu0 %vm1413_vm5, %v4650_v31  ;;  %7586 = vmatmul.mubr.msk.f32.vlgmr.msra.gmra.mrb[138].mxu1 %vm1413_vm5, %v4651_v36  ;;  %v8113_v36 = vpack.c.bf16 %v6456_v2, %v6455_v25 }
 0xfff   :  { %v8648_v13 = vpop.eup %8647  ;;  %7588 = vmatprep.mubr.msk.f32.mxu1 %vm8703_vm1, %v11358_v17 }
0x1000   :  { %v4652_v54 = vmul.f32 %v8648_v13, %v10828_v34  ;;  %v8650_v37 = vpop.eup %8649  ;;  %v6442_v34 = vld [vmem:[%s11347_s5 + $0x88] sm:$0xff] }
0x1001   :  { %v4653_v24 = vmul.f32 %v8650_v37, %v10822_v44  ;;  %v8085_v56 = vpack.c.bf16 %v6442_v34, %v6441_v19 }
0x1002   :  { %7589 = vmatmul.mubr.msk.f32.gmra.mrb[140].mxu1 %vm1413_vm5, %v4652_v54 }
0x1003   :  { %7591 = vmatprep.mubr.msk.f32.mxu1 %vm8703_vm1, %v11358_v17  ;;  %8086 = vmatprep.subr.bf16.mxu0 %v8085_v56 }
0x1004   :  { %8088 = vmatpush3.bf16.msra.mxu0 %v8085_v56 }
0x1005   :  { %8090 = vmatprep.subr.bf16.mxu0 %v8089_v14 }
0x1006   :  { %7592 = vmatmul.mubr.msk.f32.gmra.mrb[142].mxu1 %vm1413_vm5, %v4653_v24 }
0x1008   :  { %8092 = vmatpush3.bf16.msra.mxu0 %v8089_v14 }
0x1009   :  { %8094 = vmatprep.subr.bf16.mxu0 %v8093_v23 }
0x100c   :  { %8096 = vmatpush3.bf16.msra.mxu0 %v8093_v23 }
0x100d   :  { %8098 = vmatprep.subr.bf16.mxu0 %v8097_v60 }
0x1010   :  { %8100 = vmatpush3.bf16.msra.mxu0 %v8097_v60 }
0x1011   :  { %8102 = vmatprep.subr.bf16.mxu0 %v8101_v10 }
0x1014   :  { %8104 = vmatpush3.bf16.msra.mxu0 %v8101_v10 }
0x1015   :  { %8106 = vmatprep.subr.bf16.mxu0 %v8105_v42 }
0x1018   :  { %8108 = vmatpush3.bf16.msra.mxu0 %v8105_v42 }
0x1019   :  { %8110 = vmatprep.subr.bf16.mxu0 %v8109_v39 }
0x101c   :  { %8112 = vmatpush3.bf16.msra.mxu0 %v8109_v39 }
0x101d   :  { %8114 = vmatprep.subr.bf16.mxu0 %v8113_v36 }
0x1020   :  { %8116 = vmatpush3.bf16.msra.mxu0 %v8113_v36 }
0x1034   :  { %v10956_v45 = vpop.f32.mrb[90].mxu0 }
0x1035   :  { %v7482_v27 = vpop.f32.mrb[91].mxu0 }
0x106b   :  { %v10964_v30 = vpop.f32.mrb[92].mxu0 }
0x106c   :  { %v7485_v17 = vpop.f32.mrb[93].mxu0 }
0x106f   :  { %v10966_v44 = vpop.f32.mrb[94].mxu0 }
0x1070   :  { %v7488_v35 = vpop.f32.mrb[95].mxu0 }
0x10a1   :  { %v4830_v53 = vpop.f32.mrb[120].mxu1 }
0x10a2   :  { %v7497_v58 = vpop.f32.mrb[121].mxu1 }
0x10a5   :  { %v4835_v29 = vpop.f32.mrb[122].mxu1 }
0x10a6   :  { %v8354_v7 = vpack.i.bf16 %v4835_v29, %v4830_v53  ;;  %v7500_v26 = vpop.f32.mrb[123].mxu1 }
0x10a8   :  { %8355 = vrot.lane.b32.xlu1 %v8354_v7, %s8706_s13 }
0x10a9   :  { %v4840_v49 = vpop.f32.mrb[124].mxu1 }
0x10aa   :  { %v7503_v43 = vpop.f32.mrb[125].mxu1 }
0x10ac   :  { %v4928_v18 = vpop.f32.mrb[96].mxu0 }
0x10ad   :  { %v5026_v11 = vpop.f32.mrb[126].mxu1  ;;  %v7512_v9 = vpop.f32.mrb[97].mxu0 }
0x10ae   :  { %v7527_v0 = vpop.f32.mrb[127].mxu1 }
0x10b0   :  { %v4933_v3 = vpop.f32.mrb[98].mxu0 }
0x10b1   :  { %v8359_v20 = vpack.i.bf16 %v4933_v3, %v4928_v18  ;;  %v7515_v63 = vpop.f32.mrb[99].mxu0 }
0x10b3   :  { %8360 = vrot.lane.b32.xlu0 %v8359_v20, %s8704_s11 }
0x10b4   :  { %v4938_v38 = vpop.f32.mrb[100].mxu0 }
0x10b5   :  { %v7518_v31 = vpop.f32.mrb[101].mxu0 }
0x10b8   :  { %v11012_v13 = vpop.f32.mrb[102].mxu0 }
0x10b9   :  { %v7542_v54 = vpop.f32.mrb[103].mxu0 }
0x10bc   :  { %v11014_v37 = vpop.f32.mrb[104].mxu0 }
0x10bd   :  { %v5031_v24 = vpop.f32.mrb[128].mxu1  ;;  %v7545_v27 = vpop.f32.mrb[105].mxu0 }
0x10be   :  { %v8364_v19 = vpack.i.bf16 %v5031_v24, %v5026_v11  ;;  %v7530_v34 = vpop.f32.mrb[129].mxu1 }
0x10c0   :  { %8365 = vrot.lane.b32.xlu1 %v8364_v19, %s8705_s12  ;;  %v11017_v56 = vpop.f32.mrb[106].mxu0 }
0x10c1   :  { %v5036_v17 = vpop.f32.mrb[130].mxu1  ;;  %v7548_v35 = vpop.f32.mrb[107].mxu0 }
0x10c2   :  { %v7533_v6 = vpop.f32.mrb[131].mxu1 }
0x10c5   :  { %v5261_v22 = vpop.f32.mrb[132].mxu1 }
0x10c6   :  { %v8369_v33 = vpack.i.bf16 %v5261_v22, %v4840_v49  ;;  %v7557_v14 = vpop.f32.mrb[133].mxu1 }
0x10c8   :  { %8370 = vrot.lane.b32.xlu0 %v8369_v33, %s8706_s13 }
0x10c9   :  { %v5266_v47 = vpop.f32.mrb[134].mxu1  ;;  %v5359_v23 = vpop.f32.mrb[108].mxu0 }
0x10ca   :  { %v8374_v51 = vpack.i.bf16 %v5359_v23, %v4938_v38  ;;  %v7560_v8 = vpop.f32.mrb[135].mxu1  ;;  %v7572_v53 = vpop.f32.mrb[109].mxu0 }
0x10cc   :  { %8375 = vrot.lane.b32.xlu1 %v8374_v51, %s8704_s11 }
0x10cd   :  { %v5271_v58 = vpop.f32.mrb[136].mxu1  ;;  %v5364_v60 = vpop.f32.mrb[110].mxu0 }
0x10ce   :  { %v8379_v29 = vpack.i.bf16 %v5271_v58, %v5266_v47  ;;  %v7563_v7 = vpop.f32.mrb[137].mxu1  ;;  %v7575_v26 = vpop.f32.mrb[111].mxu0 }
0x10d0   :  { %8380 = vrot.lane.b32.xlu1 %v8379_v29, %s8706_s13 }
0x10d1   :  { %v5369_v62 = vpop.f32.mrb[112].mxu0  ;;  %v5457_v46 = vpop.f32.mrb[138].mxu1 }
0x10d2   :  { %v8389_v32 = vpack.i.bf16 %v5369_v62, %v5364_v60  ;;  %v8384_v49 = vpack.i.bf16 %v5457_v46, %v5036_v17  ;;  %v7578_v10 = vpop.f32.mrb[113].mxu0  ;;  %v7587_v40 = vpop.f32.mrb[139].mxu1 }
0x10d4   :  { %8385 = vrot.lane.b32.xlu0 %v8384_v49, %s8705_s12 }
0x10d5   :  { %v5462_v43 = vpop.f32.mrb[140].mxu1 }
0x10d6   :  { %v7590_v42 = vpop.f32.mrb[141].mxu1 }
0x10d8   :  { %8390 = vrot.lane.b32.xlu0 %v8389_v32, %s8704_s11 }
0x10d9   :  { %v5467_v1 = vpop.f32.mrb[142].mxu1 }
0x10da   :  { %v8394_v21 = vpack.i.bf16 %v5467_v1, %v5462_v43  ;;  %v7593_v18 = vpop.f32.mrb[143].mxu1  ;;  %v11052_v1 = vld [vmem:[%s11345_s8 + $0x8] sm:$0xff] }
0x10dc   :  { %8395 = vrot.lane.b32.xlu1 %v8394_v21, %s8705_s12 }
0x111a   :  { %v8356_v11 = vpop.permute.xlu1 %8355 }
0x111b   :  { %v8358_v0 = vunpack.i.h.bf16 %v8356_v11  ;;  %v8357_v39 = vunpack.i.l.bf16 %v8356_v11 }
0x111d   :  { %v5077_v25 = vsel %vm544_vm2, %v10964_v30, %v8358_v0  ;;  %v5076_v36 = vsel %vm544_vm2, %v10956_v45, %v8357_v39 }
0x1125   :  { %v8361_v9 = vpop.permute.xlu0 %8360 }
0x1126   :  { %v8363_v3 = vunpack.i.h.bf16 %v8361_v9  ;;  %v8362_v20 = vunpack.i.l.bf16 %v8361_v9 }
0x1128   :  { %v5080_v31 = vsel %vm2103_vm6, %v5077_v25, %v8363_v3  ;;  %v5079_v54 = vsel %vm2103_vm6, %v5076_v36, %v8362_v20 }
0x1132   :  { %v8366_v63 = vpop.permute.xlu1 %8365 }
0x1133   :  { %v8368_v2 = vunpack.i.h.bf16 %v8366_v63  ;;  %v8367_v38 = vunpack.i.l.bf16 %v8366_v63 }
0x1135   :  { %v5082_v24 = vsel %vm2107_vm7, %v5079_v54, %v8367_v38  ;;  %v5083_v27 = vsel %vm2107_vm7, %v5080_v31, %v8368_v2  ;;  %v6460_v54 = vld [vmem:[%s11348_s6 + $0x98] sm:$0xff] }
0x1136   :  { %7626 = vmatprep.mubr.f32.mxu0 %v5082_v24 }
0x1137   :  { %7627 = vmatmul.mubr.f32.vlgmr.msra.gmra.mrb[114].mxu0 %v5083_v27  ;;  %v6461_v27 = vld [vmem:[%s11348_s6 + $0xa0] sm:$0xff] }
0x113a   :  { %v8371_v19 = vpop.permute.xlu0 %8370 }
0x113b   :  { %v8373_v17 = vunpack.i.h.bf16 %v8371_v19  ;;  %v8372_v35 = vunpack.i.l.bf16 %v8371_v19  ;;  %v6462_v19 = vld [vmem:[%s11348_s6 + $0xa8] sm:$0xff] }
0x113d   :  { %v5078_v45 = vsel %vm544_vm2, %v10966_v44, %v8372_v35  ;;  %v5507_v47 = vsel %vm544_vm2, %v11012_v13, %v8373_v17 }
0x113e   :  { %v8376_v34 = vpop.permute.xlu1 %8375 }
0x113f   :  { %v8378_v30 = vunpack.i.h.bf16 %v8376_v34  ;;  %v8377_v6 = vunpack.i.l.bf16 %v8376_v34  ;;  %v8125_v34 = vpack.c.bf16 %v6462_v19, %v6461_v27 }
0x1141   :  { %v5081_v51 = vsel %vm2103_vm6, %v5078_v45, %v8377_v6  ;;  %v5510_v8 = vsel %vm2103_vm6, %v5507_v47, %v8378_v30 }
0x1142   :  { %v8381_v23 = vpop.permute.xlu1 %8380 }
0x1143   :  { %v8383_v29 = vunpack.i.h.bf16 %v8381_v23  ;;  %v8382_v7 = vunpack.i.l.bf16 %v8381_v23 }
0x1145   :  { %v5508_v13 = vsel %vm544_vm2, %v11014_v37, %v8382_v7  ;;  %v5509_v49 = vsel %vm544_vm2, %v11017_v56, %v8383_v29  ;;  %v5637_v37 = vrot.slane %v11052_v1, %v2661_v4 }
0x1146   :  { %v8386_v22 = vpop.permute.xlu0 %8385 }
0x1147   :  { %v8388_v33 = vunpack.i.h.bf16 %v8386_v22  ;;  %v8387_v14 = vunpack.i.l.bf16 %v8386_v22 }
0x1149   :  { %v5084_v53 = vsel %vm2107_vm7, %v5081_v51, %v8387_v14  ;;  %v5513_v58 = vsel %vm2107_vm7, %v5510_v8, %v8388_v33 }
0x114a   :  { %v8391_v60 = vpop.permute.xlu0 %8390  ;;  %7629 = vmatprep.mubr.f32.mxu0 %v5084_v53 }
0x114b   :  { %7630 = vmatmul.mubr.f32.gmra.mrb[116].mxu0 %v5513_v58  ;;  %v8393_v26 = vunpack.i.h.bf16 %v8391_v60  ;;  %v8392_v62 = vunpack.i.l.bf16 %v8391_v60 }
0x114d   :  { %v5511_v10 = vsel %vm2103_vm6, %v5508_v13, %v8392_v62  ;;  %v5512_v40 = vsel %vm2103_vm6, %v5509_v49, %v8393_v26  ;;  %v6463_v13 = vld [vmem:[%s11348_s6 + $0xb0] sm:$0xff]  ;;  %v6464_v49 = vld [vmem:[%s11348_s6 + $0xb8] sm:$0xff] }
0x114e   :  { %v8396_v44 = vpop.permute.xlu1 %8395 }
0x114f   :  { %v8398_v46 = vunpack.i.h.bf16 %v8396_v44  ;;  %v8397_v32 = vunpack.i.l.bf16 %v8396_v44 }
0x1151   :  { %v5514_v43 = vsel %vm2107_vm7, %v5511_v10, %v8397_v32  ;;  %v5515_v42 = vsel %vm2107_vm7, %v5512_v40, %v8398_v46  ;;  %v8129_v40 = vpack.c.bf16 %v6464_v49, %v6463_v13 }
0x1152   :  { %7632 = vmatprep.mubr.f32.mxu0 %v5514_v43 }
0x1153   :  { %7633 = vmatmul.mubr.f32.gmra.mrb[118].mxu0 %v5515_v42 }
0x120a   :  { %v7628_v56 = vpop.f32.mrb[114].mxu0 }
0x120b   :  { %v5629_v21 = vadd.f32 %v7628_v56, %v10105_v55  ;;  %v5599_v18 = vpop.f32.mrb[115].mxu0 }
0x120c   :  { %v5628_v11 = vadd.f32 %v5599_v18, %v10107_v15  ;;  %v6466_v18 = vld [vmem:[%s11348_s6 + $0xc8] sm:$0xff] }
0x120d   :  { %v11059_v9 = vadd.f32 %v5637_v37, %v5629_v21  ;;  %v6465_v21 = vld [vmem:[%s11348_s6 + $0xc0] sm:$0xff] }
0x120e   :  { %v11061_v0 = vadd.f32 %v5637_v37, %v5628_v11 }
0x120f   :  { %5646 = vadd.xlane.f32.xlu1 %v11059_v9 }
0x1210   :  { %5644 = vadd.xlane.f32.xlu0 %v11061_v0 }
0x121e   :  { %v7631_v39 = vpop.f32.mrb[116].mxu0 }
0x121f   :  { %v5631_v3 = vadd.f32 %v7631_v39, %v10113_v41  ;;  %v5609_v20 = vpop.f32.mrb[117].mxu0  ;;  %v8133_v39 = vpack.c.bf16 %v6466_v18, %v6465_v21 }
0x1220   :  { %v5630_v4 = vadd.f32 %v5609_v20, %v10115_v61  ;;  %v6457_v61 = vld [vmem:[%s11348_s6 + $0x80] sm:$0xff] }
0x1221   :  { %v11066_v63 = vadd.f32 %v5637_v37, %v5631_v3 }
0x1222   :  { %v11070_v55 = vadd.f32 %v5637_v37, %v5630_v4  ;;  %v6467_v4 = vld [vmem:[%s11348_s6 + $0xd0] sm:$0xff] }
0x1223   :  { %5650 = vadd.xlane.f32.xlu0 %v11066_v63 }
0x1226   :  { %v7634_v15 = vpop.f32.mrb[118].mxu0 }
0x1227   :  { %v5633_v25 = vadd.f32 %v7634_v15, %v10121_v57  ;;  %5648 = vadd.xlane.f32.xlu0 %v11070_v55  ;;  %v5619_v2 = vpop.f32.mrb[119].mxu0  ;;  %v6458_v57 = vld [vmem:[%s11348_s6 + $0x88] sm:$0xff]  ;;  %v6468_v15 = vld [vmem:[%s11348_s6 + $0xd8] sm:$0xff] }
0x1228   :  { %v5632_v38 = vadd.f32 %v5619_v2, %v10123_v5  ;;  %v6459_v5 = vld [vmem:[%s11348_s6 + $0x90] sm:$0xff]  ;;  %v8117_v31 = vpack.c.bf16 %v6458_v57, %v6457_v61  ;;  %v6469_v2 = vld [vmem:[%s11348_s6 + $0xe0] sm:$0xff] }
0x1229   :  { %v11075_v36 = vadd.f32 %v5637_v37, %v5633_v25  ;;  %v8121_v24 = vpack.c.bf16 %v6460_v54, %v6459_v5  ;;  %v8137_v25 = vpack.c.bf16 %v6468_v15, %v6467_v4  ;;  %v6471_v57 = vld [vmem:[%s11348_s6 + $0xf0] sm:$0xff]  ;;  %v6472_v5 = vld [vmem:[%s11348_s6 + $0xf8] sm:$0xff] }
0x122a   :  { %v11077_v41 = vadd.f32 %v5637_v37, %v5632_v38  ;;  %8118 = vmatprep.subr.bf16.mxu1 %v8117_v31  ;;  %v6470_v38 = vld [vmem:[%s11348_s6 + $0xe8] sm:$0xff] }
0x122b   :  { %5654 = vadd.xlane.f32.xlu1 %v11075_v36  ;;  %8120 = vmatpush3.bf16.msra.mxu1 %v8117_v31  ;;  %v8141_v61 = vpack.c.bf16 %v6470_v38, %v6469_v2  ;;  %v8145_v31 = vpack.c.bf16 %v6472_v5, %v6471_v57  ;;  %v6477_v5 = vld [vmem:[%s11349_s7 + $0xa0] sm:$0xff] }
0x122c   :  { %5652 = vadd.xlane.f32.xlu0 %v11077_v41  ;;  %8122 = vmatprep.subr.bf16.mxu1 %v8121_v24 }
0x122f   :  { %8124 = vmatpush3.bf16.msra.mxu1 %v8121_v24 }
0x1230   :  { %8126 = vmatprep.subr.bf16.mxu1 %v8125_v34 }
0x1233   :  { %8128 = vmatpush3.bf16.msra.mxu1 %v8125_v34 }
0x1234   :  { %8130 = vmatprep.subr.bf16.mxu1 %v8129_v40 }
0x1237   :  { %8132 = vmatpush3.bf16.msra.mxu1 %v8129_v40 }
0x1238   :  { %8134 = vmatprep.subr.bf16.mxu1 %v8133_v39 }
0x123b   :  { %8136 = vmatpush3.bf16.msra.mxu1 %v8133_v39 }
0x123c   :  { %8138 = vmatprep.subr.bf16.mxu1 %v8137_v25 }
0x123f   :  { %8140 = vmatpush3.bf16.msra.mxu1 %v8137_v25 }
0x1240   :  { %8142 = vmatprep.subr.bf16.mxu1 %v8141_v61 }
0x1243   :  { %8144 = vmatpush3.bf16.msra.mxu1 %v8141_v61  ;;  %v6476_v61 = vld [vmem:[%s11349_s7 + $0x98] sm:$0xff] }
0x1244   :  { %8146 = vmatprep.subr.bf16.mxu1 %v8145_v31 }
0x1247   :  { %8148 = vmatpush3.bf16.msra.mxu1 %v8145_v31  ;;  %v6478_v31 = vld [vmem:[%s11349_s7 + $0xa8] sm:$0xff] }
0x129c   :  { %v5647_v17 = vpop.xlane.xlu1 %5646 }
0x129d   :  { %v5657_v35 = vmul.f32 0.03125, %v5647_v17  ;;  %v5645_v30 = vpop.xlane.xlu0 %5644 }
0x129e   :  { %v5656_v6 = vmul.f32 0.03125, %v5645_v30 }
0x129f   :  { %v5663_v22 = vsub.f32 %v11059_v9, %v5657_v35  ;;  %v5719_v35 = vrot.slane %v11052_v1, %v9143_v16 }
0x12a0   :  { %v5662_v33 = vsub.f32 %v11061_v0, %v5656_v6 }
0x12a1   :  { %v11102_v14 = vmul.f32 %v8977_v52, %v5663_v22 }
0x12a2   :  { %v11105_v45 = vmul.f32 %v8977_v52, %v5662_v33 }
0x12a3   :  { %v5675_v47 = vmul.f32 %v11102_v14, %v11102_v14 }
0x12a4   :  { %v5674_v23 = vmul.f32 %v11105_v45, %v11105_v45 }
0x12a5   :  { %5682 = vadd.xlane.f32.xlu1 %v5675_v47  ;;  %v5729_v47 = vrot.slane %v11052_v1, %v2753_v50 }
0x12a6   :  { %5680 = vadd.xlane.f32.xlu0 %v5674_v23 }
0x12b0   :  { %v5651_v51 = vpop.xlane.xlu0 %5650 }
0x12b1   :  { %v5659_v8 = vmul.f32 0.03125, %v5651_v51 }
0x12b3   :  { %v5665_v53 = vsub.f32 %v11066_v63, %v5659_v8 }
0x12b4   :  { %v5649_v58 = vpop.xlane.xlu0 %5648 }
0x12b5   :  { %v11113_v60 = vmul.f32 %v8977_v52, %v5665_v53  ;;  %v5658_v29 = vmul.f32 0.03125, %v5649_v58 }
0x12b7   :  { %v5664_v7 = vsub.f32 %v11070_v55, %v5658_v29  ;;  %v5677_v26 = vmul.f32 %v11113_v60, %v11113_v60 }
0x12b8   :  { %v5655_v62 = vpop.xlane.xlu1 %5654 }
0x12b9   :  { %v11119_v44 = vmul.f32 %v8977_v52, %v5664_v7  ;;  %v5661_v46 = vmul.f32 0.03125, %v5655_v62  ;;  %5686 = vadd.xlane.f32.xlu1 %v5677_v26  ;;  %v5653_v32 = vpop.xlane.xlu0 %5652 }
0x12ba   :  { %v5660_v10 = vmul.f32 0.03125, %v5653_v32 }
0x12bb   :  { %v5667_v43 = vsub.f32 %v11075_v36, %v5661_v46  ;;  %v5676_v42 = vmul.f32 %v11119_v44, %v11119_v44 }
0x12bc   :  { %v5666_v37 = vsub.f32 %v11077_v41, %v5660_v10 }
0x12bd   :  { %v11132_v56 = vmul.f32 %v8977_v52, %v5667_v43  ;;  %5684 = vadd.xlane.f32.xlu0 %v5676_v42 }
0x12be   :  { %v11141_v11 = vmul.f32 %v8977_v52, %v5666_v37 }
0x12bf   :  { %v5679_v3 = vmul.f32 %v11132_v56, %v11132_v56 }
0x12c0   :  { %v5678_v20 = vmul.f32 %v11141_v11, %v11141_v11 }
0x12c1   :  { %5690 = vadd.xlane.f32.xlu1 %v5679_v3 }
0x12c2   :  { %5688 = vadd.xlane.f32.xlu0 %v5678_v20 }
0x1332   :  { %v5683_v54 = vpop.xlane.xlu1 %5682 }
0x1333   :  { %v5693_v24 = vmul.f32 0.03125, %v5683_v54  ;;  %v5681_v27 = vpop.xlane.xlu0 %5680  ;;  %v8157_v54 = vpack.c.bf16 %v6478_v31, %v6477_v5 }
0x1334   :  { %v5692_v19 = vmul.f32 0.03125, %v5681_v27  ;;  %v6480_v27 = vld [vmem:[%s11349_s7 + $0xb8] sm:$0xff] }
0x1335   :  { %v5699_v34 = vadd.f32 1e-12, %v5693_v24  ;;  %v6479_v24 = vld [vmem:[%s11349_s7 + $0xb0] sm:$0xff] }
0x1336   :  { %v5698_v17 = vadd.f32 1e-12, %v5692_v19  ;;  %v8161_v19 = vpack.c.bf16 %v6480_v27, %v6479_v24 }
0x1337   :  { %8651 = vrsqrt.f32 %v5699_v34  ;;  %v6481_v34 = vld [vmem:[%s11349_s7 + $0xc0] sm:$0xff] }
0x1338   :  { %8653 = vrsqrt.f32 %v5698_v17  ;;  %v6482_v17 = vld [vmem:[%s11349_s7 + $0xc8] sm:$0xff] }
0x1341   :  { %v8652_v30 = vpop.eup %8651 }
0x1342   :  { %v8654_v6 = vpop.eup %8653  ;;  %v5711_v22 = vmul.f32 %v8652_v30, %v11102_v14  ;;  %v6483_v30 = vld [vmem:[%s11349_s7 + $0xd0] sm:$0xff] }
0x1343   :  { %v5710_v33 = vmul.f32 %v8654_v6, %v11105_v45  ;;  %v6484_v6 = vld [vmem:[%s11349_s7 + $0xd8] sm:$0xff] }
0x1344   :  { %v5721_v23 = vmul.f32 %v5719_v35, %v5711_v22  ;;  %v8169_v22 = vpack.c.bf16 %v6484_v6, %v6483_v30 }
0x1345   :  { %v5720_v51 = vmul.f32 %v5719_v35, %v5710_v33  ;;  %v6485_v33 = vld [vmem:[%s11349_s7 + $0xe0] sm:$0xff] }
0x1346   :  { %v5687_v8 = vpop.xlane.xlu1 %5686  ;;  %v5731_v29 = vadd.f32 %v5729_v47, %v5721_v23 }
0x1347   :  { %v5695_v53 = vmul.f32 0.03125, %v5687_v8  ;;  %v5730_v58 = vadd.f32 %v5729_v47, %v5720_v51  ;;  %v6487_v51 = vld [vmem:[%s11349_s7 + $0xf0] sm:$0xff]  ;;  %v6488_v8 = vld [vmem:[%s11349_s7 + $0xf8] sm:$0xff] }
0x1349   :  { %v5701_v7 = vadd.f32 1e-12, %v5695_v53  ;;  %7667 = vmatprep.mubr.f32.mxu1 %v5730_v58  ;;  %v8177_v53 = vpack.c.bf16 %v6488_v8, %v6487_v51  ;;  %v5756_v58 = vrot.slane %v11052_v1, %v2779_v48 }
0x134a   :  { %7668 = vmatmul.mubr.f32.vlgmr.msra.gmra.mrb[144].mxu1 %v5731_v29  ;;  %v5685_v16 = vpop.xlane.xlu0 %5684 }
0x134b   :  { %8655 = vrsqrt.f32 %v5701_v7  ;;  %v5694_v26 = vmul.f32 0.03125, %v5685_v16 }
0x134d   :  { %v5700_v62 = vadd.f32 1e-12, %v5694_v26 }
0x134e   :  { %v5691_v14 = vpop.xlane.xlu1 %5690 }
0x134f   :  { %8657 = vrsqrt.f32 %v5700_v62  ;;  %v5697_v45 = vmul.f32 0.03125, %v5691_v14  ;;  %v5689_v46 = vpop.xlane.xlu0 %5688 }
0x1350   :  { %v5696_v32 = vmul.f32 0.03125, %v5689_v46 }
0x1351   :  { %v5703_v13 = vadd.f32 1e-12, %v5697_v45 }
0x1352   :  { %v5702_v50 = vadd.f32 1e-12, %v5696_v32 }
0x1353   :  { %8659 = vrsqrt.f32 %v5703_v13 }
0x1354   :  { %8661 = vrsqrt.f32 %v5702_v50 }
0x1355   :  { %v8656_v49 = vpop.eup %8655 }
0x1356   :  { %v5713_v10 = vmul.f32 %v8656_v49, %v11113_v60  ;;  %v6473_v60 = vld [vmem:[%s11349_s7 + $0x80] sm:$0xff] }
0x1358   :  { %v5723_v42 = vmul.f32 %v5719_v35, %v5713_v10 }
0x1359   :  { %v8658_v40 = vpop.eup %8657 }
0x135a   :  { %v5712_v43 = vmul.f32 %v8658_v40, %v11119_v44  ;;  %v5733_v20 = vadd.f32 %v5729_v47, %v5723_v42  ;;  %v6474_v44 = vld [vmem:[%s11349_s7 + $0x88] sm:$0xff] }
0x135c   :  { %v5722_v37 = vmul.f32 %v5719_v35, %v5712_v43 }
0x135d   :  { %v8660_v21 = vpop.eup %8659 }
0x135e   :  { %v8662_v18 = vpop.eup %8661  ;;  %v5732_v39 = vadd.f32 %v5729_v47, %v5722_v37  ;;  %v5715_v3 = vmul.f32 %v8660_v21, %v11132_v56  ;;  %v8149_v56 = vpack.c.bf16 %v6474_v44, %v6473_v60 }
0x135f   :  { %v5714_v4 = vmul.f32 %v8662_v18, %v11141_v11  ;;  %v6475_v11 = vld [vmem:[%s11349_s7 + $0x90] sm:$0xff] }
0x1360   :  { %7670 = vmatprep.mubr.f32.mxu1 %v5732_v39  ;;  %v5725_v15 = vmul.f32 %v5719_v35, %v5715_v3  ;;  %8150 = vmatprep.subr.bf16.mxu0 %v8149_v56  ;;  %v8153_v57 = vpack.c.bf16 %v6476_v61, %v6475_v11 }
0x1361   :  { %7671 = vmatmul.mubr.f32.gmra.mrb[146].mxu1 %v5733_v20  ;;  %v5724_v25 = vmul.f32 %v5719_v35, %v5714_v4  ;;  %8152 = vmatpush3.bf16.msra.mxu0 %v8149_v56  ;;  %v8165_v35 = vpack.c.bf16 %v6482_v17, %v6481_v34 }
0x1362   :  { %v5735_v38 = vadd.f32 %v5729_v47, %v5725_v15  ;;  %8154 = vmatprep.subr.bf16.mxu0 %v8153_v57 }
0x1363   :  { %v5734_v2 = vadd.f32 %v5729_v47, %v5724_v25  ;;  %v6486_v47 = vld [vmem:[%s11349_s7 + $0xe8] sm:$0xff] }
0x1364   :  { %v8173_v23 = vpack.c.bf16 %v6486_v47, %v6485_v33 }
0x1365   :  { %7673 = vmatprep.mubr.f32.mxu1 %v5734_v2  ;;  %8156 = vmatpush3.bf16.msra.mxu0 %v8153_v57 }
0x1366   :  { %7674 = vmatmul.mubr.f32.gmra.mrb[148].mxu1 %v5735_v38  ;;  %8158 = vmatprep.subr.bf16.mxu0 %v8157_v54 }
0x1369   :  { %8160 = vmatpush3.bf16.msra.mxu0 %v8157_v54 }
0x136a   :  { %8162 = vmatprep.subr.bf16.mxu0 %v8161_v19 }
0x136d   :  { %8164 = vmatpush3.bf16.msra.mxu0 %v8161_v19 }
0x136e   :  { %8166 = vmatprep.subr.bf16.mxu0 %v8165_v35 }
0x1371   :  { %8168 = vmatpush3.bf16.msra.mxu0 %v8165_v35 }
0x1372   :  { %8170 = vmatprep.subr.bf16.mxu0 %v8169_v22 }
0x1375   :  { %8172 = vmatpush3.bf16.msra.mxu0 %v8169_v22 }
0x1376   :  { %8174 = vmatprep.subr.bf16.mxu0 %v8173_v23 }
0x1379   :  { %8176 = vmatpush3.bf16.msra.mxu0 %v8173_v23 }
0x137a   :  { %8178 = vmatprep.subr.bf16.mxu0 %v8177_v53 }
0x137d   :  { %8180 = vmatpush3.bf16.msra.mxu0 %v8177_v53 }
0x141d   :  { %v7669_v29 = vpop.f32.mrb[144].mxu1 }
0x141e   :  { %v11227_v7 = vadd.f32 %v7669_v29, %v5756_v58  ;;  %v5823_v16 = vpop.f32.mrb[145].mxu1 }
0x141f   :  { %v11229_v26 = vadd.f32 %v5823_v16, %v5756_v58 }
0x1420   :  { %v11232_v62 = vmul.f32 0.70710677, %v11227_v7 }
0x1421   :  { %v11235_v14 = vmul.f32 0.70710677, %v11229_v26 }
0x1422   :  { %v5877_v45 = vand.u32 2147483647, %v11232_v62  ;;  %vm5865_vm14 = vcmp.ge.f32.partialorder %v11232_v62, 0.0 }
0x1423   :  { %v5876_v46 = vand.u32 2147483647, %v11235_v14  ;;  %vm5864_vm15 = vcmp.ge.f32.partialorder %v11235_v14, 0.0 }
0x1424   :  { %v5883_v32 = vmul.f32 0.3275911, %v5877_v45  ;;  %v5961_v49 = vsub.f32 0.0, %v5877_v45 }
0x1425   :  { %v5882_v13 = vmul.f32 0.3275911, %v5876_v46  ;;  %v5960_v15 = vsub.f32 0.0, %v5876_v46 }
0x1426   :  { %v5889_v50 = vadd.f32 1.0, %v5883_v32  ;;  %v5967_v42 = vmul.f32 %v5961_v49, %v5877_v45 }
0x1427   :  { %v5888_v48 = vadd.f32 1.0, %v5882_v13  ;;  %v5966_v54 = vmul.f32 %v5960_v15, %v5876_v46 }
0x1428   :  { %8663 = vrcp.f32 %v5889_v50  ;;  %v5974_v2 = vmul.f32 1.442695, %v5967_v42 }
0x1429   :  { %8665 = vrcp.f32 %v5888_v48  ;;  %v5972_v47 = vmul.f32 1.442695, %v5966_v54 }
0x142a   :  { %8667 = vpow2.f32 %v5974_v2 }
0x1432   :  { %v8664_v10 = vpop.eup %8663 }
0x1433   :  { %v11239_v40 = vpop.eup %8665  ;;  %v5907_v43 = vmul.f32 1.0614054, %v8664_v10 }
0x1434   :  { %v7672_v37 = vpop.f32.mrb[146].mxu1  ;;  %v5906_v20 = vmul.f32 1.0614054, %v11239_v40  ;;  %v8668_v13 = vpop.eup %8667 }
0x1435   :  { %v5913_v21 = vadd.f32 -1.4531521, %v5907_v43  ;;  %v11241_v18 = vadd.f32 %v7672_v37, %v5756_v58  ;;  %v5833_v39 = vpop.f32.mrb[147].mxu1 }
0x1436   :  { %v11243_v3 = vadd.f32 %v5833_v39, %v5756_v58  ;;  %v5912_v5 = vadd.f32 -1.4531521, %v5906_v20 }
0x1437   :  { %v5919_v4 = vmul.f32 %v8664_v10, %v5913_v21  ;;  %v11247_v25 = vmul.f32 0.70710677, %v11241_v18 }
0x1438   :  { %v11250_v38 = vmul.f32 0.70710677, %v11243_v3  ;;  %v5918_v22 = vmul.f32 %v11239_v40, %v5912_v5 }
0x1439   :  { %v5925_v60 = vadd.f32 1.4214138, %v5919_v4  ;;  %v5879_v44 = vand.u32 2147483647, %v11247_v25  ;;  %v7675_v56 = vpop.f32.mrb[148].mxu1  ;;  %vm5867_vm0 = vcmp.ge.f32.partialorder %v11247_v25, 0.0 }
0x143a   :  { %v5878_v11 = vand.u32 2147483647, %v11250_v38  ;;  %v11254_v61 = vadd.f32 %v7675_v56, %v5756_v58  ;;  %v5843_v57 = vpop.f32.mrb[149].mxu1  ;;  %v5924_v29 = vadd.f32 1.4214138, %v5918_v22  ;;  %vm5866_vm1 = vcmp.ge.f32.partialorder %v11250_v38, 0.0 }
0x143b   :  { %v5931_v31 = vmul.f32 %v8664_v10, %v5925_v60  ;;  %v5885_v24 = vmul.f32 0.3275911, %v5879_v44  ;;  %v11259_v35 = vadd.f32 %v5843_v57, %v5756_v58  ;;  %v5963_v46 = vsub.f32 0.0, %v5879_v44 }
0x143c   :  { %v5884_v27 = vmul.f32 0.3275911, %v5878_v11  ;;  %v11257_v19 = vmul.f32 0.70710677, %v11254_v61  ;;  %v5930_v45 = vmul.f32 %v11239_v40, %v5924_v29  ;;  %v5962_v50 = vsub.f32 0.0, %v5878_v11 }
0x143d   :  { %v5937_v34 = vadd.f32 -0.28449672, %v5931_v31  ;;  %v5891_v17 = vadd.f32 1.0, %v5885_v24  ;;  %v11264_v8 = vmul.f32 0.70710677, %v11259_v35  ;;  %v5871_v31 = vsel %vm5865_vm14, 1.0, %v8708_v12 }
0x143e   :  { %v5890_v30 = vadd.f32 1.0, %v5884_v27  ;;  %v5881_v6 = vand.u32 2147483647, %v11257_v19  ;;  %v5936_v48 = vadd.f32 -0.28449672, %v5930_v45  ;;  %v5968_v39 = vmul.f32 %v5962_v50, %v5878_v11 }
0x143f   :  { %v5943_v33 = vmul.f32 %v8664_v10, %v5937_v34  ;;  %8669 = vrcp.f32 %v5891_v17  ;;  %v5880_v58 = vand.u32 2147483647, %v11264_v8  ;;  %v5852_v50 = vmul.f32 0.5, %v11229_v26 }
0x1440   :  { %8671 = vrcp.f32 %v5890_v30  ;;  %v5887_v23 = vmul.f32 0.3275911, %v5881_v6  ;;  %v5942_v42 = vmul.f32 %v11239_v40, %v5936_v48  ;;  %v5965_v20 = vsub.f32 0.0, %v5881_v6 }
0x1441   :  { %v5949_v51 = vadd.f32 0.2548296, %v5943_v33  ;;  %8673 = vpow2.f32 %v5972_v47  ;;  %v5886_v32 = vmul.f32 0.3275911, %v5880_v58  ;;  %v5976_v24 = vmul.f32 1.442695, %v5968_v39 }
0x1442   :  { %v5893_v53 = vadd.f32 1.0, %v5887_v23  ;;  %v5948_v4 = vadd.f32 0.2548296, %v5942_v42  ;;  %v5971_v11 = vmul.f32 %v5965_v20, %v5881_v6  ;;  %v5964_v30 = vsub.f32 0.0, %v5880_v58 }
0x1443   :  { %v5955_v16 = vmul.f32 %v8664_v10, %v5949_v51  ;;  %v5892_v43 = vadd.f32 1.0, %v5886_v32  ;;  %v5969_v10 = vmul.f32 %v5963_v46, %v5879_v44  ;;  %v5870_v23 = vsel %vm5864_vm15, 1.0, %v8708_v12 }
0x1444   :  { %8675 = vrcp.f32 %v5893_v53  ;;  %v5954_v56 = vmul.f32 %v11239_v40, %v5948_v4  ;;  %v5982_v53 = vmul.f32 1.442695, %v5971_v11  ;;  %v5970_v46 = vmul.f32 %v5964_v30, %v5880_v58 }
0x1445   :  { %v5985_v49 = vmul.f32 %v8668_v13, %v5955_v16  ;;  %8677 = vrcp.f32 %v5892_v43  ;;  %v5978_v62 = vmul.f32 1.442695, %v5969_v10  ;;  %v5853_v42 = vmul.f32 0.5, %v11227_v7 }
0x1446   :  { %vm5869_vm2 = vcmp.ge.f32.partialorder %v11257_v19, 0.0  ;;  %vm5868_vm3 = vcmp.ge.f32.partialorder %v11264_v8, 0.0  ;;  %v6135_v8 = vrot.slane %v11052_v1, %v3157_v59 }
0x1447   :  { %v5991_v2 = vsub.f32 1.0, %v5985_v49  ;;  %8679 = vpow2.f32 %v5978_v62 }
0x1448   :  { %8681 = vpow2.f32 %v5976_v24 }
0x1449   :  { %v11269_v37 = vpop.eup %8669  ;;  %v5997_v17 = vmul.f32 %v5991_v2, %v5871_v31  ;;  %8683 = vpow2.f32 %v5982_v53 }
0x144a   :  { %v11272_v21 = vpop.eup %8671  ;;  %v5909_v15 = vmul.f32 1.0614054, %v11269_v37 }
0x144b   :  { %v5908_v60 = vmul.f32 1.0614054, %v11272_v21  ;;  %v8674_v5 = vpop.eup %8673  ;;  %v6003_v45 = vadd.f32 1.0, %v5997_v17 }
0x144c   :  { %v5915_v57 = vadd.f32 -1.4531521, %v5909_v15  ;;  %v5984_v27 = vmul.f32 %v8674_v5, %v5954_v56 }
0x144d   :  { %v5914_v44 = vadd.f32 -1.4531521, %v5908_v60  ;;  %v6009_v2 = vmul.f32 %v6003_v45, %v5853_v42  ;;  %v5980_v60 = vmul.f32 1.442695, %v5970_v46  ;;  %v5854_v46 = vmul.f32 0.5, %v11243_v3 }
0x144e   :  { %v8676_v54 = vpop.eup %8675  ;;  %v5921_v34 = vmul.f32 %v11269_v37, %v5915_v57  ;;  %v5990_v40 = vsub.f32 1.0, %v5984_v27  ;;  %v5874_v3 = vsel %vm5868_vm3, 1.0, %v8708_v12 }
0x144f   :  { %v5920_v22 = vmul.f32 %v11272_v21, %v5914_v44  ;;  %v5911_v33 = vmul.f32 1.0614054, %v8676_v54  ;;  %v8678_v16 = vpop.eup %8677  ;;  %8685 = vpow2.f32 %v5980_v60 }
0x1450   :  { %v5927_v47 = vadd.f32 1.4214138, %v5921_v34  ;;  %v5996_v29 = vmul.f32 %v5990_v40, %v5870_v23  ;;  %v5910_v43 = vmul.f32 1.0614054, %v8678_v16 }
0x1451   :  { %v5926_v51 = vadd.f32 1.4214138, %v5920_v22  ;;  %v5917_v14 = vadd.f32 -1.4531521, %v5911_v33  ;;  %v8680_v44 = vpop.eup %8679 }
0x1452   :  { %v5933_v6 = vmul.f32 %v11269_v37, %v5927_v47  ;;  %v6002_v48 = vadd.f32 1.0, %v5996_v29  ;;  %v5916_v15 = vadd.f32 -1.4531521, %v5910_v43  ;;  %v8682_v27 = vpop.eup %8681  ;;  %v5873_v47 = vsel %vm5867_vm0, 1.0, %v8708_v12 }
0x1453   :  { %v5932_v32 = vmul.f32 %v11272_v21, %v5926_v51  ;;  %v5923_v13 = vmul.f32 %v8676_v54, %v5917_v14  ;;  %v8684_v51 = vpop.eup %8683  ;;  %v5872_v14 = vsel %vm5866_vm1, 1.0, %v8708_v12 }
0x1454   :  { %v5939_v49 = vadd.f32 -0.28449672, %v5933_v6  ;;  %v6008_v20 = vmul.f32 %v6002_v48, %v5852_v50  ;;  %v5922_v26 = vmul.f32 %v8678_v16, %v5916_v15 }
0x1455   :  { %v5938_v10 = vadd.f32 -0.28449672, %v5932_v32  ;;  %v5929_v39 = vadd.f32 1.4214138, %v5923_v13  ;;  %v5855_v13 = vmul.f32 0.5, %v11241_v18 }
0x1456   :  { %v5945_v4 = vmul.f32 %v11269_v37, %v5939_v49  ;;  %7708 = vmatprep.mubr.f32.mxu0 %v6008_v20  ;;  %v5928_v62 = vadd.f32 1.4214138, %v5922_v26  ;;  %v5875_v49 = vsel %vm5869_vm2, 1.0, %v8708_v12 }
0x1457   :  { %v5944_v58 = vmul.f32 %v11272_v21, %v5938_v10  ;;  %v5935_v56 = vmul.f32 %v8676_v54, %v5929_v39  ;;  %7709 = vmatmul.mubr.f32.vlgmr.msra.gmra.mrb[120].mxu0 %v6009_v2 }
0x1458   :  { %v5951_v57 = vadd.f32 0.2548296, %v5945_v4  ;;  %v5934_v17 = vmul.f32 %v8678_v16, %v5928_v62  ;;  %v5856_v4 = vmul.f32 0.5, %v11259_v35 }
0x1459   :  { %v5950_v5 = vadd.f32 0.2548296, %v5944_v58  ;;  %v5941_v31 = vadd.f32 -0.28449672, %v5935_v56  ;;  %v8686_v48 = vpop.eup %8685 }
0x145a   :  { %v5957_v7 = vmul.f32 %v11269_v37, %v5951_v57  ;;  %v5940_v40 = vadd.f32 -0.28449672, %v5934_v17 }
0x145b   :  { %v5956_v24 = vmul.f32 %v11272_v21, %v5950_v5  ;;  %v5947_v11 = vmul.f32 %v8676_v54, %v5941_v31 }
0x145c   :  { %v5987_v34 = vmul.f32 %v8680_v44, %v5957_v7  ;;  %v5946_v53 = vmul.f32 %v8678_v16, %v5940_v40 }
0x145d   :  { %v5986_v30 = vmul.f32 %v8682_v27, %v5956_v24  ;;  %v5953_v22 = vadd.f32 0.2548296, %v5947_v11 }
0x145e   :  { %v5993_v33 = vsub.f32 1.0, %v5987_v34  ;;  %v5952_v45 = vadd.f32 0.2548296, %v5946_v53 }
0x145f   :  { %v5992_v37 = vsub.f32 1.0, %v5986_v30  ;;  %v5959_v23 = vmul.f32 %v8676_v54, %v5953_v22 }
0x1460   :  { %v5999_v21 = vmul.f32 %v5993_v33, %v5873_v47  ;;  %v5958_v50 = vmul.f32 %v8678_v16, %v5952_v45  ;;  %v5857_v16 = vmul.f32 0.5, %v11254_v61 }
0x1461   :  { %v5998_v29 = vmul.f32 %v5992_v37, %v5872_v14  ;;  %v5989_v6 = vmul.f32 %v8684_v51, %v5959_v23 }
0x1462   :  { %v6005_v25 = vadd.f32 1.0, %v5999_v21  ;;  %v5988_v42 = vmul.f32 %v8686_v48, %v5958_v50 }
0x1463   :  { %v6004_v38 = vadd.f32 1.0, %v5998_v29  ;;  %v5995_v32 = vsub.f32 1.0, %v5989_v6 }
0x1464   :  { %v6011_v43 = vmul.f32 %v6005_v25, %v5855_v13  ;;  %v5994_v39 = vsub.f32 1.0, %v5988_v42 }
0x1465   :  { %v6010_v54 = vmul.f32 %v6004_v38, %v5854_v46  ;;  %v6001_v10 = vmul.f32 %v5995_v32, %v5875_v49 }
0x1466   :  { %v6000_v19 = vmul.f32 %v5994_v39, %v5874_v3 }
0x1467   :  { %7711 = vmatprep.mubr.f32.mxu0 %v6010_v54  ;;  %v6007_v20 = vadd.f32 1.0, %v6001_v10 }
0x1468   :  { %7712 = vmatmul.mubr.f32.gmra.mrb[122].mxu0 %v6011_v43  ;;  %v6006_v18 = vadd.f32 1.0, %v6000_v19  ;;  %v6489_v19 = vld [vmem:[%s11350_s9] ss:$0 sm:$0xff] }
0x1469   :  { %v6013_v2 = vmul.f32 %v6007_v20, %v5857_v16 }
0x146a   :  { %v6012_v15 = vmul.f32 %v6006_v18, %v5856_v4 }
0x146c   :  { %7714 = vmatprep.mubr.f32.mxu0 %v6012_v15  ;;  %v6490_v15 = vld [vmem:[%s11350_s9 + $0x1] ss:$0 sm:$0xff] }
0x146d   :  { %7715 = vmatmul.mubr.f32.gmra.mrb[124].mxu0 %v6013_v2 }
0x152a   :  { %v7710_v60 = vpop.f32.mrb[120].mxu0 }
0x152b   :  { %v6127_v58 = vadd.f32 %v7710_v60, %v11059_v9  ;;  %v6097_v56 = vpop.f32.mrb[121].mxu0 }
0x152c   :  { %v6126_v12 = vadd.f32 %v6097_v56, %v11061_v0 }
0x152d   :  { %v6137_v57 = vadd.f32 %v6135_v8, %v6127_v58 }
0x152e   :  { %v6136_v26 = vadd.f32 %v6135_v8, %v6126_v12 }
0x152f   :  { %6146 = vadd.xlane.f32.xlu1 %v6137_v57 }
0x1530   :  { %6144 = vadd.xlane.f32.xlu0 %v6136_v26 }
0x153b   :  { %v7713_v35 = vpop.f32.mrb[122].mxu0 }
0x153c   :  { %v6129_v61 = vadd.f32 %v7713_v35, %v11066_v63  ;;  %v6107_v5 = vpop.f32.mrb[123].mxu0 }
0x153d   :  { %v6128_v31 = vadd.f32 %v6107_v5, %v11070_v55 }
0x153e   :  { %v6139_v7 = vadd.f32 %v6135_v8, %v6129_v61 }
0x153f   :  { %v6138_v28 = vadd.f32 %v6135_v8, %v6128_v31 }
0x1540   :  { %6150 = vadd.xlane.f32.xlu1 %v6139_v7  ;;  %v7716_v59 = vpop.f32.mrb[124].mxu0 }
0x1541   :  { %6148 = vadd.xlane.f32.xlu0 %v6138_v28  ;;  %v6131_v1 = vadd.f32 %v7716_v59, %v11075_v36  ;;  %v6117_v9 = vpop.f32.mrb[125].mxu0 }
0x1542   :  { %v6130_v0 = vadd.f32 %v6117_v9, %v11077_v41 }
0x1543   :  { %v6141_v62 = vadd.f32 %v6135_v8, %v6131_v1 }
0x1544   :  { %v6140_v44 = vadd.f32 %v6135_v8, %v6130_v0 }
0x1545   :  { %6154 = vadd.xlane.f32.xlu1 %v6141_v62 }
0x1546   :  { %6152 = vadd.xlane.f32.xlu0 %v6140_v44 }
0x15bc   :  { %v6147_v24 = vpop.xlane.xlu1 %6146 }
0x15bd   :  { %v6157_v11 = vmul.f32 0.03125, %v6147_v24  ;;  %v6145_v63 = vpop.xlane.xlu0 %6144 }
0x15be   :  { %v6156_v27 = vmul.f32 0.03125, %v6145_v63 }
0x15bf   :  { %v6163_v34 = vsub.f32 %v6137_v57, %v6157_v11 }
0x15c0   :  { %v6162_v55 = vsub.f32 %v6136_v26, %v6156_v27 }
0x15c1   :  { %v6169_v17 = vmul.f32 %v8977_v52, %v6163_v34 }
0x15c2   :  { %v6168_v30 = vmul.f32 %v8977_v52, %v6162_v55 }
0x15c3   :  { %v6175_v22 = vmul.f32 %v6169_v17, %v6169_v17 }
0x15c4   :  { %v6174_v33 = vmul.f32 %v6168_v30, %v6168_v30 }
0x15c5   :  { %6182 = vadd.xlane.f32.xlu1 %v6175_v22 }
0x15c6   :  { %6180 = vadd.xlane.f32.xlu0 %v6174_v33 }
0x15cd   :  { %v6151_v36 = vpop.xlane.xlu1 %6150 }
0x15ce   :  { %v6159_v41 = vmul.f32 0.03125, %v6151_v36  ;;  %v6149_v40 = vpop.xlane.xlu0 %6148 }
0x15cf   :  { %v6158_v47 = vmul.f32 0.03125, %v6149_v40 }
0x15d0   :  { %v6165_v37 = vsub.f32 %v6139_v7, %v6159_v41 }
0x15d1   :  { %v6164_v23 = vsub.f32 %v6138_v28, %v6158_v47 }
0x15d2   :  { %v6171_v51 = vmul.f32 %v8977_v52, %v6165_v37  ;;  %v6155_v29 = vpop.xlane.xlu1 %6154 }
0x15d3   :  { %v6170_v14 = vmul.f32 %v8977_v52, %v6164_v23  ;;  %v6161_v6 = vmul.f32 0.03125, %v6155_v29  ;;  %v6153_v25 = vpop.xlane.xlu0 %6152 }
0x15d4   :  { %v6177_v21 = vmul.f32 %v6171_v51, %v6171_v51  ;;  %v6160_v45 = vmul.f32 0.03125, %v6153_v25 }
0x15d5   :  { %v6176_v53 = vmul.f32 %v6170_v14, %v6170_v14  ;;  %v6167_v46 = vsub.f32 %v6141_v62, %v6161_v6 }
0x15d6   :  { %6186 = vadd.xlane.f32.xlu1 %v6177_v21  ;;  %v6166_v38 = vsub.f32 %v6140_v44, %v6160_v45 }
0x15d7   :  { %6184 = vadd.xlane.f32.xlu0 %v6176_v53  ;;  %v6173_v32 = vmul.f32 %v8977_v52, %v6167_v46 }
0x15d8   :  { %v6172_v13 = vmul.f32 %v8977_v52, %v6166_v38 }
0x15d9   :  { %v6179_v50 = vmul.f32 %v6173_v32, %v6173_v32 }
0x15da   :  { %v6178_v48 = vmul.f32 %v6172_v13, %v6172_v13 }
0x15db   :  { %6190 = vadd.xlane.f32.xlu1 %v6179_v50 }
0x15dc   :  { %6188 = vadd.xlane.f32.xlu0 %v6178_v48 }
0x1652   :  { %v6183_v54 = vpop.xlane.xlu1 %6182 }
0x1653   :  { %v6193_v49 = vmul.f32 0.03125, %v6183_v54  ;;  %v6181_v43 = vpop.xlane.xlu0 %6180 }
0x1654   :  { %v6192_v42 = vmul.f32 0.03125, %v6181_v43 }
0x1655   :  { %v6199_v10 = vadd.f32 1e-12, %v6193_v49 }
0x1656   :  { %v6198_v39 = vadd.f32 1e-12, %v6192_v42 }
0x1657   :  { %8687 = vrsqrt.f32 %v6199_v10 }
0x1658   :  { %8689 = vrsqrt.f32 %v6198_v39 }
0x1661   :  { %v8688_v3 = vpop.eup %8687 }
0x1662   :  { %v8690_v4 = vpop.eup %8689  ;;  %v6211_v52 = vmul.f32 %v8688_v3, %v6169_v17 }
0x1663   :  { %v6187_v20 = vpop.xlane.xlu1 %6186  ;;  %v6210_v2 = vmul.f32 %v8690_v4, %v6168_v30 }
0x1664   :  { %v6195_v18 = vmul.f32 0.03125, %v6187_v20  ;;  %v6185_v16 = vpop.xlane.xlu0 %6184  ;;  %v6221_v60 = vmul.f32 %v6489_v19, %v6211_v52 }
0x1665   :  { %v6194_v8 = vmul.f32 0.03125, %v6185_v16  ;;  %v6220_v56 = vmul.f32 %v6489_v19, %v6210_v2 }
0x1666   :  { %v6201_v58 = vadd.f32 1e-12, %v6195_v18  ;;  %v6231_v57 = vadd.f32 %v6490_v15, %v6221_v60 }
0x1667   :  { %v6200_v12 = vadd.f32 1e-12, %v6194_v8  ;;  %v6230_v26 = vadd.f32 %v6490_v15, %v6220_v56 }
0x1668   :  { %8691 = vrsqrt.f32 %v6201_v58  ;;  %6237 = vst [vmem:[%s11351_s10 + $0x8] sm:$0xff] %v6231_v57  ;;  %v6191_v35 = vpop.xlane.xlu1 %6190 }
0x1669   :  { %8693 = vrsqrt.f32 %v6200_v12  ;;  %6236 = vst [vmem:[%s11351_s10] sm:$0xff] %v6230_v26  ;;  %v6197_v61 = vmul.f32 0.03125, %v6191_v35  ;;  %v6189_v5 = vpop.xlane.xlu0 %6188 }
0x166a   :  { %v6196_v31 = vmul.f32 0.03125, %v6189_v5 }
0x166b   :  { %v6203_v7 = vadd.f32 1e-12, %v6197_v61 }
0x166c   :  { %v6202_v28 = vadd.f32 1e-12, %v6196_v31 }
0x166d   :  { %8695 = vrsqrt.f32 %v6203_v7 }
0x166e   :  { %8697 = vrsqrt.f32 %v6202_v28 }
0x1672   :  { %v8692_v59 = vpop.eup %8691 }
0x1673   :  { %v8694_v1 = vpop.eup %8693  ;;  %v6213_v9 = vmul.f32 %v8692_v59, %v6171_v51 }
0x1674   :  { %v6212_v0 = vmul.f32 %v8694_v1, %v6170_v14 }
0x1675   :  { %v6223_v62 = vmul.f32 %v6489_v19, %v6213_v9 }
0x1676   :  { %v6222_v44 = vmul.f32 %v6489_v19, %v6212_v0 }
0x1677   :  { %v6233_v24 = vadd.f32 %v6490_v15, %v6223_v62  ;;  %v8696_v63 = vpop.eup %8695 }
0x1678   :  { %v6232_v11 = vadd.f32 %v6490_v15, %v6222_v44  ;;  %v8698_v27 = vpop.eup %8697  ;;  %v6215_v34 = vmul.f32 %v8696_v63, %v6173_v32 }
0x1679   :  { %6239 = vst [vmem:[%s11351_s10 + $0x18] sm:$0xff] %v6233_v24  ;;  %v6214_v55 = vmul.f32 %v8698_v27, %v6172_v13 }
0x167a   :  { %6238 = vst [vmem:[%s11351_s10 + $0x10] sm:$0xff] %v6232_v11  ;;  %v6225_v17 = vmul.f32 %v6489_v19, %v6215_v34 }
0x167b   :  { %v6224_v30 = vmul.f32 %v6489_v19, %v6214_v55 }
0x167c   :  { %v6235_v22 = vadd.f32 %v6490_v15, %v6225_v17 }
0x167d   :  { %v6234_v33 = vadd.f32 %v6490_v15, %v6224_v30 }
0x167e   :  { %6241 = vst [vmem:[%s11351_s10 + $0x28] sm:$0xff] %v6235_v22 }
0x167f   :  { %6240 = vst [vmem:[%s11351_s10 + $0x20] sm:$0xff] %v6234_v33 }

</bundles_post_ra>
